<compile_context>
chip_gen: v7x
topology: tpu7x:2x2x1
jax: 0.10.0
libtpu: 0.0.40
codegen_flags: <defaults>
</compile_context>

<pallas_src>
import jax
import jax.numpy as jnp
import numpy as np
from jax import lax
from jax.experimental import pallas as pl
from jax.experimental.pallas import tpu as pltpu

MATMUL_DTYPE = jnp.bfloat16  # MXU-native on v5e/v6e/v7x; elementwise math stays f32.


def bigru_kernel(x_ref, lens_ref, wih_ref, whh_ref, bih_ref, bhh_ref, h0_ref,
                 out_ref, hn_ref, gi_ref, outf_ref):
    T, Bp, Hp = x_ref.shape
    G = 3 * Hp        # per-direction padded gate width
    GW = 2 * G        # both directions

    # ---- Phase 1: hoisted input projection (one MXU-shaped GEMM) ----
    x_flat = x_ref[...].reshape(T * Bp, Hp)                       # bf16
    gi = jnp.dot(x_flat, wih_ref[...],
                 preferred_element_type=jnp.float32)              # (T*Bp, GW) f32
    gi = gi + bih_ref[...]                                        # bih folded in
    gi_ref[...] = gi.reshape(T, Bp, GW)

    # ---- Phase 2: fused bidirectional recurrence ----
    whh = whh_ref[...]                                            # (2*Hp, GW) bf16
    bhh = jnp.broadcast_to(bhh_ref[...], (Bp, GW))                # hoisted broadcast
    lens = lens_ref[...]                                          # (Bp, 1) int32

    h0 = jnp.concatenate([h0_ref[0], h0_ref[1]], axis=-1)         # (Bp, 2*Hp) f32

    def step(i, h_cat):
        r_idx = T - 1 - i

        # one block-diagonal recurrent matmul for both directions
        gh = jnp.dot(h_cat.astype(whh.dtype), whh,
                     preferred_element_type=jnp.float32) + bhh    # (Bp, GW)

        gi_f = gi_ref[i]                                          # (Bp, GW)
        gi_b = gi_ref[r_idx]

        # forward gates (128-lane tile-aligned slices, PyTorch order [r, z, n])
        r_f = jax.nn.sigmoid(gi_f[:, 0:Hp] + gh[:, 0:Hp])
        z_f = jax.nn.sigmoid(gi_f[:, Hp:2 * Hp] + gh[:, Hp:2 * Hp])
        n_f = jnp.tanh(gi_f[:, 2 * Hp:3 * Hp] + r_f * gh[:, 2 * Hp:3 * Hp])
        h_f_prev = h_cat[:, :Hp]
        h_f_new = (1.0 - z_f) * n_f + z_f * h_f_prev

        # backward gates
        r_b = jax.nn.sigmoid(gi_b[:, G:G + Hp] + gh[:, G:G + Hp])
        z_b = jax.nn.sigmoid(gi_b[:, G + Hp:G + 2 * Hp] + gh[:, G + Hp:G + 2 * Hp])
        n_b = jnp.tanh(gi_b[:, G + 2 * Hp:G + 3 * Hp]
                       + r_b * gh[:, G + 2 * Hp:G + 3 * Hp])
        h_b_prev = h_cat[:, Hp:]
        h_b_new = (1.0 - z_b) * n_b + z_b * h_b_prev

        # packed-sequence masks computed in-kernel (no (T,B,1) f32 mask input)
        m_f = lens > i                                            # (Bp, 1) bool
        m_b = lens > r_idx

        outf_ref[i] = jnp.where(m_f, h_f_new, 0.0)                # forward contrib
        out_ref[r_idx] = jnp.where(m_b, h_b_new, 0.0)             # backward contrib

        h_f = jnp.where(m_f, h_f_new, h_f_prev)
        h_b = jnp.where(m_b, h_b_new, h_b_prev)
        return jnp.concatenate([h_f, h_b], axis=-1)

    h_cat = lax.fori_loop(0, T, step, h0, unroll=True)

    hn_ref[0] = h_cat[:, :Hp]
    hn_ref[1] = h_cat[:, Hp:]
    # single lane-dense combine of the two direction buffers
    out_ref[...] = out_ref[...] + outf_ref[...]


def encoder_rnn_forward(input_seq, input_lengths, embedding_matrix, params, hidden=None):
    """Equivalent of EncoderRNN.forward (n_layers=1, bidirectional)."""
    T, B = input_seq.shape
    H = embedding_matrix.shape[1]

    Bp = ((B + 7) // 8) * 8                     # sublane-pad batch
    Hp = ((H + 127) // 128) * 128               # lane-pad hidden / each gate
    G = 3 * Hp
    GW = 2 * G

    # --- XLA glue: embedding lookup + padding ---
    x = embedding_matrix[input_seq].astype(jnp.float32)           # (T, B, H)
    x = jnp.pad(x, ((0, 0), (0, Bp - B), (0, Hp - H))).astype(MATMUL_DTYPE)

    lens = jnp.pad(input_lengths.astype(jnp.int32), (0, Bp - B))[:, None]  # (Bp,1)

    def pad_gates(w):  # (H, 3H) -> (Hp, 3*Hp), each gate in its own 128-lane tile
        wg = w.reshape(H, 3, H)
        out = jnp.zeros((Hp, 3, Hp), w.dtype).at[:H, :, :H].set(wg)
        return out.reshape(Hp, 3 * Hp)

    def pad_bias(b):   # (1, 3H) -> (1, 3*Hp)
        bg = b.reshape(1, 3, H)
        out = jnp.zeros((1, 3, Hp), b.dtype).at[:, :, :H].set(bg)
        return out.reshape(1, 3 * Hp)

    wih_cat = jnp.concatenate(
        [pad_gates(params["wih_f"]), pad_gates(params["wih_b"])], axis=1)  # (Hp, GW)
    bih_cat = jnp.concatenate(
        [pad_bias(params["bih_f"]), pad_bias(params["bih_b"])], axis=1)    # (1, GW)
    bhh_cat = jnp.concatenate(
        [pad_bias(params["bhh_f"]), pad_bias(params["bhh_b"])], axis=1)    # (1, GW)

    # block-diagonal recurrent weight: rows [0:Hp] -> fwd gates, [Hp:2Hp] -> bwd gates
    whh_blk = jnp.zeros((2 * Hp, GW), jnp.float32)
    whh_blk = whh_blk.at[:Hp, :G].set(pad_gates(params["whh_f"]))
    whh_blk = whh_blk.at[Hp:, G:].set(pad_gates(params["whh_b"]))

    wih_cat = wih_cat.astype(MATMUL_DTYPE)
    whh_blk = whh_blk.astype(MATMUL_DTYPE)
    bih_cat = bih_cat.astype(jnp.float32)
    bhh_cat = bhh_cat.astype(jnp.float32)

    if hidden is None:
        h0 = jnp.zeros((2, Bp, Hp), jnp.float32)
    else:
        h0 = jnp.zeros((2, Bp, Hp), jnp.float32).at[:, :B, :H].set(
            hidden.astype(jnp.float32))

    vspec = pl.BlockSpec(memory_space=pltpu.MemorySpace.VMEM)

    flops = int(2 * (T * Bp) * Hp * GW          # input projection GEMM
                + 2 * T * Bp * (2 * Hp) * GW)   # recurrent matmuls
    transcendentals = int(2 * T * Bp * 3 * Hp)
    bytes_accessed = int(x.nbytes + lens.nbytes + wih_cat.nbytes + whh_blk.nbytes
                         + bih_cat.nbytes + bhh_cat.nbytes + h0.nbytes
                         + (T * Bp * Hp + 2 * Bp * Hp) * 4)

    out_pad, hn_pad = pl.pallas_call(
        bigru_kernel,
        out_shape=(jax.ShapeDtypeStruct((T, Bp, Hp), jnp.float32),
                   jax.ShapeDtypeStruct((2, Bp, Hp), jnp.float32)),
        in_specs=[vspec] * 7,
        out_specs=(vspec, vspec),
        scratch_shapes=[pltpu.VMEM((T, Bp, GW), jnp.float32),   # GI (input proj)
                        pltpu.VMEM((T, Bp, Hp), jnp.float32)],  # forward outputs
        compiler_params=pltpu.CompilerParams(vmem_limit_bytes=32 * 1024 * 1024),
        cost_estimate=pl.CostEstimate(flops=flops,
                                      transcendentals=transcendentals,
                                      bytes_accessed=bytes_accessed),
    )(x, lens, wih_cat, whh_blk, bih_cat, bhh_cat, h0)

    return out_pad[:, :B, :H], hn_pad[:, :B, :H]


def _ref_forward(input_seq, input_lengths, embedding_matrix, params, hidden=None):
    """Pure-numpy reference with the same packed-GRU semantics."""
    T, B = input_seq.shape
    H = embedding_matrix.shape[1]
    x = np.asarray(embedding_matrix)[np.asarray(input_seq)]              # (T, B, H)
    lens = np.asarray(input_lengths)
    if hidden is None:
        hidden = np.zeros((2, B, H), np.float32)
    p = {k: np.asarray(v) for k, v in params.items()}

    def cell(x_t, h, wih, whh, bih, bhh):
        gi = x_t @ wih + bih
        gh = h @ whh + bhh
        r = 1.0 / (1.0 + np.exp(-(gi[:, :H] + gh[:, :H])))
        z = 1.0 / (1.0 + np.exp(-(gi[:, H:2 * H] + gh[:, H:2 * H])))
        n = np.tanh(gi[:, 2 * H:] + r * gh[:, 2 * H:])
        return (1.0 - z) * n + z * h

    out_f = np.zeros((T, B, H), np.float32)
    out_b = np.zeros((T, B, H), np.float32)
    h_f = np.array(hidden[0])
    h_b = np.array(hidden[1])
    for t in range(T):
        m = (t < lens).astype(np.float32)[:, None]
        h_new = cell(x[t], h_f, p["wih_f"], p["whh_f"], p["bih_f"], p["bhh_f"])
        h_f = m * h_new + (1.0 - m) * h_f
        out_f[t] = m * h_new
    for t in range(T - 1, -1, -1):
        m = (t < lens).astype(np.float32)[:, None]
        h_new = cell(x[t], h_b, p["wih_b"], p["whh_b"], p["bih_b"], p["bhh_b"])
        h_b = m * h_new + (1.0 - m) * h_b
        out_b[t] = m * h_new
    return out_f + out_b, np.stack([h_f, h_b])


if __name__ == "__main__":
    T, B, H, VOCAB = 8, 4, 32, 20

    key = jax.random.PRNGKey(0)
    keys = jax.random.split(key, 12)

    # Deterministic parameter init (PyTorch GRU uses U(-1/sqrt(H), 1/sqrt(H))).
    std = 1.0 / np.sqrt(H)

    def u(k, shape):
        return jax.random.uniform(k, shape, jnp.float32, -std, std)

    embedding_matrix = jax.random.normal(keys[0], (VOCAB, H), jnp.float32) * 0.1
    params = {
        "wih_f": u(keys[1], (H, 3 * H)), "whh_f": u(keys[2], (H, 3 * H)),
        "bih_f": u(keys[3], (1, 3 * H)), "bhh_f": u(keys[4], (1, 3 * H)),
        "wih_b": u(keys[5], (H, 3 * H)), "whh_b": u(keys[6], (H, 3 * H)),
        "bih_b": u(keys[7], (1, 3 * H)), "bhh_b": u(keys[8], (1, 3 * H)),
    }

    input_seq = jax.random.randint(keys[9], (T, B), 0, VOCAB, jnp.int32)
    # pack_padded_sequence (enforce_sorted=True) requires descending lengths.
    input_lengths = jnp.array([8, 7, 5, 3], jnp.int32)

    outputs, hidden = encoder_rnn_forward(input_seq, input_lengths,
                                          embedding_matrix, params)
    outputs = jax.block_until_ready(outputs)
    hidden = jax.block_until_ready(hidden)

    ref_out, ref_hid = _ref_forward(input_seq, input_lengths,
                                    embedding_matrix, params)
    # bf16 matmul operands (f32 accumulation / elementwise) -> loose tolerance.
    np.testing.assert_allclose(np.asarray(outputs), ref_out, rtol=2e-2, atol=2e-2)
    np.testing.assert_allclose(np.asarray(hidden), ref_hid, rtol=2e-2, atol=2e-2)

    assert outputs.shape == (T, B, H) and hidden.shape == (2, B, H)
    print("KERNEL_OK")
</pallas_src>

<mosaic_0001>
module attributes {stable_mosaic.version = 11 : i64} {
  func.func @bigru_kernel(%arg0: memref<8x8x128xbf16, #tpu.memory_space<vmem>>, %arg1: memref<8x1xi32, #tpu.memory_space<vmem>>, %arg2: memref<128x768xbf16, #tpu.memory_space<vmem>>, %arg3: memref<256x768xbf16, #tpu.memory_space<vmem>>, %arg4: memref<1x768xf32, #tpu.memory_space<vmem>>, %arg5: memref<1x768xf32, #tpu.memory_space<vmem>>, %arg6: memref<2x8x128xf32, #tpu.memory_space<vmem>>, %arg7: memref<8x8x128xf32, #tpu.memory_space<vmem>>, %arg8: memref<2x8x128xf32, #tpu.memory_space<vmem>>, %arg9: memref<8x8x768xf32, #tpu.memory_space<vmem>>, %arg10: memref<8x8x128xf32, #tpu.memory_space<vmem>>) attributes {dimension_semantics = [], scalar_prefetch = 0 : i64, scratch_operands = 2 : i64, tpu.core_type = #tpu.core_type<tc>} {
    %c0 = arith.constant 0 : index
    %c0_0 = arith.constant 0 : index
    %c0_1 = arith.constant 0 : index
    %0 = vector.load %arg0[%c0, %c0_0, %c0_1] : memref<8x8x128xbf16, #tpu.memory_space<vmem>>, vector<8x8x128xbf16>
    %1 = vector.shape_cast %0 : vector<8x8x128xbf16> to vector<64x128xbf16>
    %c0_2 = arith.constant 0 : index
    %c0_3 = arith.constant 0 : index
    %2 = vector.load %arg2[%c0_2, %c0_3] : memref<128x768xbf16, #tpu.memory_space<vmem>>, vector<128x768xbf16>
    %cst = arith.constant dense<0.000000e+00> : vector<64x768xf32>
    %3 = tpu.matmul %1, %2, %cst {dimension_numbers = #tpu.dot_dimension_numbers<[1], [0], [0], [1], [0, 0, 1, 1], [], []>} : vector<64x128xbf16>, vector<128x768xbf16>, vector<64x768xf32> -> vector<64x768xf32>
    %c0_4 = arith.constant 0 : index
    %c0_5 = arith.constant 0 : index
    %4 = vector.load %arg4[%c0_4, %c0_5] : memref<1x768xf32, #tpu.memory_space<vmem>>, vector<1x768xf32>
    %5 = vector.broadcast %4 : vector<1x768xf32> to vector<64x768xf32>
    %6 = arith.addf %3, %5 : vector<64x768xf32>
    %7 = vector.shape_cast %6 : vector<64x768xf32> to vector<8x8x768xf32>
    %c0_6 = arith.constant 0 : index
    %c0_7 = arith.constant 0 : index
    %c0_8 = arith.constant 0 : index
    %8 = vector.load %arg9[%c0_6, %c0_7, %c0_8] : memref<8x8x768xf32, #tpu.memory_space<vmem>>, vector<8x8x768xf32>
    tpu.vector_store %arg9[%c0_6, %c0_7, %c0_8], %7 {strides = array<i32>} : memref<8x8x768xf32, #tpu.memory_space<vmem>>, vector<8x8x768xf32>,
    %c0_9 = arith.constant 0 : index
    %c0_10 = arith.constant 0 : index
    %9 = vector.load %arg3[%c0_9, %c0_10] : memref<256x768xbf16, #tpu.memory_space<vmem>>, vector<256x768xbf16>
    %c0_11 = arith.constant 0 : index
    %c0_12 = arith.constant 0 : index
    %10 = vector.load %arg5[%c0_11, %c0_12] : memref<1x768xf32, #tpu.memory_space<vmem>>, vector<1x768xf32>
    %11 = vector.shape_cast %10 : vector<1x768xf32> to vector<1x768xf32>
    %12 = vector.broadcast %11 : vector<1x768xf32> to vector<8x768xf32>
    %c0_13 = arith.constant 0 : index
    %c0_14 = arith.constant 0 : index
    %13 = vector.load %arg1[%c0_13, %c0_14] : memref<8x1xi32, #tpu.memory_space<vmem>>, vector<8x1xi32>
    %c0_15 = arith.constant 0 : index
    %c0_16 = arith.constant 0 : index
    %c0_17 = arith.constant 0 : index
    %14 = vector.load %arg6[%c0_15, %c0_16, %c0_17] : memref<2x8x128xf32, #tpu.memory_space<vmem>>, vector<1x8x128xf32>
    %15 = vector.shape_cast %14 : vector<1x8x128xf32> to vector<8x128xf32>
    %c1 = arith.constant 1 : index
    %c0_18 = arith.constant 0 : index
    %c0_19 = arith.constant 0 : index
    %16 = vector.load %arg6[%c1, %c0_18, %c0_19] : memref<2x8x128xf32, #tpu.memory_space<vmem>>, vector<1x8x128xf32>
    %17 = vector.shape_cast %16 : vector<1x8x128xf32> to vector<8x128xf32>
    %18 = tpu.concatenate %15, %17 in 1 : vector<8x128xf32>, vector<8x128xf32> -> vector<8x256xf32>
    %c0_i32 = arith.constant 0 : i32
    %c7_i32 = arith.constant 7 : i32
    %19 = arith.subi %c7_i32, %c0_i32 : i32
    %20 = arith.truncf %18 : vector<8x256xf32> to vector<8x256xbf16>
    %cst_20 = arith.constant dense<0.000000e+00> : vector<8x768xf32>
    %21 = tpu.matmul %20, %9, %cst_20 {dimension_numbers = #tpu.dot_dimension_numbers<[1], [0], [0], [1], [0, 0, 1, 1], [], []>} : vector<8x256xbf16>, vector<256x768xbf16>, vector<8x768xf32> -> vector<8x768xf32>
    %22 = arith.addf %21, %12 : vector<8x768xf32>
    %23 = arith.index_cast %c0_i32 : i32 to index
    %c0_21 = arith.constant 0 : index
    %c0_22 = arith.constant 0 : index
    %24 = vector.load %arg9[%23, %c0_21, %c0_22] : memref<8x8x768xf32, #tpu.memory_space<vmem>>, vector<1x8x768xf32>
    %25 = vector.shape_cast %24 : vector<1x8x768xf32> to vector<8x768xf32>
    %26 = arith.index_cast %19 : i32 to index
    %c0_23 = arith.constant 0 : index
    %c0_24 = arith.constant 0 : index
    %27 = vector.load %arg9[%26, %c0_23, %c0_24] : memref<8x8x768xf32, #tpu.memory_space<vmem>>, vector<1x8x768xf32>
    %28 = vector.shape_cast %27 : vector<1x8x768xf32> to vector<8x768xf32>
    %29 = vector.extract_strided_slice %25 {offsets = [0, 0], sizes = [8, 128], strides = [1, 1]} : vector<8x768xf32> to vector<8x128xf32>
    %30 = vector.extract_strided_slice %22 {offsets = [0, 0], sizes = [8, 128], strides = [1, 1]} : vector<8x768xf32> to vector<8x128xf32>
    %31 = arith.addf %29, %30 : vector<8x128xf32>
    %32 = arith.negf %31 : vector<8x128xf32>
    %33 = math.exp %32 : vector<8x128xf32>
    %cst_25 = arith.constant 1.000000e+00 : f32
    %34 = vector.broadcast %cst_25 : f32 to vector<8x128xf32>
    %35 = arith.addf %34, %33 : vector<8x128xf32>
    %36 = arith.divf %34, %35 : vector<8x128xf32>
    %37 = vector.extract_strided_slice %25 {offsets = [0, 128], sizes = [8, 128], strides = [1, 1]} : vector<8x768xf32> to vector<8x128xf32>
    %38 = vector.extract_strided_slice %22 {offsets = [0, 128], sizes = [8, 128], strides = [1, 1]} : vector<8x768xf32> to vector<8x128xf32>
    %39 = arith.addf %37, %38 : vector<8x128xf32>
    %40 = arith.negf %39 : vector<8x128xf32>
    %41 = math.exp %40 : vector<8x128xf32>
    %cst_26 = arith.constant 1.000000e+00 : f32
    %42 = vector.broadcast %cst_26 : f32 to vector<8x128xf32>
    %43 = arith.addf %42, %41 : vector<8x128xf32>
    %44 = arith.divf %42, %43 : vector<8x128xf32>
    %45 = vector.extract_strided_slice %25 {offsets = [0, 256], sizes = [8, 128], strides = [1, 1]} : vector<8x768xf32> to vector<8x128xf32>
    %46 = vector.extract_strided_slice %22 {offsets = [0, 256], sizes = [8, 128], strides = [1, 1]} : vector<8x768xf32> to vector<8x128xf32>
    %47 = arith.mulf %36, %46 : vector<8x128xf32>
    %48 = arith.addf %45, %47 : vector<8x128xf32>
    %49 = math.tanh %48 : vector<8x128xf32>
    %50 = vector.extract_strided_slice %18 {offsets = [0, 0], sizes = [8, 128], strides = [1, 1]} : vector<8x256xf32> to vector<8x128xf32>
    %cst_27 = arith.constant 1.000000e+00 : f32
    %51 = vector.broadcast %cst_27 : f32 to vector<8x128xf32>
    %52 = arith.subf %51, %44 : vector<8x128xf32>
    %53 = arith.mulf %52, %49 : vector<8x128xf32>
    %54 = arith.mulf %44, %50 : vector<8x128xf32>
    %55 = arith.addf %53, %54 : vector<8x128xf32>
    %56 = vector.extract_strided_slice %28 {offsets = [0, 384], sizes = [8, 128], strides = [1, 1]} : vector<8x768xf32> to vector<8x128xf32>
    %57 = vector.extract_strided_slice %22 {offsets = [0, 384], sizes = [8, 128], strides = [1, 1]} : vector<8x768xf32> to vector<8x128xf32>
    %58 = arith.addf %56, %57 : vector<8x128xf32>
    %59 = arith.negf %58 : vector<8x128xf32>
    %60 = math.exp %59 : vector<8x128xf32>
    %cst_28 = arith.constant 1.000000e+00 : f32
    %61 = vector.broadcast %cst_28 : f32 to vector<8x128xf32>
    %62 = arith.addf %61, %60 : vector<8x128xf32>
    %63 = arith.divf %61, %62 : vector<8x128xf32>
    %64 = vector.extract_strided_slice %28 {offsets = [0, 512], sizes = [8, 128], strides = [1, 1]} : vector<8x768xf32> to vector<8x128xf32>
    %65 = vector.extract_strided_slice %22 {offsets = [0, 512], sizes = [8, 128], strides = [1, 1]} : vector<8x768xf32> to vector<8x128xf32>
    %66 = arith.addf %64, %65 : vector<8x128xf32>
    %67 = arith.negf %66 : vector<8x128xf32>
    %68 = math.exp %67 : vector<8x128xf32>
    %cst_29 = arith.constant 1.000000e+00 : f32
    %69 = vector.broadcast %cst_29 : f32 to vector<8x128xf32>
    %70 = arith.addf %69, %68 : vector<8x128xf32>
    %71 = arith.divf %69, %70 : vector<8x128xf32>
    %72 = vector.extract_strided_slice %28 {offsets = [0, 640], sizes = [8, 128], strides = [1, 1]} : vector<8x768xf32> to vector<8x128xf32>
    %73 = vector.extract_strided_slice %22 {offsets = [0, 640], sizes = [8, 128], strides = [1, 1]} : vector<8x768xf32> to vector<8x128xf32>
    %74 = arith.mulf %63, %73 : vector<8x128xf32>
    %75 = arith.addf %72, %74 : vector<8x128xf32>
    %76 = math.tanh %75 : vector<8x128xf32>
    %77 = vector.extract_strided_slice %18 {offsets = [0, 128], sizes = [8, 128], strides = [1, 1]} : vector<8x256xf32> to vector<8x128xf32>
    %cst_30 = arith.constant 1.000000e+00 : f32
    %78 = vector.broadcast %cst_30 : f32 to vector<8x128xf32>
    %79 = arith.subf %78, %71 : vector<8x128xf32>
    %80 = arith.mulf %79, %76 : vector<8x128xf32>
    %81 = arith.mulf %71, %77 : vector<8x128xf32>
    %82 = arith.addf %80, %81 : vector<8x128xf32>
    %83 = vector.broadcast %c0_i32 : i32 to vector<8x1xi32>
    %84 = arith.cmpi sgt, %13, %83 : vector<8x1xi32>
    %85 = vector.broadcast %19 : i32 to vector<8x1xi32>
    %86 = arith.cmpi sgt, %13, %85 : vector<8x1xi32>
    %cst_31 = arith.constant 0.000000e+00 : f32
    %87 = vector.shape_cast %84 : vector<8x1xi1> to vector<8x1xi1>
    %88 = vector.broadcast %87 : vector<8x1xi1> to vector<8x128xi1>
    %89 = vector.broadcast %cst_31 : f32 to vector<8x128xf32>
    %90 = arith.select %88, %55, %89 : vector<8x128xi1>, vector<8x128xf32>
    %91 = arith.index_cast %c0_i32 : i32 to index
    %c0_32 = arith.constant 0 : index
    %c0_33 = arith.constant 0 : index
    %92 = vector.load %arg10[%91, %c0_32, %c0_33] : memref<8x8x128xf32, #tpu.memory_space<vmem>>, vector<1x8x128xf32>
    %93 = vector.shape_cast %92 : vector<1x8x128xf32> to vector<8x128xf32>
    %94 = vector.shape_cast %90 : vector<8x128xf32> to vector<1x8x128xf32>
    tpu.vector_store %arg10[%91, %c0_32, %c0_33], %94 {strides = array<i32>} : memref<8x8x128xf32, #tpu.memory_space<vmem>>, vector<1x8x128xf32>,
    %cst_34 = arith.constant 0.000000e+00 : f32
    %95 = vector.shape_cast %86 : vector<8x1xi1> to vector<8x1xi1>
    %96 = vector.broadcast %95 : vector<8x1xi1> to vector<8x128xi1>
    %97 = vector.broadcast %cst_34 : f32 to vector<8x128xf32>
    %98 = arith.select %96, %82, %97 : vector<8x128xi1>, vector<8x128xf32>
    %99 = arith.index_cast %19 : i32 to index
    %c0_35 = arith.constant 0 : index
    %c0_36 = arith.constant 0 : index
    %100 = vector.load %arg7[%99, %c0_35, %c0_36] : memref<8x8x128xf32, #tpu.memory_space<vmem>>, vector<1x8x128xf32>
    %101 = vector.shape_cast %100 : vector<1x8x128xf32> to vector<8x128xf32>
    %102 = vector.shape_cast %98 : vector<8x128xf32> to vector<1x8x128xf32>
    tpu.vector_store %arg7[%99, %c0_35, %c0_36], %102 {strides = array<i32>} : memref<8x8x128xf32, #tpu.memory_space<vmem>>, vector<1x8x128xf32>,
    %103 = vector.shape_cast %84 : vector<8x1xi1> to vector<8x1xi1>
    %104 = vector.broadcast %103 : vector<8x1xi1> to vector<8x128xi1>
    %105 = arith.select %104, %55, %50 : vector<8x128xi1>, vector<8x128xf32>
    %106 = vector.shape_cast %86 : vector<8x1xi1> to vector<8x1xi1>
    %107 = vector.broadcast %106 : vector<8x1xi1> to vector<8x128xi1>
    %108 = arith.select %107, %82, %77 : vector<8x128xi1>, vector<8x128xf32>
    %109 = tpu.concatenate %105, %108 in 1 : vector<8x128xf32>, vector<8x128xf32> -> vector<8x256xf32>
    %c1_i32 = arith.constant 1 : i32
    %c7_i32_37 = arith.constant 7 : i32
    %110 = arith.subi %c7_i32_37, %c1_i32 : i32
    %111 = arith.truncf %109 : vector<8x256xf32> to vector<8x256xbf16>
    %cst_38 = arith.constant dense<0.000000e+00> : vector<8x768xf32>
    %112 = tpu.matmul %111, %9, %cst_38 {dimension_numbers = #tpu.dot_dimension_numbers<[1], [0], [0], [1], [0, 0, 1, 1], [], []>} : vector<8x256xbf16>, vector<256x768xbf16>, vector<8x768xf32> -> vector<8x768xf32>
    %113 = arith.addf %112, %12 : vector<8x768xf32>
    %114 = arith.index_cast %c1_i32 : i32 to index
    %c0_39 = arith.constant 0 : index
    %c0_40 = arith.constant 0 : index
    %115 = vector.load %arg9[%114, %c0_39, %c0_40] : memref<8x8x768xf32, #tpu.memory_space<vmem>>, vector<1x8x768xf32>
    %116 = vector.shape_cast %115 : vector<1x8x768xf32> to vector<8x768xf32>
    %117 = arith.index_cast %110 : i32 to index
    %c0_41 = arith.constant 0 : index
    %c0_42 = arith.constant 0 : index
    %118 = vector.load %arg9[%117, %c0_41, %c0_42] : memref<8x8x768xf32, #tpu.memory_space<vmem>>, vector<1x8x768xf32>
    %119 = vector.shape_cast %118 : vector<1x8x768xf32> to vector<8x768xf32>
    %120 = vector.extract_strided_slice %116 {offsets = [0, 0], sizes = [8, 128], strides = [1, 1]} : vector<8x768xf32> to vector<8x128xf32>
    %121 = vector.extract_strided_slice %113 {offsets = [0, 0], sizes = [8, 128], strides = [1, 1]} : vector<8x768xf32> to vector<8x128xf32>
    %122 = arith.addf %120, %121 : vector<8x128xf32>
    %123 = arith.negf %122 : vector<8x128xf32>
    %124 = math.exp %123 : vector<8x128xf32>
    %cst_43 = arith.constant 1.000000e+00 : f32
    %125 = vector.broadcast %cst_43 : f32 to vector<8x128xf32>
    %126 = arith.addf %125, %124 : vector<8x128xf32>
    %127 = arith.divf %125, %126 : vector<8x128xf32>
    %128 = vector.extract_strided_slice %116 {offsets = [0, 128], sizes = [8, 128], strides = [1, 1]} : vector<8x768xf32> to vector<8x128xf32>
    %129 = vector.extract_strided_slice %113 {offsets = [0, 128], sizes = [8, 128], strides = [1, 1]} : vector<8x768xf32> to vector<8x128xf32>
    %130 = arith.addf %128, %129 : vector<8x128xf32>
    %131 = arith.negf %130 : vector<8x128xf32>
    %132 = math.exp %131 : vector<8x128xf32>
    %cst_44 = arith.constant 1.000000e+00 : f32
    %133 = vector.broadcast %cst_44 : f32 to vector<8x128xf32>
    %134 = arith.addf %133, %132 : vector<8x128xf32>
    %135 = arith.divf %133, %134 : vector<8x128xf32>
    %136 = vector.extract_strided_slice %116 {offsets = [0, 256], sizes = [8, 128], strides = [1, 1]} : vector<8x768xf32> to vector<8x128xf32>
    %137 = vector.extract_strided_slice %113 {offsets = [0, 256], sizes = [8, 128], strides = [1, 1]} : vector<8x768xf32> to vector<8x128xf32>
    %138 = arith.mulf %127, %137 : vector<8x128xf32>
    %139 = arith.addf %136, %138 : vector<8x128xf32>
    %140 = math.tanh %139 : vector<8x128xf32>
    %141 = vector.extract_strided_slice %109 {offsets = [0, 0], sizes = [8, 128], strides = [1, 1]} : vector<8x256xf32> to vector<8x128xf32>
    %cst_45 = arith.constant 1.000000e+00 : f32
    %142 = vector.broadcast %cst_45 : f32 to vector<8x128xf32>
    %143 = arith.subf %142, %135 : vector<8x128xf32>
    %144 = arith.mulf %143, %140 : vector<8x128xf32>
    %145 = arith.mulf %135, %141 : vector<8x128xf32>
    %146 = arith.addf %144, %145 : vector<8x128xf32>
    %147 = vector.extract_strided_slice %119 {offsets = [0, 384], sizes = [8, 128], strides = [1, 1]} : vector<8x768xf32> to vector<8x128xf32>
    %148 = vector.extract_strided_slice %113 {offsets = [0, 384], sizes = [8, 128], strides = [1, 1]} : vector<8x768xf32> to vector<8x128xf32>
    %149 = arith.addf %147, %148 : vector<8x128xf32>
    %150 = arith.negf %149 : vector<8x128xf32>
    %151 = math.exp %150 : vector<8x128xf32>
    %cst_46 = arith.constant 1.000000e+00 : f32
    %152 = vector.broadcast %cst_46 : f32 to vector<8x128xf32>
    %153 = arith.addf %152, %151 : vector<8x128xf32>
    %154 = arith.divf %152, %153 : vector<8x128xf32>
    %155 = vector.extract_strided_slice %119 {offsets = [0, 512], sizes = [8, 128], strides = [1, 1]} : vector<8x768xf32> to vector<8x128xf32>
    %156 = vector.extract_strided_slice %113 {offsets = [0, 512], sizes = [8, 128], strides = [1, 1]} : vector<8x768xf32> to vector<8x128xf32>
    %157 = arith.addf %155, %156 : vector<8x128xf32>
    %158 = arith.negf %157 : vector<8x128xf32>
    %159 = math.exp %158 : vector<8x128xf32>
    %cst_47 = arith.constant 1.000000e+00 : f32
    %160 = vector.broadcast %cst_47 : f32 to vector<8x128xf32>
    %161 = arith.addf %160, %159 : vector<8x128xf32>
    %162 = arith.divf %160, %161 : vector<8x128xf32>
    %163 = vector.extract_strided_slice %119 {offsets = [0, 640], sizes = [8, 128], strides = [1, 1]} : vector<8x768xf32> to vector<8x128xf32>
    %164 = vector.extract_strided_slice %113 {offsets = [0, 640], sizes = [8, 128], strides = [1, 1]} : vector<8x768xf32> to vector<8x128xf32>
    %165 = arith.mulf %154, %164 : vector<8x128xf32>
    %166 = arith.addf %163, %165 : vector<8x128xf32>
    %167 = math.tanh %166 : vector<8x128xf32>
    %168 = vector.extract_strided_slice %109 {offsets = [0, 128], sizes = [8, 128], strides = [1, 1]} : vector<8x256xf32> to vector<8x128xf32>
    %cst_48 = arith.constant 1.000000e+00 : f32
    %169 = vector.broadcast %cst_48 : f32 to vector<8x128xf32>
    %170 = arith.subf %169, %162 : vector<8x128xf32>
    %171 = arith.mulf %170, %167 : vector<8x128xf32>
    %172 = arith.mulf %162, %168 : vector<8x128xf32>
    %173 = arith.addf %171, %172 : vector<8x128xf32>
    %174 = vector.broadcast %c1_i32 : i32 to vector<8x1xi32>
    %175 = arith.cmpi sgt, %13, %174 : vector<8x1xi32>
    %176 = vector.broadcast %110 : i32 to vector<8x1xi32>
    %177 = arith.cmpi sgt, %13, %176 : vector<8x1xi32>
    %cst_49 = arith.constant 0.000000e+00 : f32
    %178 = vector.shape_cast %175 : vector<8x1xi1> to vector<8x1xi1>
    %179 = vector.broadcast %178 : vector<8x1xi1> to vector<8x128xi1>
    %180 = vector.broadcast %cst_49 : f32 to vector<8x128xf32>
    %181 = arith.select %179, %146, %180 : vector<8x128xi1>, vector<8x128xf32>
    %182 = arith.index_cast %c1_i32 : i32 to index
    %c0_50 = arith.constant 0 : index
    %c0_51 = arith.constant 0 : index
    %183 = vector.load %arg10[%182, %c0_50, %c0_51] : memref<8x8x128xf32, #tpu.memory_space<vmem>>, vector<1x8x128xf32>
    %184 = vector.shape_cast %183 : vector<1x8x128xf32> to vector<8x128xf32>
    %185 = vector.shape_cast %181 : vector<8x128xf32> to vector<1x8x128xf32>
    tpu.vector_store %arg10[%182, %c0_50, %c0_51], %185 {strides = array<i32>} : memref<8x8x128xf32, #tpu.memory_space<vmem>>, vector<1x8x128xf32>,
    %cst_52 = arith.constant 0.000000e+00 : f32
    %186 = vector.shape_cast %177 : vector<8x1xi1> to vector<8x1xi1>
    %187 = vector.broadcast %186 : vector<8x1xi1> to vector<8x128xi1>
    %188 = vector.broadcast %cst_52 : f32 to vector<8x128xf32>
    %189 = arith.select %187, %173, %188 : vector<8x128xi1>, vector<8x128xf32>
    %190 = arith.index_cast %110 : i32 to index
    %c0_53 = arith.constant 0 : index
    %c0_54 = arith.constant 0 : index
    %191 = vector.load %arg7[%190, %c0_53, %c0_54] : memref<8x8x128xf32, #tpu.memory_space<vmem>>, vector<1x8x128xf32>
    %192 = vector.shape_cast %191 : vector<1x8x128xf32> to vector<8x128xf32>
    %193 = vector.shape_cast %189 : vector<8x128xf32> to vector<1x8x128xf32>
    tpu.vector_store %arg7[%190, %c0_53, %c0_54], %193 {strides = array<i32>} : memref<8x8x128xf32, #tpu.memory_space<vmem>>, vector<1x8x128xf32>,
    %194 = vector.shape_cast %175 : vector<8x1xi1> to vector<8x1xi1>
    %195 = vector.broadcast %194 : vector<8x1xi1> to vector<8x128xi1>
    %196 = arith.select %195, %146, %141 : vector<8x128xi1>, vector<8x128xf32>
    %197 = vector.shape_cast %177 : vector<8x1xi1> to vector<8x1xi1>
    %198 = vector.broadcast %197 : vector<8x1xi1> to vector<8x128xi1>
    %199 = arith.select %198, %173, %168 : vector<8x128xi1>, vector<8x128xf32>
    %200 = tpu.concatenate %196, %199 in 1 : vector<8x128xf32>, vector<8x128xf32> -> vector<8x256xf32>
    %c2_i32 = arith.constant 2 : i32
    %c7_i32_55 = arith.constant 7 : i32
    %201 = arith.subi %c7_i32_55, %c2_i32 : i32
    %202 = arith.truncf %200 : vector<8x256xf32> to vector<8x256xbf16>
    %cst_56 = arith.constant dense<0.000000e+00> : vector<8x768xf32>
    %203 = tpu.matmul %202, %9, %cst_56 {dimension_numbers = #tpu.dot_dimension_numbers<[1], [0], [0], [1], [0, 0, 1, 1], [], []>} : vector<8x256xbf16>, vector<256x768xbf16>, vector<8x768xf32> -> vector<8x768xf32>
    %204 = arith.addf %203, %12 : vector<8x768xf32>
    %205 = arith.index_cast %c2_i32 : i32 to index
    %c0_57 = arith.constant 0 : index
    %c0_58 = arith.constant 0 : index
    %206 = vector.load %arg9[%205, %c0_57, %c0_58] : memref<8x8x768xf32, #tpu.memory_space<vmem>>, vector<1x8x768xf32>
    %207 = vector.shape_cast %206 : vector<1x8x768xf32> to vector<8x768xf32>
    %208 = arith.index_cast %201 : i32 to index
    %c0_59 = arith.constant 0 : index
    %c0_60 = arith.constant 0 : index
    %209 = vector.load %arg9[%208, %c0_59, %c0_60] : memref<8x8x768xf32, #tpu.memory_space<vmem>>, vector<1x8x768xf32>
    %210 = vector.shape_cast %209 : vector<1x8x768xf32> to vector<8x768xf32>
    %211 = vector.extract_strided_slice %207 {offsets = [0, 0], sizes = [8, 128], strides = [1, 1]} : vector<8x768xf32> to vector<8x128xf32>
    %212 = vector.extract_strided_slice %204 {offsets = [0, 0], sizes = [8, 128], strides = [1, 1]} : vector<8x768xf32> to vector<8x128xf32>
    %213 = arith.addf %211, %212 : vector<8x128xf32>
    %214 = arith.negf %213 : vector<8x128xf32>
    %215 = math.exp %214 : vector<8x128xf32>
    %cst_61 = arith.constant 1.000000e+00 : f32
    %216 = vector.broadcast %cst_61 : f32 to vector<8x128xf32>
    %217 = arith.addf %216, %215 : vector<8x128xf32>
    %218 = arith.divf %216, %217 : vector<8x128xf32>
    %219 = vector.extract_strided_slice %207 {offsets = [0, 128], sizes = [8, 128], strides = [1, 1]} : vector<8x768xf32> to vector<8x128xf32>
    %220 = vector.extract_strided_slice %204 {offsets = [0, 128], sizes = [8, 128], strides = [1, 1]} : vector<8x768xf32> to vector<8x128xf32>
    %221 = arith.addf %219, %220 : vector<8x128xf32>
    %222 = arith.negf %221 : vector<8x128xf32>
    %223 = math.exp %222 : vector<8x128xf32>
    %cst_62 = arith.constant 1.000000e+00 : f32
    %224 = vector.broadcast %cst_62 : f32 to vector<8x128xf32>
    %225 = arith.addf %224, %223 : vector<8x128xf32>
    %226 = arith.divf %224, %225 : vector<8x128xf32>
    %227 = vector.extract_strided_slice %207 {offsets = [0, 256], sizes = [8, 128], strides = [1, 1]} : vector<8x768xf32> to vector<8x128xf32>
    %228 = vector.extract_strided_slice %204 {offsets = [0, 256], sizes = [8, 128], strides = [1, 1]} : vector<8x768xf32> to vector<8x128xf32>
    %229 = arith.mulf %218, %228 : vector<8x128xf32>
    %230 = arith.addf %227, %229 : vector<8x128xf32>
    %231 = math.tanh %230 : vector<8x128xf32>
    %232 = vector.extract_strided_slice %200 {offsets = [0, 0], sizes = [8, 128], strides = [1, 1]} : vector<8x256xf32> to vector<8x128xf32>
    %cst_63 = arith.constant 1.000000e+00 : f32
    %233 = vector.broadcast %cst_63 : f32 to vector<8x128xf32>
    %234 = arith.subf %233, %226 : vector<8x128xf32>
    %235 = arith.mulf %234, %231 : vector<8x128xf32>
    %236 = arith.mulf %226, %232 : vector<8x128xf32>
    %237 = arith.addf %235, %236 : vector<8x128xf32>
    %238 = vector.extract_strided_slice %210 {offsets = [0, 384], sizes = [8, 128], strides = [1, 1]} : vector<8x768xf32> to vector<8x128xf32>
    %239 = vector.extract_strided_slice %204 {offsets = [0, 384], sizes = [8, 128], strides = [1, 1]} : vector<8x768xf32> to vector<8x128xf32>
    %240 = arith.addf %238, %239 : vector<8x128xf32>
    %241 = arith.negf %240 : vector<8x128xf32>
    %242 = math.exp %241 : vector<8x128xf32>
    %cst_64 = arith.constant 1.000000e+00 : f32
    %243 = vector.broadcast %cst_64 : f32 to vector<8x128xf32>
    %244 = arith.addf %243, %242 : vector<8x128xf32>
    %245 = arith.divf %243, %244 : vector<8x128xf32>
    %246 = vector.extract_strided_slice %210 {offsets = [0, 512], sizes = [8, 128], strides = [1, 1]} : vector<8x768xf32> to vector<8x128xf32>
    %247 = vector.extract_strided_slice %204 {offsets = [0, 512], sizes = [8, 128], strides = [1, 1]} : vector<8x768xf32> to vector<8x128xf32>
    %248 = arith.addf %246, %247 : vector<8x128xf32>
    %249 = arith.negf %248 : vector<8x128xf32>
    %250 = math.exp %249 : vector<8x128xf32>
    %cst_65 = arith.constant 1.000000e+00 : f32
    %251 = vector.broadcast %cst_65 : f32 to vector<8x128xf32>
    %252 = arith.addf %251, %250 : vector<8x128xf32>
    %253 = arith.divf %251, %252 : vector<8x128xf32>
    %254 = vector.extract_strided_slice %210 {offsets = [0, 640], sizes = [8, 128], strides = [1, 1]} : vector<8x768xf32> to vector<8x128xf32>
    %255 = vector.extract_strided_slice %204 {offsets = [0, 640], sizes = [8, 128], strides = [1, 1]} : vector<8x768xf32> to vector<8x128xf32>
    %256 = arith.mulf %245, %255 : vector<8x128xf32>
    %257 = arith.addf %254, %256 : vector<8x128xf32>
    %258 = math.tanh %257 : vector<8x128xf32>
    %259 = vector.extract_strided_slice %200 {offsets = [0, 128], sizes = [8, 128], strides = [1, 1]} : vector<8x256xf32> to vector<8x128xf32>
    %cst_66 = arith.constant 1.000000e+00 : f32
    %260 = vector.broadcast %cst_66 : f32 to vector<8x128xf32>
    %261 = arith.subf %260, %253 : vector<8x128xf32>
    %262 = arith.mulf %261, %258 : vector<8x128xf32>
    %263 = arith.mulf %253, %259 : vector<8x128xf32>
    %264 = arith.addf %262, %263 : vector<8x128xf32>
    %265 = vector.broadcast %c2_i32 : i32 to vector<8x1xi32>
    %266 = arith.cmpi sgt, %13, %265 : vector<8x1xi32>
    %267 = vector.broadcast %201 : i32 to vector<8x1xi32>
    %268 = arith.cmpi sgt, %13, %267 : vector<8x1xi32>
    %cst_67 = arith.constant 0.000000e+00 : f32
    %269 = vector.shape_cast %266 : vector<8x1xi1> to vector<8x1xi1>
    %270 = vector.broadcast %269 : vector<8x1xi1> to vector<8x128xi1>
    %271 = vector.broadcast %cst_67 : f32 to vector<8x128xf32>
    %272 = arith.select %270, %237, %271 : vector<8x128xi1>, vector<8x128xf32>
    %273 = arith.index_cast %c2_i32 : i32 to index
    %c0_68 = arith.constant 0 : index
    %c0_69 = arith.constant 0 : index
    %274 = vector.load %arg10[%273, %c0_68, %c0_69] : memref<8x8x128xf32, #tpu.memory_space<vmem>>, vector<1x8x128xf32>
    %275 = vector.shape_cast %274 : vector<1x8x128xf32> to vector<8x128xf32>
    %276 = vector.shape_cast %272 : vector<8x128xf32> to vector<1x8x128xf32>
    tpu.vector_store %arg10[%273, %c0_68, %c0_69], %276 {strides = array<i32>} : memref<8x8x128xf32, #tpu.memory_space<vmem>>, vector<1x8x128xf32>,
    %cst_70 = arith.constant 0.000000e+00 : f32
    %277 = vector.shape_cast %268 : vector<8x1xi1> to vector<8x1xi1>
    %278 = vector.broadcast %277 : vector<8x1xi1> to vector<8x128xi1>
    %279 = vector.broadcast %cst_70 : f32 to vector<8x128xf32>
    %280 = arith.select %278, %264, %279 : vector<8x128xi1>, vector<8x128xf32>
    %281 = arith.index_cast %201 : i32 to index
    %c0_71 = arith.constant 0 : index
    %c0_72 = arith.constant 0 : index
    %282 = vector.load %arg7[%281, %c0_71, %c0_72] : memref<8x8x128xf32, #tpu.memory_space<vmem>>, vector<1x8x128xf32>
    %283 = vector.shape_cast %282 : vector<1x8x128xf32> to vector<8x128xf32>
    %284 = vector.shape_cast %280 : vector<8x128xf32> to vector<1x8x128xf32>
    tpu.vector_store %arg7[%281, %c0_71, %c0_72], %284 {strides = array<i32>} : memref<8x8x128xf32, #tpu.memory_space<vmem>>, vector<1x8x128xf32>,
    %285 = vector.shape_cast %266 : vector<8x1xi1> to vector<8x1xi1>
    %286 = vector.broadcast %285 : vector<8x1xi1> to vector<8x128xi1>
    %287 = arith.select %286, %237, %232 : vector<8x128xi1>, vector<8x128xf32>
    %288 = vector.shape_cast %268 : vector<8x1xi1> to vector<8x1xi1>
    %289 = vector.broadcast %288 : vector<8x1xi1> to vector<8x128xi1>
    %290 = arith.select %289, %264, %259 : vector<8x128xi1>, vector<8x128xf32>
    %291 = tpu.concatenate %287, %290 in 1 : vector<8x128xf32>, vector<8x128xf32> -> vector<8x256xf32>
    %c3_i32 = arith.constant 3 : i32
    %c7_i32_73 = arith.constant 7 : i32
    %292 = arith.subi %c7_i32_73, %c3_i32 : i32
    %293 = arith.truncf %291 : vector<8x256xf32> to vector<8x256xbf16>
    %cst_74 = arith.constant dense<0.000000e+00> : vector<8x768xf32>
    %294 = tpu.matmul %293, %9, %cst_74 {dimension_numbers = #tpu.dot_dimension_numbers<[1], [0], [0], [1], [0, 0, 1, 1], [], []>} : vector<8x256xbf16>, vector<256x768xbf16>, vector<8x768xf32> -> vector<8x768xf32>
    %295 = arith.addf %294, %12 : vector<8x768xf32>
    %296 = arith.index_cast %c3_i32 : i32 to index
    %c0_75 = arith.constant 0 : index
    %c0_76 = arith.constant 0 : index
    %297 = vector.load %arg9[%296, %c0_75, %c0_76] : memref<8x8x768xf32, #tpu.memory_space<vmem>>, vector<1x8x768xf32>
    %298 = vector.shape_cast %297 : vector<1x8x768xf32> to vector<8x768xf32>
    %299 = arith.index_cast %292 : i32 to index
    %c0_77 = arith.constant 0 : index
    %c0_78 = arith.constant 0 : index
    %300 = vector.load %arg9[%299, %c0_77, %c0_78] : memref<8x8x768xf32, #tpu.memory_space<vmem>>, vector<1x8x768xf32>
    %301 = vector.shape_cast %300 : vector<1x8x768xf32> to vector<8x768xf32>
    %302 = vector.extract_strided_slice %298 {offsets = [0, 0], sizes = [8, 128], strides = [1, 1]} : vector<8x768xf32> to vector<8x128xf32>
    %303 = vector.extract_strided_slice %295 {offsets = [0, 0], sizes = [8, 128], strides = [1, 1]} : vector<8x768xf32> to vector<8x128xf32>
    %304 = arith.addf %302, %303 : vector<8x128xf32>
    %305 = arith.negf %304 : vector<8x128xf32>
    %306 = math.exp %305 : vector<8x128xf32>
    %cst_79 = arith.constant 1.000000e+00 : f32
    %307 = vector.broadcast %cst_79 : f32 to vector<8x128xf32>
    %308 = arith.addf %307, %306 : vector<8x128xf32>
    %309 = arith.divf %307, %308 : vector<8x128xf32>
    %310 = vector.extract_strided_slice %298 {offsets = [0, 128], sizes = [8, 128], strides = [1, 1]} : vector<8x768xf32> to vector<8x128xf32>
    %311 = vector.extract_strided_slice %295 {offsets = [0, 128], sizes = [8, 128], strides = [1, 1]} : vector<8x768xf32> to vector<8x128xf32>
    %312 = arith.addf %310, %311 : vector<8x128xf32>
    %313 = arith.negf %312 : vector<8x128xf32>
    %314 = math.exp %313 : vector<8x128xf32>
    %cst_80 = arith.constant 1.000000e+00 : f32
    %315 = vector.broadcast %cst_80 : f32 to vector<8x128xf32>
    %316 = arith.addf %315, %314 : vector<8x128xf32>
    %317 = arith.divf %315, %316 : vector<8x128xf32>
    %318 = vector.extract_strided_slice %298 {offsets = [0, 256], sizes = [8, 128], strides = [1, 1]} : vector<8x768xf32> to vector<8x128xf32>
    %319 = vector.extract_strided_slice %295 {offsets = [0, 256], sizes = [8, 128], strides = [1, 1]} : vector<8x768xf32> to vector<8x128xf32>
    %320 = arith.mulf %309, %319 : vector<8x128xf32>
    %321 = arith.addf %318, %320 : vector<8x128xf32>
    %322 = math.tanh %321 : vector<8x128xf32>
    %323 = vector.extract_strided_slice %291 {offsets = [0, 0], sizes = [8, 128], strides = [1, 1]} : vector<8x256xf32> to vector<8x128xf32>
    %cst_81 = arith.constant 1.000000e+00 : f32
    %324 = vector.broadcast %cst_81 : f32 to vector<8x128xf32>
    %325 = arith.subf %324, %317 : vector<8x128xf32>
    %326 = arith.mulf %325, %322 : vector<8x128xf32>
    %327 = arith.mulf %317, %323 : vector<8x128xf32>
    %328 = arith.addf %326, %327 : vector<8x128xf32>
    %329 = vector.extract_strided_slice %301 {offsets = [0, 384], sizes = [8, 128], strides = [1, 1]} : vector<8x768xf32> to vector<8x128xf32>
    %330 = vector.extract_strided_slice %295 {offsets = [0, 384], sizes = [8, 128], strides = [1, 1]} : vector<8x768xf32> to vector<8x128xf32>
    %331 = arith.addf %329, %330 : vector<8x128xf32>
    %332 = arith.negf %331 : vector<8x128xf32>
    %333 = math.exp %332 : vector<8x128xf32>
    %cst_82 = arith.constant 1.000000e+00 : f32
    %334 = vector.broadcast %cst_82 : f32 to vector<8x128xf32>
    %335 = arith.addf %334, %333 : vector<8x128xf32>
    %336 = arith.divf %334, %335 : vector<8x128xf32>
    %337 = vector.extract_strided_slice %301 {offsets = [0, 512], sizes = [8, 128], strides = [1, 1]} : vector<8x768xf32> to vector<8x128xf32>
    %338 = vector.extract_strided_slice %295 {offsets = [0, 512], sizes = [8, 128], strides = [1, 1]} : vector<8x768xf32> to vector<8x128xf32>
    %339 = arith.addf %337, %338 : vector<8x128xf32>
    %340 = arith.negf %339 : vector<8x128xf32>
    %341 = math.exp %340 : vector<8x128xf32>
    %cst_83 = arith.constant 1.000000e+00 : f32
    %342 = vector.broadcast %cst_83 : f32 to vector<8x128xf32>
    %343 = arith.addf %342, %341 : vector<8x128xf32>
    %344 = arith.divf %342, %343 : vector<8x128xf32>
    %345 = vector.extract_strided_slice %301 {offsets = [0, 640], sizes = [8, 128], strides = [1, 1]} : vector<8x768xf32> to vector<8x128xf32>
    %346 = vector.extract_strided_slice %295 {offsets = [0, 640], sizes = [8, 128], strides = [1, 1]} : vector<8x768xf32> to vector<8x128xf32>
    %347 = arith.mulf %336, %346 : vector<8x128xf32>
    %348 = arith.addf %345, %347 : vector<8x128xf32>
    %349 = math.tanh %348 : vector<8x128xf32>
    %350 = vector.extract_strided_slice %291 {offsets = [0, 128], sizes = [8, 128], strides = [1, 1]} : vector<8x256xf32> to vector<8x128xf32>
    %cst_84 = arith.constant 1.000000e+00 : f32
    %351 = vector.broadcast %cst_84 : f32 to vector<8x128xf32>
    %352 = arith.subf %351, %344 : vector<8x128xf32>
    %353 = arith.mulf %352, %349 : vector<8x128xf32>
    %354 = arith.mulf %344, %350 : vector<8x128xf32>
    %355 = arith.addf %353, %354 : vector<8x128xf32>
    %356 = vector.broadcast %c3_i32 : i32 to vector<8x1xi32>
    %357 = arith.cmpi sgt, %13, %356 : vector<8x1xi32>
    %358 = vector.broadcast %292 : i32 to vector<8x1xi32>
    %359 = arith.cmpi sgt, %13, %358 : vector<8x1xi32>
    %cst_85 = arith.constant 0.000000e+00 : f32
    %360 = vector.shape_cast %357 : vector<8x1xi1> to vector<8x1xi1>
    %361 = vector.broadcast %360 : vector<8x1xi1> to vector<8x128xi1>
    %362 = vector.broadcast %cst_85 : f32 to vector<8x128xf32>
    %363 = arith.select %361, %328, %362 : vector<8x128xi1>, vector<8x128xf32>
    %364 = arith.index_cast %c3_i32 : i32 to index
    %c0_86 = arith.constant 0 : index
    %c0_87 = arith.constant 0 : index
    %365 = vector.load %arg10[%364, %c0_86, %c0_87] : memref<8x8x128xf32, #tpu.memory_space<vmem>>, vector<1x8x128xf32>
    %366 = vector.shape_cast %365 : vector<1x8x128xf32> to vector<8x128xf32>
    %367 = vector.shape_cast %363 : vector<8x128xf32> to vector<1x8x128xf32>
    tpu.vector_store %arg10[%364, %c0_86, %c0_87], %367 {strides = array<i32>} : memref<8x8x128xf32, #tpu.memory_space<vmem>>, vector<1x8x128xf32>,
    %cst_88 = arith.constant 0.000000e+00 : f32
    %368 = vector.shape_cast %359 : vector<8x1xi1> to vector<8x1xi1>
    %369 = vector.broadcast %368 : vector<8x1xi1> to vector<8x128xi1>
    %370 = vector.broadcast %cst_88 : f32 to vector<8x128xf32>
    %371 = arith.select %369, %355, %370 : vector<8x128xi1>, vector<8x128xf32>
    %372 = arith.index_cast %292 : i32 to index
    %c0_89 = arith.constant 0 : index
    %c0_90 = arith.constant 0 : index
    %373 = vector.load %arg7[%372, %c0_89, %c0_90] : memref<8x8x128xf32, #tpu.memory_space<vmem>>, vector<1x8x128xf32>
    %374 = vector.shape_cast %373 : vector<1x8x128xf32> to vector<8x128xf32>
    %375 = vector.shape_cast %371 : vector<8x128xf32> to vector<1x8x128xf32>
    tpu.vector_store %arg7[%372, %c0_89, %c0_90], %375 {strides = array<i32>} : memref<8x8x128xf32, #tpu.memory_space<vmem>>, vector<1x8x128xf32>,
    %376 = vector.shape_cast %357 : vector<8x1xi1> to vector<8x1xi1>
    %377 = vector.broadcast %376 : vector<8x1xi1> to vector<8x128xi1>
    %378 = arith.select %377, %328, %323 : vector<8x128xi1>, vector<8x128xf32>
    %379 = vector.shape_cast %359 : vector<8x1xi1> to vector<8x1xi1>
    %380 = vector.broadcast %379 : vector<8x1xi1> to vector<8x128xi1>
    %381 = arith.select %380, %355, %350 : vector<8x128xi1>, vector<8x128xf32>
    %382 = tpu.concatenate %378, %381 in 1 : vector<8x128xf32>, vector<8x128xf32> -> vector<8x256xf32>
    %c4_i32 = arith.constant 4 : i32
    %c7_i32_91 = arith.constant 7 : i32
    %383 = arith.subi %c7_i32_91, %c4_i32 : i32
    %384 = arith.truncf %382 : vector<8x256xf32> to vector<8x256xbf16>
    %cst_92 = arith.constant dense<0.000000e+00> : vector<8x768xf32>
    %385 = tpu.matmul %384, %9, %cst_92 {dimension_numbers = #tpu.dot_dimension_numbers<[1], [0], [0], [1], [0, 0, 1, 1], [], []>} : vector<8x256xbf16>, vector<256x768xbf16>, vector<8x768xf32> -> vector<8x768xf32>
    %386 = arith.addf %385, %12 : vector<8x768xf32>
    %387 = arith.index_cast %c4_i32 : i32 to index
    %c0_93 = arith.constant 0 : index
    %c0_94 = arith.constant 0 : index
    %388 = vector.load %arg9[%387, %c0_93, %c0_94] : memref<8x8x768xf32, #tpu.memory_space<vmem>>, vector<1x8x768xf32>
    %389 = vector.shape_cast %388 : vector<1x8x768xf32> to vector<8x768xf32>
    %390 = arith.index_cast %383 : i32 to index
    %c0_95 = arith.constant 0 : index
    %c0_96 = arith.constant 0 : index
    %391 = vector.load %arg9[%390, %c0_95, %c0_96] : memref<8x8x768xf32, #tpu.memory_space<vmem>>, vector<1x8x768xf32>
    %392 = vector.shape_cast %391 : vector<1x8x768xf32> to vector<8x768xf32>
    %393 = vector.extract_strided_slice %389 {offsets = [0, 0], sizes = [8, 128], strides = [1, 1]} : vector<8x768xf32> to vector<8x128xf32>
    %394 = vector.extract_strided_slice %386 {offsets = [0, 0], sizes = [8, 128], strides = [1, 1]} : vector<8x768xf32> to vector<8x128xf32>
    %395 = arith.addf %393, %394 : vector<8x128xf32>
    %396 = arith.negf %395 : vector<8x128xf32>
    %397 = math.exp %396 : vector<8x128xf32>
    %cst_97 = arith.constant 1.000000e+00 : f32
    %398 = vector.broadcast %cst_97 : f32 to vector<8x128xf32>
    %399 = arith.addf %398, %397 : vector<8x128xf32>
    %400 = arith.divf %398, %399 : vector<8x128xf32>
    %401 = vector.extract_strided_slice %389 {offsets = [0, 128], sizes = [8, 128], strides = [1, 1]} : vector<8x768xf32> to vector<8x128xf32>
    %402 = vector.extract_strided_slice %386 {offsets = [0, 128], sizes = [8, 128], strides = [1, 1]} : vector<8x768xf32> to vector<8x128xf32>
    %403 = arith.addf %401, %402 : vector<8x128xf32>
    %404 = arith.negf %403 : vector<8x128xf32>
    %405 = math.exp %404 : vector<8x128xf32>
    %cst_98 = arith.constant 1.000000e+00 : f32
    %406 = vector.broadcast %cst_98 : f32 to vector<8x128xf32>
    %407 = arith.addf %406, %405 : vector<8x128xf32>
    %408 = arith.divf %406, %407 : vector<8x128xf32>
    %409 = vector.extract_strided_slice %389 {offsets = [0, 256], sizes = [8, 128], strides = [1, 1]} : vector<8x768xf32> to vector<8x128xf32>
    %410 = vector.extract_strided_slice %386 {offsets = [0, 256], sizes = [8, 128], strides = [1, 1]} : vector<8x768xf32> to vector<8x128xf32>
    %411 = arith.mulf %400, %410 : vector<8x128xf32>
    %412 = arith.addf %409, %411 : vector<8x128xf32>
    %413 = math.tanh %412 : vector<8x128xf32>
    %414 = vector.extract_strided_slice %382 {offsets = [0, 0], sizes = [8, 128], strides = [1, 1]} : vector<8x256xf32> to vector<8x128xf32>
    %cst_99 = arith.constant 1.000000e+00 : f32
    %415 = vector.broadcast %cst_99 : f32 to vector<8x128xf32>
    %416 = arith.subf %415, %408 : vector<8x128xf32>
    %417 = arith.mulf %416, %413 : vector<8x128xf32>
    %418 = arith.mulf %408, %414 : vector<8x128xf32>
    %419 = arith.addf %417, %418 : vector<8x128xf32>
    %420 = vector.extract_strided_slice %392 {offsets = [0, 384], sizes = [8, 128], strides = [1, 1]} : vector<8x768xf32> to vector<8x128xf32>
    %421 = vector.extract_strided_slice %386 {offsets = [0, 384], sizes = [8, 128], strides = [1, 1]} : vector<8x768xf32> to vector<8x128xf32>
    %422 = arith.addf %420, %421 : vector<8x128xf32>
    %423 = arith.negf %422 : vector<8x128xf32>
    %424 = math.exp %423 : vector<8x128xf32>
    %cst_100 = arith.constant 1.000000e+00 : f32
    %425 = vector.broadcast %cst_100 : f32 to vector<8x128xf32>
    %426 = arith.addf %425, %424 : vector<8x128xf32>
    %427 = arith.divf %425, %426 : vector<8x128xf32>
    %428 = vector.extract_strided_slice %392 {offsets = [0, 512], sizes = [8, 128], strides = [1, 1]} : vector<8x768xf32> to vector<8x128xf32>
    %429 = vector.extract_strided_slice %386 {offsets = [0, 512], sizes = [8, 128], strides = [1, 1]} : vector<8x768xf32> to vector<8x128xf32>
    %430 = arith.addf %428, %429 : vector<8x128xf32>
    %431 = arith.negf %430 : vector<8x128xf32>
    %432 = math.exp %431 : vector<8x128xf32>
    %cst_101 = arith.constant 1.000000e+00 : f32
    %433 = vector.broadcast %cst_101 : f32 to vector<8x128xf32>
    %434 = arith.addf %433, %432 : vector<8x128xf32>
    %435 = arith.divf %433, %434 : vector<8x128xf32>
    %436 = vector.extract_strided_slice %392 {offsets = [0, 640], sizes = [8, 128], strides = [1, 1]} : vector<8x768xf32> to vector<8x128xf32>
    %437 = vector.extract_strided_slice %386 {offsets = [0, 640], sizes = [8, 128], strides = [1, 1]} : vector<8x768xf32> to vector<8x128xf32>
    %438 = arith.mulf %427, %437 : vector<8x128xf32>
    %439 = arith.addf %436, %438 : vector<8x128xf32>
    %440 = math.tanh %439 : vector<8x128xf32>
    %441 = vector.extract_strided_slice %382 {offsets = [0, 128], sizes = [8, 128], strides = [1, 1]} : vector<8x256xf32> to vector<8x128xf32>
    %cst_102 = arith.constant 1.000000e+00 : f32
    %442 = vector.broadcast %cst_102 : f32 to vector<8x128xf32>
    %443 = arith.subf %442, %435 : vector<8x128xf32>
    %444 = arith.mulf %443, %440 : vector<8x128xf32>
    %445 = arith.mulf %435, %441 : vector<8x128xf32>
    %446 = arith.addf %444, %445 : vector<8x128xf32>
    %447 = vector.broadcast %c4_i32 : i32 to vector<8x1xi32>
    %448 = arith.cmpi sgt, %13, %447 : vector<8x1xi32>
    %449 = vector.broadcast %383 : i32 to vector<8x1xi32>
    %450 = arith.cmpi sgt, %13, %449 : vector<8x1xi32>
    %cst_103 = arith.constant 0.000000e+00 : f32
    %451 = vector.shape_cast %448 : vector<8x1xi1> to vector<8x1xi1>
    %452 = vector.broadcast %451 : vector<8x1xi1> to vector<8x128xi1>
    %453 = vector.broadcast %cst_103 : f32 to vector<8x128xf32>
    %454 = arith.select %452, %419, %453 : vector<8x128xi1>, vector<8x128xf32>
    %455 = arith.index_cast %c4_i32 : i32 to index
    %c0_104 = arith.constant 0 : index
    %c0_105 = arith.constant 0 : index
    %456 = vector.load %arg10[%455, %c0_104, %c0_105] : memref<8x8x128xf32, #tpu.memory_space<vmem>>, vector<1x8x128xf32>
    %457 = vector.shape_cast %456 : vector<1x8x128xf32> to vector<8x128xf32>
    %458 = vector.shape_cast %454 : vector<8x128xf32> to vector<1x8x128xf32>
    tpu.vector_store %arg10[%455, %c0_104, %c0_105], %458 {strides = array<i32>} : memref<8x8x128xf32, #tpu.memory_space<vmem>>, vector<1x8x128xf32>,
    %cst_106 = arith.constant 0.000000e+00 : f32
    %459 = vector.shape_cast %450 : vector<8x1xi1> to vector<8x1xi1>
    %460 = vector.broadcast %459 : vector<8x1xi1> to vector<8x128xi1>
    %461 = vector.broadcast %cst_106 : f32 to vector<8x128xf32>
    %462 = arith.select %460, %446, %461 : vector<8x128xi1>, vector<8x128xf32>
    %463 = arith.index_cast %383 : i32 to index
    %c0_107 = arith.constant 0 : index
    %c0_108 = arith.constant 0 : index
    %464 = vector.load %arg7[%463, %c0_107, %c0_108] : memref<8x8x128xf32, #tpu.memory_space<vmem>>, vector<1x8x128xf32>
    %465 = vector.shape_cast %464 : vector<1x8x128xf32> to vector<8x128xf32>
    %466 = vector.shape_cast %462 : vector<8x128xf32> to vector<1x8x128xf32>
    tpu.vector_store %arg7[%463, %c0_107, %c0_108], %466 {strides = array<i32>} : memref<8x8x128xf32, #tpu.memory_space<vmem>>, vector<1x8x128xf32>,
    %467 = vector.shape_cast %448 : vector<8x1xi1> to vector<8x1xi1>
    %468 = vector.broadcast %467 : vector<8x1xi1> to vector<8x128xi1>
    %469 = arith.select %468, %419, %414 : vector<8x128xi1>, vector<8x128xf32>
    %470 = vector.shape_cast %450 : vector<8x1xi1> to vector<8x1xi1>
    %471 = vector.broadcast %470 : vector<8x1xi1> to vector<8x128xi1>
    %472 = arith.select %471, %446, %441 : vector<8x128xi1>, vector<8x128xf32>
    %473 = tpu.concatenate %469, %472 in 1 : vector<8x128xf32>, vector<8x128xf32> -> vector<8x256xf32>
    %c5_i32 = arith.constant 5 : i32
    %c7_i32_109 = arith.constant 7 : i32
    %474 = arith.subi %c7_i32_109, %c5_i32 : i32
    %475 = arith.truncf %473 : vector<8x256xf32> to vector<8x256xbf16>
    %cst_110 = arith.constant dense<0.000000e+00> : vector<8x768xf32>
    %476 = tpu.matmul %475, %9, %cst_110 {dimension_numbers = #tpu.dot_dimension_numbers<[1], [0], [0], [1], [0, 0, 1, 1], [], []>} : vector<8x256xbf16>, vector<256x768xbf16>, vector<8x768xf32> -> vector<8x768xf32>
    %477 = arith.addf %476, %12 : vector<8x768xf32>
    %478 = arith.index_cast %c5_i32 : i32 to index
    %c0_111 = arith.constant 0 : index
    %c0_112 = arith.constant 0 : index
    %479 = vector.load %arg9[%478, %c0_111, %c0_112] : memref<8x8x768xf32, #tpu.memory_space<vmem>>, vector<1x8x768xf32>
    %480 = vector.shape_cast %479 : vector<1x8x768xf32> to vector<8x768xf32>
    %481 = arith.index_cast %474 : i32 to index
    %c0_113 = arith.constant 0 : index
    %c0_114 = arith.constant 0 : index
    %482 = vector.load %arg9[%481, %c0_113, %c0_114] : memref<8x8x768xf32, #tpu.memory_space<vmem>>, vector<1x8x768xf32>
    %483 = vector.shape_cast %482 : vector<1x8x768xf32> to vector<8x768xf32>
    %484 = vector.extract_strided_slice %480 {offsets = [0, 0], sizes = [8, 128], strides = [1, 1]} : vector<8x768xf32> to vector<8x128xf32>
    %485 = vector.extract_strided_slice %477 {offsets = [0, 0], sizes = [8, 128], strides = [1, 1]} : vector<8x768xf32> to vector<8x128xf32>
    %486 = arith.addf %484, %485 : vector<8x128xf32>
    %487 = arith.negf %486 : vector<8x128xf32>
    %488 = math.exp %487 : vector<8x128xf32>
    %cst_115 = arith.constant 1.000000e+00 : f32
    %489 = vector.broadcast %cst_115 : f32 to vector<8x128xf32>
    %490 = arith.addf %489, %488 : vector<8x128xf32>
    %491 = arith.divf %489, %490 : vector<8x128xf32>
    %492 = vector.extract_strided_slice %480 {offsets = [0, 128], sizes = [8, 128], strides = [1, 1]} : vector<8x768xf32> to vector<8x128xf32>
    %493 = vector.extract_strided_slice %477 {offsets = [0, 128], sizes = [8, 128], strides = [1, 1]} : vector<8x768xf32> to vector<8x128xf32>
    %494 = arith.addf %492, %493 : vector<8x128xf32>
    %495 = arith.negf %494 : vector<8x128xf32>
    %496 = math.exp %495 : vector<8x128xf32>
    %cst_116 = arith.constant 1.000000e+00 : f32
    %497 = vector.broadcast %cst_116 : f32 to vector<8x128xf32>
    %498 = arith.addf %497, %496 : vector<8x128xf32>
    %499 = arith.divf %497, %498 : vector<8x128xf32>
    %500 = vector.extract_strided_slice %480 {offsets = [0, 256], sizes = [8, 128], strides = [1, 1]} : vector<8x768xf32> to vector<8x128xf32>
    %501 = vector.extract_strided_slice %477 {offsets = [0, 256], sizes = [8, 128], strides = [1, 1]} : vector<8x768xf32> to vector<8x128xf32>
    %502 = arith.mulf %491, %501 : vector<8x128xf32>
    %503 = arith.addf %500, %502 : vector<8x128xf32>
    %504 = math.tanh %503 : vector<8x128xf32>
    %505 = vector.extract_strided_slice %473 {offsets = [0, 0], sizes = [8, 128], strides = [1, 1]} : vector<8x256xf32> to vector<8x128xf32>
    %cst_117 = arith.constant 1.000000e+00 : f32
    %506 = vector.broadcast %cst_117 : f32 to vector<8x128xf32>
    %507 = arith.subf %506, %499 : vector<8x128xf32>
    %508 = arith.mulf %507, %504 : vector<8x128xf32>
    %509 = arith.mulf %499, %505 : vector<8x128xf32>
    %510 = arith.addf %508, %509 : vector<8x128xf32>
    %511 = vector.extract_strided_slice %483 {offsets = [0, 384], sizes = [8, 128], strides = [1, 1]} : vector<8x768xf32> to vector<8x128xf32>
    %512 = vector.extract_strided_slice %477 {offsets = [0, 384], sizes = [8, 128], strides = [1, 1]} : vector<8x768xf32> to vector<8x128xf32>
    %513 = arith.addf %511, %512 : vector<8x128xf32>
    %514 = arith.negf %513 : vector<8x128xf32>
    %515 = math.exp %514 : vector<8x128xf32>
    %cst_118 = arith.constant 1.000000e+00 : f32
    %516 = vector.broadcast %cst_118 : f32 to vector<8x128xf32>
    %517 = arith.addf %516, %515 : vector<8x128xf32>
    %518 = arith.divf %516, %517 : vector<8x128xf32>
    %519 = vector.extract_strided_slice %483 {offsets = [0, 512], sizes = [8, 128], strides = [1, 1]} : vector<8x768xf32> to vector<8x128xf32>
    %520 = vector.extract_strided_slice %477 {offsets = [0, 512], sizes = [8, 128], strides = [1, 1]} : vector<8x768xf32> to vector<8x128xf32>
    %521 = arith.addf %519, %520 : vector<8x128xf32>
    %522 = arith.negf %521 : vector<8x128xf32>
    %523 = math.exp %522 : vector<8x128xf32>
    %cst_119 = arith.constant 1.000000e+00 : f32
    %524 = vector.broadcast %cst_119 : f32 to vector<8x128xf32>
    %525 = arith.addf %524, %523 : vector<8x128xf32>
    %526 = arith.divf %524, %525 : vector<8x128xf32>
    %527 = vector.extract_strided_slice %483 {offsets = [0, 640], sizes = [8, 128], strides = [1, 1]} : vector<8x768xf32> to vector<8x128xf32>
    %528 = vector.extract_strided_slice %477 {offsets = [0, 640], sizes = [8, 128], strides = [1, 1]} : vector<8x768xf32> to vector<8x128xf32>
    %529 = arith.mulf %518, %528 : vector<8x128xf32>
    %530 = arith.addf %527, %529 : vector<8x128xf32>
    %531 = math.tanh %530 : vector<8x128xf32>
    %532 = vector.extract_strided_slice %473 {offsets = [0, 128], sizes = [8, 128], strides = [1, 1]} : vector<8x256xf32> to vector<8x128xf32>
    %cst_120 = arith.constant 1.000000e+00 : f32
    %533 = vector.broadcast %cst_120 : f32 to vector<8x128xf32>
    %534 = arith.subf %533, %526 : vector<8x128xf32>
    %535 = arith.mulf %534, %531 : vector<8x128xf32>
    %536 = arith.mulf %526, %532 : vector<8x128xf32>
    %537 = arith.addf %535, %536 : vector<8x128xf32>
    %538 = vector.broadcast %c5_i32 : i32 to vector<8x1xi32>
    %539 = arith.cmpi sgt, %13, %538 : vector<8x1xi32>
    %540 = vector.broadcast %474 : i32 to vector<8x1xi32>
    %541 = arith.cmpi sgt, %13, %540 : vector<8x1xi32>
    %cst_121 = arith.constant 0.000000e+00 : f32
    %542 = vector.shape_cast %539 : vector<8x1xi1> to vector<8x1xi1>
    %543 = vector.broadcast %542 : vector<8x1xi1> to vector<8x128xi1>
    %544 = vector.broadcast %cst_121 : f32 to vector<8x128xf32>
    %545 = arith.select %543, %510, %544 : vector<8x128xi1>, vector<8x128xf32>
    %546 = arith.index_cast %c5_i32 : i32 to index
    %c0_122 = arith.constant 0 : index
    %c0_123 = arith.constant 0 : index
    %547 = vector.load %arg10[%546, %c0_122, %c0_123] : memref<8x8x128xf32, #tpu.memory_space<vmem>>, vector<1x8x128xf32>
    %548 = vector.shape_cast %547 : vector<1x8x128xf32> to vector<8x128xf32>
    %549 = vector.shape_cast %545 : vector<8x128xf32> to vector<1x8x128xf32>
    tpu.vector_store %arg10[%546, %c0_122, %c0_123], %549 {strides = array<i32>} : memref<8x8x128xf32, #tpu.memory_space<vmem>>, vector<1x8x128xf32>,
    %cst_124 = arith.constant 0.000000e+00 : f32
    %550 = vector.shape_cast %541 : vector<8x1xi1> to vector<8x1xi1>
    %551 = vector.broadcast %550 : vector<8x1xi1> to vector<8x128xi1>
    %552 = vector.broadcast %cst_124 : f32 to vector<8x128xf32>
    %553 = arith.select %551, %537, %552 : vector<8x128xi1>, vector<8x128xf32>
    %554 = arith.index_cast %474 : i32 to index
    %c0_125 = arith.constant 0 : index
    %c0_126 = arith.constant 0 : index
    %555 = vector.load %arg7[%554, %c0_125, %c0_126] : memref<8x8x128xf32, #tpu.memory_space<vmem>>, vector<1x8x128xf32>
    %556 = vector.shape_cast %555 : vector<1x8x128xf32> to vector<8x128xf32>
    %557 = vector.shape_cast %553 : vector<8x128xf32> to vector<1x8x128xf32>
    tpu.vector_store %arg7[%554, %c0_125, %c0_126], %557 {strides = array<i32>} : memref<8x8x128xf32, #tpu.memory_space<vmem>>, vector<1x8x128xf32>,
    %558 = vector.shape_cast %539 : vector<8x1xi1> to vector<8x1xi1>
    %559 = vector.broadcast %558 : vector<8x1xi1> to vector<8x128xi1>
    %560 = arith.select %559, %510, %505 : vector<8x128xi1>, vector<8x128xf32>
    %561 = vector.shape_cast %541 : vector<8x1xi1> to vector<8x1xi1>
    %562 = vector.broadcast %561 : vector<8x1xi1> to vector<8x128xi1>
    %563 = arith.select %562, %537, %532 : vector<8x128xi1>, vector<8x128xf32>
    %564 = tpu.concatenate %560, %563 in 1 : vector<8x128xf32>, vector<8x128xf32> -> vector<8x256xf32>
    %c6_i32 = arith.constant 6 : i32
    %c7_i32_127 = arith.constant 7 : i32
    %565 = arith.subi %c7_i32_127, %c6_i32 : i32
    %566 = arith.truncf %564 : vector<8x256xf32> to vector<8x256xbf16>
    %cst_128 = arith.constant dense<0.000000e+00> : vector<8x768xf32>
    %567 = tpu.matmul %566, %9, %cst_128 {dimension_numbers = #tpu.dot_dimension_numbers<[1], [0], [0], [1], [0, 0, 1, 1], [], []>} : vector<8x256xbf16>, vector<256x768xbf16>, vector<8x768xf32> -> vector<8x768xf32>
    %568 = arith.addf %567, %12 : vector<8x768xf32>
    %569 = arith.index_cast %c6_i32 : i32 to index
    %c0_129 = arith.constant 0 : index
    %c0_130 = arith.constant 0 : index
    %570 = vector.load %arg9[%569, %c0_129, %c0_130] : memref<8x8x768xf32, #tpu.memory_space<vmem>>, vector<1x8x768xf32>
    %571 = vector.shape_cast %570 : vector<1x8x768xf32> to vector<8x768xf32>
    %572 = arith.index_cast %565 : i32 to index
    %c0_131 = arith.constant 0 : index
    %c0_132 = arith.constant 0 : index
    %573 = vector.load %arg9[%572, %c0_131, %c0_132] : memref<8x8x768xf32, #tpu.memory_space<vmem>>, vector<1x8x768xf32>
    %574 = vector.shape_cast %573 : vector<1x8x768xf32> to vector<8x768xf32>
    %575 = vector.extract_strided_slice %571 {offsets = [0, 0], sizes = [8, 128], strides = [1, 1]} : vector<8x768xf32> to vector<8x128xf32>
    %576 = vector.extract_strided_slice %568 {offsets = [0, 0], sizes = [8, 128], strides = [1, 1]} : vector<8x768xf32> to vector<8x128xf32>
    %577 = arith.addf %575, %576 : vector<8x128xf32>
    %578 = arith.negf %577 : vector<8x128xf32>
    %579 = math.exp %578 : vector<8x128xf32>
    %cst_133 = arith.constant 1.000000e+00 : f32
    %580 = vector.broadcast %cst_133 : f32 to vector<8x128xf32>
    %581 = arith.addf %580, %579 : vector<8x128xf32>
    %582 = arith.divf %580, %581 : vector<8x128xf32>
    %583 = vector.extract_strided_slice %571 {offsets = [0, 128], sizes = [8, 128], strides = [1, 1]} : vector<8x768xf32> to vector<8x128xf32>
    %584 = vector.extract_strided_slice %568 {offsets = [0, 128], sizes = [8, 128], strides = [1, 1]} : vector<8x768xf32> to vector<8x128xf32>
    %585 = arith.addf %583, %584 : vector<8x128xf32>
    %586 = arith.negf %585 : vector<8x128xf32>
    %587 = math.exp %586 : vector<8x128xf32>
    %cst_134 = arith.constant 1.000000e+00 : f32
    %588 = vector.broadcast %cst_134 : f32 to vector<8x128xf32>
    %589 = arith.addf %588, %587 : vector<8x128xf32>
    %590 = arith.divf %588, %589 : vector<8x128xf32>
    %591 = vector.extract_strided_slice %571 {offsets = [0, 256], sizes = [8, 128], strides = [1, 1]} : vector<8x768xf32> to vector<8x128xf32>
    %592 = vector.extract_strided_slice %568 {offsets = [0, 256], sizes = [8, 128], strides = [1, 1]} : vector<8x768xf32> to vector<8x128xf32>
    %593 = arith.mulf %582, %592 : vector<8x128xf32>
    %594 = arith.addf %591, %593 : vector<8x128xf32>
    %595 = math.tanh %594 : vector<8x128xf32>
    %596 = vector.extract_strided_slice %564 {offsets = [0, 0], sizes = [8, 128], strides = [1, 1]} : vector<8x256xf32> to vector<8x128xf32>
    %cst_135 = arith.constant 1.000000e+00 : f32
    %597 = vector.broadcast %cst_135 : f32 to vector<8x128xf32>
    %598 = arith.subf %597, %590 : vector<8x128xf32>
    %599 = arith.mulf %598, %595 : vector<8x128xf32>
    %600 = arith.mulf %590, %596 : vector<8x128xf32>
    %601 = arith.addf %599, %600 : vector<8x128xf32>
    %602 = vector.extract_strided_slice %574 {offsets = [0, 384], sizes = [8, 128], strides = [1, 1]} : vector<8x768xf32> to vector<8x128xf32>
    %603 = vector.extract_strided_slice %568 {offsets = [0, 384], sizes = [8, 128], strides = [1, 1]} : vector<8x768xf32> to vector<8x128xf32>
    %604 = arith.addf %602, %603 : vector<8x128xf32>
    %605 = arith.negf %604 : vector<8x128xf32>
    %606 = math.exp %605 : vector<8x128xf32>
    %cst_136 = arith.constant 1.000000e+00 : f32
    %607 = vector.broadcast %cst_136 : f32 to vector<8x128xf32>
    %608 = arith.addf %607, %606 : vector<8x128xf32>
    %609 = arith.divf %607, %608 : vector<8x128xf32>
    %610 = vector.extract_strided_slice %574 {offsets = [0, 512], sizes = [8, 128], strides = [1, 1]} : vector<8x768xf32> to vector<8x128xf32>
    %611 = vector.extract_strided_slice %568 {offsets = [0, 512], sizes = [8, 128], strides = [1, 1]} : vector<8x768xf32> to vector<8x128xf32>
    %612 = arith.addf %610, %611 : vector<8x128xf32>
    %613 = arith.negf %612 : vector<8x128xf32>
    %614 = math.exp %613 : vector<8x128xf32>
    %cst_137 = arith.constant 1.000000e+00 : f32
    %615 = vector.broadcast %cst_137 : f32 to vector<8x128xf32>
    %616 = arith.addf %615, %614 : vector<8x128xf32>
    %617 = arith.divf %615, %616 : vector<8x128xf32>
    %618 = vector.extract_strided_slice %574 {offsets = [0, 640], sizes = [8, 128], strides = [1, 1]} : vector<8x768xf32> to vector<8x128xf32>
    %619 = vector.extract_strided_slice %568 {offsets = [0, 640], sizes = [8, 128], strides = [1, 1]} : vector<8x768xf32> to vector<8x128xf32>
    %620 = arith.mulf %609, %619 : vector<8x128xf32>
    %621 = arith.addf %618, %620 : vector<8x128xf32>
    %622 = math.tanh %621 : vector<8x128xf32>
    %623 = vector.extract_strided_slice %564 {offsets = [0, 128], sizes = [8, 128], strides = [1, 1]} : vector<8x256xf32> to vector<8x128xf32>
    %cst_138 = arith.constant 1.000000e+00 : f32
    %624 = vector.broadcast %cst_138 : f32 to vector<8x128xf32>
    %625 = arith.subf %624, %617 : vector<8x128xf32>
    %626 = arith.mulf %625, %622 : vector<8x128xf32>
    %627 = arith.mulf %617, %623 : vector<8x128xf32>
    %628 = arith.addf %626, %627 : vector<8x128xf32>
    %629 = vector.broadcast %c6_i32 : i32 to vector<8x1xi32>
    %630 = arith.cmpi sgt, %13, %629 : vector<8x1xi32>
    %631 = vector.broadcast %565 : i32 to vector<8x1xi32>
    %632 = arith.cmpi sgt, %13, %631 : vector<8x1xi32>
    %cst_139 = arith.constant 0.000000e+00 : f32
    %633 = vector.shape_cast %630 : vector<8x1xi1> to vector<8x1xi1>
    %634 = vector.broadcast %633 : vector<8x1xi1> to vector<8x128xi1>
    %635 = vector.broadcast %cst_139 : f32 to vector<8x128xf32>
    %636 = arith.select %634, %601, %635 : vector<8x128xi1>, vector<8x128xf32>
    %637 = arith.index_cast %c6_i32 : i32 to index
    %c0_140 = arith.constant 0 : index
    %c0_141 = arith.constant 0 : index
    %638 = vector.load %arg10[%637, %c0_140, %c0_141] : memref<8x8x128xf32, #tpu.memory_space<vmem>>, vector<1x8x128xf32>
    %639 = vector.shape_cast %638 : vector<1x8x128xf32> to vector<8x128xf32>
    %640 = vector.shape_cast %636 : vector<8x128xf32> to vector<1x8x128xf32>
    tpu.vector_store %arg10[%637, %c0_140, %c0_141], %640 {strides = array<i32>} : memref<8x8x128xf32, #tpu.memory_space<vmem>>, vector<1x8x128xf32>,
    %cst_142 = arith.constant 0.000000e+00 : f32
    %641 = vector.shape_cast %632 : vector<8x1xi1> to vector<8x1xi1>
    %642 = vector.broadcast %641 : vector<8x1xi1> to vector<8x128xi1>
    %643 = vector.broadcast %cst_142 : f32 to vector<8x128xf32>
    %644 = arith.select %642, %628, %643 : vector<8x128xi1>, vector<8x128xf32>
    %645 = arith.index_cast %565 : i32 to index
    %c0_143 = arith.constant 0 : index
    %c0_144 = arith.constant 0 : index
    %646 = vector.load %arg7[%645, %c0_143, %c0_144] : memref<8x8x128xf32, #tpu.memory_space<vmem>>, vector<1x8x128xf32>
    %647 = vector.shape_cast %646 : vector<1x8x128xf32> to vector<8x128xf32>
    %648 = vector.shape_cast %644 : vector<8x128xf32> to vector<1x8x128xf32>
    tpu.vector_store %arg7[%645, %c0_143, %c0_144], %648 {strides = array<i32>} : memref<8x8x128xf32, #tpu.memory_space<vmem>>, vector<1x8x128xf32>,
    %649 = vector.shape_cast %630 : vector<8x1xi1> to vector<8x1xi1>
    %650 = vector.broadcast %649 : vector<8x1xi1> to vector<8x128xi1>
    %651 = arith.select %650, %601, %596 : vector<8x128xi1>, vector<8x128xf32>
    %652 = vector.shape_cast %632 : vector<8x1xi1> to vector<8x1xi1>
    %653 = vector.broadcast %652 : vector<8x1xi1> to vector<8x128xi1>
    %654 = arith.select %653, %628, %623 : vector<8x128xi1>, vector<8x128xf32>
    %655 = tpu.concatenate %651, %654 in 1 : vector<8x128xf32>, vector<8x128xf32> -> vector<8x256xf32>
    %c7_i32_145 = arith.constant 7 : i32
    %c7_i32_146 = arith.constant 7 : i32
    %656 = arith.subi %c7_i32_146, %c7_i32_145 : i32
    %657 = arith.truncf %655 : vector<8x256xf32> to vector<8x256xbf16>
    %cst_147 = arith.constant dense<0.000000e+00> : vector<8x768xf32>
    %658 = tpu.matmul %657, %9, %cst_147 {dimension_numbers = #tpu.dot_dimension_numbers<[1], [0], [0], [1], [0, 0, 1, 1], [], []>} : vector<8x256xbf16>, vector<256x768xbf16>, vector<8x768xf32> -> vector<8x768xf32>
    %659 = arith.addf %658, %12 : vector<8x768xf32>
    %660 = arith.index_cast %c7_i32_145 : i32 to index
    %c0_148 = arith.constant 0 : index
    %c0_149 = arith.constant 0 : index
    %661 = vector.load %arg9[%660, %c0_148, %c0_149] : memref<8x8x768xf32, #tpu.memory_space<vmem>>, vector<1x8x768xf32>
    %662 = vector.shape_cast %661 : vector<1x8x768xf32> to vector<8x768xf32>
    %663 = arith.index_cast %656 : i32 to index
    %c0_150 = arith.constant 0 : index
    %c0_151 = arith.constant 0 : index
    %664 = vector.load %arg9[%663, %c0_150, %c0_151] : memref<8x8x768xf32, #tpu.memory_space<vmem>>, vector<1x8x768xf32>
    %665 = vector.shape_cast %664 : vector<1x8x768xf32> to vector<8x768xf32>
    %666 = vector.extract_strided_slice %662 {offsets = [0, 0], sizes = [8, 128], strides = [1, 1]} : vector<8x768xf32> to vector<8x128xf32>
    %667 = vector.extract_strided_slice %659 {offsets = [0, 0], sizes = [8, 128], strides = [1, 1]} : vector<8x768xf32> to vector<8x128xf32>
    %668 = arith.addf %666, %667 : vector<8x128xf32>
    %669 = arith.negf %668 : vector<8x128xf32>
    %670 = math.exp %669 : vector<8x128xf32>
    %cst_152 = arith.constant 1.000000e+00 : f32
    %671 = vector.broadcast %cst_152 : f32 to vector<8x128xf32>
    %672 = arith.addf %671, %670 : vector<8x128xf32>
    %673 = arith.divf %671, %672 : vector<8x128xf32>
    %674 = vector.extract_strided_slice %662 {offsets = [0, 128], sizes = [8, 128], strides = [1, 1]} : vector<8x768xf32> to vector<8x128xf32>
    %675 = vector.extract_strided_slice %659 {offsets = [0, 128], sizes = [8, 128], strides = [1, 1]} : vector<8x768xf32> to vector<8x128xf32>
    %676 = arith.addf %674, %675 : vector<8x128xf32>
    %677 = arith.negf %676 : vector<8x128xf32>
    %678 = math.exp %677 : vector<8x128xf32>
    %cst_153 = arith.constant 1.000000e+00 : f32
    %679 = vector.broadcast %cst_153 : f32 to vector<8x128xf32>
    %680 = arith.addf %679, %678 : vector<8x128xf32>
    %681 = arith.divf %679, %680 : vector<8x128xf32>
    %682 = vector.extract_strided_slice %662 {offsets = [0, 256], sizes = [8, 128], strides = [1, 1]} : vector<8x768xf32> to vector<8x128xf32>
    %683 = vector.extract_strided_slice %659 {offsets = [0, 256], sizes = [8, 128], strides = [1, 1]} : vector<8x768xf32> to vector<8x128xf32>
    %684 = arith.mulf %673, %683 : vector<8x128xf32>
    %685 = arith.addf %682, %684 : vector<8x128xf32>
    %686 = math.tanh %685 : vector<8x128xf32>
    %687 = vector.extract_strided_slice %655 {offsets = [0, 0], sizes = [8, 128], strides = [1, 1]} : vector<8x256xf32> to vector<8x128xf32>
    %cst_154 = arith.constant 1.000000e+00 : f32
    %688 = vector.broadcast %cst_154 : f32 to vector<8x128xf32>
    %689 = arith.subf %688, %681 : vector<8x128xf32>
    %690 = arith.mulf %689, %686 : vector<8x128xf32>
    %691 = arith.mulf %681, %687 : vector<8x128xf32>
    %692 = arith.addf %690, %691 : vector<8x128xf32>
    %693 = vector.extract_strided_slice %665 {offsets = [0, 384], sizes = [8, 128], strides = [1, 1]} : vector<8x768xf32> to vector<8x128xf32>
    %694 = vector.extract_strided_slice %659 {offsets = [0, 384], sizes = [8, 128], strides = [1, 1]} : vector<8x768xf32> to vector<8x128xf32>
    %695 = arith.addf %693, %694 : vector<8x128xf32>
    %696 = arith.negf %695 : vector<8x128xf32>
    %697 = math.exp %696 : vector<8x128xf32>
    %cst_155 = arith.constant 1.000000e+00 : f32
    %698 = vector.broadcast %cst_155 : f32 to vector<8x128xf32>
    %699 = arith.addf %698, %697 : vector<8x128xf32>
    %700 = arith.divf %698, %699 : vector<8x128xf32>
    %701 = vector.extract_strided_slice %665 {offsets = [0, 512], sizes = [8, 128], strides = [1, 1]} : vector<8x768xf32> to vector<8x128xf32>
    %702 = vector.extract_strided_slice %659 {offsets = [0, 512], sizes = [8, 128], strides = [1, 1]} : vector<8x768xf32> to vector<8x128xf32>
    %703 = arith.addf %701, %702 : vector<8x128xf32>
    %704 = arith.negf %703 : vector<8x128xf32>
    %705 = math.exp %704 : vector<8x128xf32>
    %cst_156 = arith.constant 1.000000e+00 : f32
    %706 = vector.broadcast %cst_156 : f32 to vector<8x128xf32>
    %707 = arith.addf %706, %705 : vector<8x128xf32>
    %708 = arith.divf %706, %707 : vector<8x128xf32>
    %709 = vector.extract_strided_slice %665 {offsets = [0, 640], sizes = [8, 128], strides = [1, 1]} : vector<8x768xf32> to vector<8x128xf32>
    %710 = vector.extract_strided_slice %659 {offsets = [0, 640], sizes = [8, 128], strides = [1, 1]} : vector<8x768xf32> to vector<8x128xf32>
    %711 = arith.mulf %700, %710 : vector<8x128xf32>
    %712 = arith.addf %709, %711 : vector<8x128xf32>
    %713 = math.tanh %712 : vector<8x128xf32>
    %714 = vector.extract_strided_slice %655 {offsets = [0, 128], sizes = [8, 128], strides = [1, 1]} : vector<8x256xf32> to vector<8x128xf32>
    %cst_157 = arith.constant 1.000000e+00 : f32
    %715 = vector.broadcast %cst_157 : f32 to vector<8x128xf32>
    %716 = arith.subf %715, %708 : vector<8x128xf32>
    %717 = arith.mulf %716, %713 : vector<8x128xf32>
    %718 = arith.mulf %708, %714 : vector<8x128xf32>
    %719 = arith.addf %717, %718 : vector<8x128xf32>
    %720 = vector.broadcast %c7_i32_145 : i32 to vector<8x1xi32>
    %721 = arith.cmpi sgt, %13, %720 : vector<8x1xi32>
    %722 = vector.broadcast %656 : i32 to vector<8x1xi32>
    %723 = arith.cmpi sgt, %13, %722 : vector<8x1xi32>
    %cst_158 = arith.constant 0.000000e+00 : f32
    %724 = vector.shape_cast %721 : vector<8x1xi1> to vector<8x1xi1>
    %725 = vector.broadcast %724 : vector<8x1xi1> to vector<8x128xi1>
    %726 = vector.broadcast %cst_158 : f32 to vector<8x128xf32>
    %727 = arith.select %725, %692, %726 : vector<8x128xi1>, vector<8x128xf32>
    %728 = arith.index_cast %c7_i32_145 : i32 to index
    %c0_159 = arith.constant 0 : index
    %c0_160 = arith.constant 0 : index
    %729 = vector.load %arg10[%728, %c0_159, %c0_160] : memref<8x8x128xf32, #tpu.memory_space<vmem>>, vector<1x8x128xf32>
    %730 = vector.shape_cast %729 : vector<1x8x128xf32> to vector<8x128xf32>
    %731 = vector.shape_cast %727 : vector<8x128xf32> to vector<1x8x128xf32>
    tpu.vector_store %arg10[%728, %c0_159, %c0_160], %731 {strides = array<i32>} : memref<8x8x128xf32, #tpu.memory_space<vmem>>, vector<1x8x128xf32>,
    %cst_161 = arith.constant 0.000000e+00 : f32
    %732 = vector.shape_cast %723 : vector<8x1xi1> to vector<8x1xi1>
    %733 = vector.broadcast %732 : vector<8x1xi1> to vector<8x128xi1>
    %734 = vector.broadcast %cst_161 : f32 to vector<8x128xf32>
    %735 = arith.select %733, %719, %734 : vector<8x128xi1>, vector<8x128xf32>
    %736 = arith.index_cast %656 : i32 to index
    %c0_162 = arith.constant 0 : index
    %c0_163 = arith.constant 0 : index
    %737 = vector.load %arg7[%736, %c0_162, %c0_163] : memref<8x8x128xf32, #tpu.memory_space<vmem>>, vector<1x8x128xf32>
    %738 = vector.shape_cast %737 : vector<1x8x128xf32> to vector<8x128xf32>
    %739 = vector.shape_cast %735 : vector<8x128xf32> to vector<1x8x128xf32>
    tpu.vector_store %arg7[%736, %c0_162, %c0_163], %739 {strides = array<i32>} : memref<8x8x128xf32, #tpu.memory_space<vmem>>, vector<1x8x128xf32>,
    %740 = vector.shape_cast %721 : vector<8x1xi1> to vector<8x1xi1>
    %741 = vector.broadcast %740 : vector<8x1xi1> to vector<8x128xi1>
    %742 = arith.select %741, %692, %687 : vector<8x128xi1>, vector<8x128xf32>
    %743 = vector.shape_cast %723 : vector<8x1xi1> to vector<8x1xi1>
    %744 = vector.broadcast %743 : vector<8x1xi1> to vector<8x128xi1>
    %745 = arith.select %744, %719, %714 : vector<8x128xi1>, vector<8x128xf32>
    %746 = tpu.concatenate %742, %745 in 1 : vector<8x128xf32>, vector<8x128xf32> -> vector<8x256xf32>
    %c8_i32 = arith.constant 8 : i32
    %747 = vector.extract_strided_slice %746 {offsets = [0, 0], sizes = [8, 128], strides = [1, 1]} : vector<8x256xf32> to vector<8x128xf32>
    %c0_164 = arith.constant 0 : index
    %c0_165 = arith.constant 0 : index
    %c0_166 = arith.constant 0 : index
    %748 = vector.load %arg8[%c0_164, %c0_165, %c0_166] : memref<2x8x128xf32, #tpu.memory_space<vmem>>, vector<1x8x128xf32>
    %749 = vector.shape_cast %748 : vector<1x8x128xf32> to vector<8x128xf32>
    %750 = vector.shape_cast %747 : vector<8x128xf32> to vector<1x8x128xf32>
    tpu.vector_store %arg8[%c0_164, %c0_165, %c0_166], %750 {strides = array<i32>} : memref<2x8x128xf32, #tpu.memory_space<vmem>>, vector<1x8x128xf32>,
    %751 = vector.extract_strided_slice %746 {offsets = [0, 128], sizes = [8, 128], strides = [1, 1]} : vector<8x256xf32> to vector<8x128xf32>
    %c1_167 = arith.constant 1 : index
    %c0_168 = arith.constant 0 : index
    %c0_169 = arith.constant 0 : index
    %752 = vector.load %arg8[%c1_167, %c0_168, %c0_169] : memref<2x8x128xf32, #tpu.memory_space<vmem>>, vector<1x8x128xf32>
    %753 = vector.shape_cast %752 : vector<1x8x128xf32> to vector<8x128xf32>
    %754 = vector.shape_cast %751 : vector<8x128xf32> to vector<1x8x128xf32>
    tpu.vector_store %arg8[%c1_167, %c0_168, %c0_169], %754 {strides = array<i32>} : memref<2x8x128xf32, #tpu.memory_space<vmem>>, vector<1x8x128xf32>,
    %c0_170 = arith.constant 0 : index
    %c0_171 = arith.constant 0 : index
    %c0_172 = arith.constant 0 : index
    %755 = vector.load %arg7[%c0_170, %c0_171, %c0_172] : memref<8x8x128xf32, #tpu.memory_space<vmem>>, vector<8x8x128xf32>
    %c0_173 = arith.constant 0 : index
    %c0_174 = arith.constant 0 : index
    %c0_175 = arith.constant 0 : index
    %756 = vector.load %arg10[%c0_173, %c0_174, %c0_175] : memref<8x8x128xf32, #tpu.memory_space<vmem>>, vector<8x8x128xf32>
    %757 = arith.addf %755, %756 : vector<8x8x128xf32>
    %c0_176 = arith.constant 0 : index
    %c0_177 = arith.constant 0 : index
    %c0_178 = arith.constant 0 : index
    %758 = vector.load %arg7[%c0_176, %c0_177, %c0_178] : memref<8x8x128xf32, #tpu.memory_space<vmem>>, vector<8x8x128xf32>
    tpu.vector_store %arg7[%c0_176, %c0_177, %c0_178], %757 {strides = array<i32>} : memref<8x8x128xf32, #tpu.memory_space<vmem>>, vector<8x8x128xf32>,
    return
  }
}

</mosaic_0001>

<bundles_post_ra>
// kernel: tpu_custom_call.1
= control target key start
LH: loop header
LB: loop body
LE: loop exit
PB: predicated region body
PF: predicated region fallthrough
CT: control target
= control target key end

     0   :  { %14 = vsyncpa [#allocation5], 0  ;;  %s5856_s0 = inlined_call_operand.hbm [shape: bf16[8,8,128], index: 0, kind: input, shape index: {}]   ;;  %s5857_s1 = inlined_call_operand.vmem [shape: s32[8,1], index: 1, kind: input, shape index: {}]   ;;  %s5858_s2 = inlined_call_operand.hbm [shape: bf16[128,768], index: 2, kind: input, shape index: {}]   ;;  %s5859_s3 = inlined_call_operand.hbm [shape: bf16[256,768], index: 3, kind: input, shape index: {}]   ;;  %s5860_s4 = inlined_call_operand.vmem [shape: f32[1,768], index: 4, kind: input, shape index: {}]   ;;  %s5861_s5 = inlined_call_operand.vmem [shape: f32[1,768], index: 5, kind: input, shape index: {}]   ;;  %s5862_s6 = inlined_call_operand.vmem [shape: f32[2,8,128], index: 6, kind: input, shape index: {}]   ;;  %s5863_s7 = inlined_call_operand.hbm [shape: f32[8,8,128], index: 7, kind: output, shape index: {0}]   ;;  %s5864_s8 = inlined_call_operand.hbm [shape: f32[2,8,128], index: 8, kind: output, shape index: {1}]  }
   0x1   :  { %15 = vsyncpa [#allocation8], 0 }
   0x2   :  { %16 = vsyncpa [#allocation6], 0 }
   0x3   :  { %17 = vsyncpa [#allocation12], 0  ;;  %s3758_s27 = smov [#allocation7]   ;;  %s3640_s9 = scalar_lea.hbm %s5858_s2, 6144 }
   0x4   :  { %s37_s28 = sshll.u32 %s3758_s27, 4  ;;  %p3641_p0 = scmp.ne.s32.totalorder %s5858_s2, %s3640_s9  ;;  %s38_s28 = int_to_ptr.vmem [resolvable:$true] %s37_s28 }
   0x5   :  { %p3644_p1 = scmp.lt.u32.totalorder %s3640_s9, %s5858_s2 }
   0x7   :  { %p3646_p2 = pnand %p3644_p1, %p3641_p0 }
   0x9   :  { %3649 = shalt.err (!%p3646_p2)
}
   0xa   :  { %s3650_s14 = scalar_lea.vmem %s38_s28, 6144  ;;  %p3655_p4 = scmp.lt.s32.totalorder %s38_s28, %s38_s28 }
   0xb   :  { %p3651_p3 = scmp.ne.s32.totalorder %s38_s28, %s3650_s14  ;;  %p3656_p5 = scmp.lt.s32.totalorder %s3650_s14, %s3650_s14 }
   0xd   :  { %p3657_p6 = por %p3656_p5, %p3655_p4 }
   0xf   :  { %p3658_p7 = pnand %p3657_p6, %p3651_p3 }
  0x11   :  { %3661 = shalt.err (!%p3658_p7)
}
  0x12   :  { %s3759_s15 = smov 384   ;;  %s3760_s16 = smov 24  }
  0x13   :  { %43 = dma.hbm_to_vmem [thread:$0]  %s5858_s2, 6144, %s38_s28, [#allocation8], %s3759_s15, %s3759_s15, %s3760_s16  }
  0x14   :  { %s3761_s19 = smov [#allocation4]   ;;  %s3662_s23 = scalar_lea.hbm %s5856_s0, 512 }
  0x15   :  { %s23_s20 = sshll.u32 %s3761_s19, 4  ;;  %p3663_p8 = scmp.ne.s32.totalorder %s5856_s0, %s3662_s23  ;;  %s24_s20 = int_to_ptr.vmem [resolvable:$true] %s23_s20 }
  0x16   :  { %p3666_p9 = scmp.lt.u32.totalorder %s3662_s23, %s5856_s0 }
  0x18   :  { %p3668_p10 = pnand %p3666_p9, %p3663_p8 }
  0x1a   :  { %3671 = shalt.err (!%p3668_p10)
}
  0x1b   :  { %s3672_s29 = scalar_lea.vmem %s24_s20, 512  ;;  %p3677_p12 = scmp.lt.s32.totalorder %s24_s20, %s24_s20 }
  0x1c   :  { %p3673_p11 = scmp.ne.s32.totalorder %s24_s20, %s3672_s29  ;;  %p3678_p13 = scmp.lt.s32.totalorder %s3672_s29, %s3672_s29 }
  0x1e   :  { %p3679_p0 = por %p3678_p13, %p3677_p12 }
  0x20   :  { %p3680_p1 = pnand %p3679_p0, %p3673_p11 }
  0x22   :  { %3683 = shalt.err (!%p3680_p1)
}
  0x23   :  { %s3762_s2 = smov 64   ;;  %s3763_s28 = smov 4  }
  0x24   :  { %29 = dma.hbm_to_vmem [thread:$0]  %s5856_s0, 512, %s24_s20, [#allocation5], %s3762_s2, %s3762_s2, %s3763_s28  }
  0x25   :  { %s3764_s10 = smov [#allocation9]   ;;  %s3684_s14 = scalar_lea.hbm %s5859_s3, 12288 }
  0x26   :  { %s49_s11 = sshll.u32 %s3764_s10, 4  ;;  %p3685_p2 = scmp.ne.s32.totalorder %s5859_s3, %s3684_s14  ;;  %s50_s11 = int_to_ptr.vmem [resolvable:$true] %s49_s11 }
  0x27   :  { %p3688_p3 = scmp.lt.u32.totalorder %s3684_s14, %s5859_s3 }
  0x29   :  { %p3690_p4 = pnand %p3688_p3, %p3685_p2 }
  0x2b   :  { %3693 = shalt.err (!%p3690_p4)
}
  0x2c   :  { %s3694_s22 = scalar_lea.vmem %s50_s11, 12288  ;;  %p3699_p6 = scmp.lt.s32.totalorder %s50_s11, %s50_s11 }
  0x2d   :  { %p3695_p5 = scmp.ne.s32.totalorder %s50_s11, %s3694_s22  ;;  %p3700_p7 = scmp.lt.s32.totalorder %s3694_s22, %s3694_s22 }
  0x2f   :  { %p3701_p8 = por %p3700_p7, %p3699_p6 }
  0x31   :  { %p3702_p9 = pnand %p3701_p8, %p3695_p5 }
  0x33   :  { %3705 = shalt.err (!%p3702_p9)
}
  0x34   :  { %55 = dma.hbm_to_vmem [thread:$0]  %s5859_s3, 12288, %s50_s11, [#allocation8], %s3759_s15, %s3759_s15, %s3760_s16  }
  0x35   :  { %3750 = dma.done.wait [#allocation5], 512  }
  0x36   :  { %3751 = vsyncadd [#allocation5], 4294966784 }
  0x37   :  { %3752 = dma.done.wait [#allocation8], 18432  }
  0x38   :  { %3753 = vsyncadd [#allocation8], 4294948864  ;;  %v5874_v0 = vmov 0   ;;  %v3068_v1 = vld [vmem:[#allocation7 + $0x4] ss:$24 sps:$4 sm:$0xff]   ;;  %v3880_v45 = vld [vmem:[#allocation4 + $0x8] sm:$0xff]  }
  0x39   :  { %529 = vmatprep.mubr.bf16.mxu1 %v5874_v0  ;;  %456 = vmatprep.mubr.bf16.mxu0 %v5874_v0  ;;  %v3070_v2 = vld [vmem:[#allocation7 + $0xc] ss:$24 sps:$4 sm:$0xff]   ;;  %v3072_v3 = vld [vmem:[#allocation7] ss:$24 sps:$4 sm:$0xff]   ;;  %v3076_v6 = vld [vmem:[#allocation7 + $0x3c] ss:$24 sps:$4 sm:$0xff]  }
  0x3a   :  { %3066 = vset.pattern.permute.xlu0 %v5874_v0  ;;  %3067 = vset.pattern.permute.xlu1 %v5874_v0  ;;  %v3073_v4 = vld [vmem:[#allocation7 + $0x8] ss:$24 sps:$4 sm:$0xff]   ;;  %v3074_v5 = vld [vmem:[#allocation7 + $0x34] ss:$24 sps:$4 sm:$0xff]   ;;  %v3079_v8 = vld [vmem:[#allocation7 + $0x38] ss:$24 sps:$4 sm:$0xff]  }
  0x3b   :  { %424 = vmatprep.subr.bf16.mxu0 %v3068_v1  ;;  %497 = vmatprep.subr.bf16.mxu1 %v3070_v2  ;;  %v3078_v7 = vld [vmem:[#allocation7 + $0x30] ss:$24 sps:$4 sm:$0xff]   ;;  %v3080_v9 = vld [vmem:[#allocation7 + $0x64] ss:$24 sps:$4 sm:$0xff]   ;;  %v3084_v11 = vld [vmem:[#allocation7 + $0x60] ss:$24 sps:$4 sm:$0xff]  }
  0x3c   :  { %425 = vmatpush1.bf16.msra.mxu0 %v3072_v3  ;;  %498 = vmatpush1.bf16.msra.mxu1 %v3073_v4  ;;  %v3082_v10 = vld [vmem:[#allocation7 + $0x6c] ss:$24 sps:$4 sm:$0xff]   ;;  %v3085_v12 = vld [vmem:[#allocation7 + $0x68] ss:$24 sps:$4 sm:$0xff]   ;;  %v3088_v14 = vld [vmem:[#allocation7 + $0x9c] ss:$24 sps:$4 sm:$0xff]  }
  0x3d   :  { %426 = vmatprep.subr.bf16.mxu0 %v3074_v5  ;;  %499 = vmatprep.subr.bf16.mxu1 %v3076_v6  ;;  %v3086_v13 = vld [vmem:[#allocation7 + $0x94] ss:$24 sps:$4 sm:$0xff]   ;;  %v3090_v15 = vld [vmem:[#allocation7 + $0x90] ss:$24 sps:$4 sm:$0xff]   ;;  %v3092_v17 = vld [vmem:[#allocation7 + $0xc4] ss:$24 sps:$4 sm:$0xff]  }
  0x3e   :  { %v3091_v16 = vld [vmem:[#allocation7 + $0x98] ss:$24 sps:$4 sm:$0xff]   ;;  %v3094_v18 = vld [vmem:[#allocation7 + $0xcc] ss:$24 sps:$4 sm:$0xff]   ;;  %v3097_v20 = vld [vmem:[#allocation7 + $0xc8] ss:$24 sps:$4 sm:$0xff]  }
  0x3f   :  { %v3096_v19 = vld [vmem:[#allocation7 + $0xc0] ss:$24 sps:$4 sm:$0xff]   ;;  %v3098_v21 = vld [vmem:[#allocation7 + $0xf4] ss:$24 sps:$4 sm:$0xff]   ;;  %v3102_v23 = vld [vmem:[#allocation7 + $0xf0] ss:$24 sps:$4 sm:$0xff]  }
  0x40   :  { %427 = vmatpush1.bf16.msra.mxu0 %v3078_v7  ;;  %500 = vmatpush1.bf16.msra.mxu1 %v3079_v8  ;;  %v3100_v22 = vld [vmem:[#allocation7 + $0xfc] ss:$24 sps:$4 sm:$0xff]   ;;  %v3103_v24 = vld [vmem:[#allocation7 + $0xf8] ss:$24 sps:$4 sm:$0xff]   ;;  %v3106_v26 = vld [vmem:[#allocation7 + $0x12c] ss:$24 sps:$4 sm:$0xff]  }
  0x41   :  { %428 = vmatprep.subr.bf16.mxu0 %v3080_v9  ;;  %501 = vmatprep.subr.bf16.mxu1 %v3082_v10  ;;  %v3104_v25 = vld [vmem:[#allocation7 + $0x124] ss:$24 sps:$4 sm:$0xff]   ;;  %v3108_v27 = vld [vmem:[#allocation7 + $0x120] ss:$24 sps:$4 sm:$0xff]   ;;  %v3110_v29 = vld [vmem:[#allocation7 + $0x154] ss:$24 sps:$4 sm:$0xff]  }
  0x42   :  { %v3109_v28 = vld [vmem:[#allocation7 + $0x128] ss:$24 sps:$4 sm:$0xff]   ;;  %v3112_v30 = vld [vmem:[#allocation7 + $0x15c] ss:$24 sps:$4 sm:$0xff]   ;;  %v3115_v32 = vld [vmem:[#allocation7 + $0x158] ss:$24 sps:$4 sm:$0xff]  }
  0x43   :  { %v3114_v31 = vld [vmem:[#allocation7 + $0x150] ss:$24 sps:$4 sm:$0xff]   ;;  %v3119_v33 = vld [vmem:[#allocation7 + $0x14] ss:$24 sps:$4 sm:$0xff]   ;;  %v3861_v34 = vld [vmem:[#allocation9 + $0x4] ss:$24 sps:$4 sm:$0xff]  }
  0x44   :  { %429 = vmatpush1.bf16.msra.mxu0 %v3084_v11  ;;  %502 = vmatpush1.bf16.msra.mxu1 %v3085_v12  ;;  %6086 = vst [vmem:[#allocation17_spill] sm:$0xff] %v3861_v34  ;;  %v3863_v35 = vld [vmem:[#allocation4] sm:$0xff]   ;;  %v3117_v36 = vld [vmem:[#allocation7 + $0x10] ss:$24 sps:$4 sm:$0xff]   ;;  %v3868_v39 = vld [vmem:[#allocation9 + $0x34] ss:$24 sps:$4 sm:$0xff]  }
  0x45   :  { %430 = vmatprep.subr.bf16.mxu0 %v3086_v13  ;;  %503 = vmatprep.subr.bf16.mxu1 %v3088_v14  ;;  %v3865_v37 = vld [vmem:[#allocation9] ss:$24 sps:$4 sm:$0xff]   ;;  %v3125_v38 = vld [vmem:[#allocation7 + $0x44] ss:$24 sps:$4 sm:$0xff]   ;;  %v3873_v41 = vld [vmem:[#allocation9 + $0x30] ss:$24 sps:$4 sm:$0xff]  }
  0x46   :  { %v3123_v40 = vld [vmem:[#allocation7 + $0x40] ss:$24 sps:$4 sm:$0xff]   ;;  %v3131_v42 = vld [vmem:[#allocation7 + $0x74] ss:$24 sps:$4 sm:$0xff]   ;;  %v3876_v43 = vld [vmem:[#allocation9 + $0x64] ss:$24 sps:$4 sm:$0xff]  }
  0x47   :  { %v3129_v44 = vld [vmem:[#allocation7 + $0x70] ss:$24 sps:$4 sm:$0xff]   ;;  %v3883_v46 = vld [vmem:[#allocation9 + $0x60] ss:$24 sps:$4 sm:$0xff]   ;;  %v3138_v47 = vld [vmem:[#allocation7 + $0xa4] ss:$24 sps:$4 sm:$0xff]  }
  0x48   :  { %431 = vmatpush1.bf16.msra.mxu0 %v3090_v15  ;;  %504 = vmatpush1.bf16.msra.mxu1 %v3091_v16  ;;  %v3886_v48 = vld [vmem:[#allocation9 + $0x94] ss:$24 sps:$4 sm:$0xff]   ;;  %v3136_v49 = vld [vmem:[#allocation7 + $0xa0] ss:$24 sps:$4 sm:$0xff]   ;;  %v3889_v50 = vld [vmem:[#allocation9 + $0x90] ss:$24 sps:$4 sm:$0xff]  }
  0x49   :  { %432 = vmatprep.subr.bf16.mxu0 %v3092_v17  ;;  %505 = vmatprep.subr.bf16.mxu1 %v3094_v18  ;;  %v3144_v51 = vld [vmem:[#allocation7 + $0xd4] ss:$24 sps:$4 sm:$0xff]   ;;  %v3894_v52 = vld [vmem:[#allocation9 + $0xc4] ss:$24 sps:$4 sm:$0xff]   ;;  %v3142_v53 = vld [vmem:[#allocation7 + $0xd0] ss:$24 sps:$4 sm:$0xff]  }
  0x4a   :  { %v3898_v54 = vld [vmem:[#allocation4 + $0x10] sm:$0xff]   ;;  %v3901_v55 = vld [vmem:[#allocation9 + $0xc0] ss:$24 sps:$4 sm:$0xff]   ;;  %v3151_v56 = vld [vmem:[#allocation7 + $0x104] ss:$24 sps:$4 sm:$0xff]   ;;  %s3767_s29 = smov [#allocation10]  }
  0x4b   :  { %v3904_v57 = vld [vmem:[#allocation9 + $0xf4] ss:$24 sps:$4 sm:$0xff]   ;;  %v3149_v58 = vld [vmem:[#allocation7 + $0x100] ss:$24 sps:$4 sm:$0xff]   ;;  %v3907_v59 = vld [vmem:[#allocation9 + $0xf0] ss:$24 sps:$4 sm:$0xff]  }
  0x4c   :  { %433 = vmatpush1.bf16.msra.mxu0 %v3096_v19  ;;  %506 = vmatpush1.bf16.msra.mxu1 %v3097_v20  ;;  %v3157_v60 = vld [vmem:[#allocation7 + $0x134] ss:$24 sps:$4 sm:$0xff]   ;;  %v3912_v61 = vld [vmem:[#allocation9 + $0x124] ss:$24 sps:$4 sm:$0xff]   ;;  %v3155_v62 = vld [vmem:[#allocation7 + $0x130] ss:$24 sps:$4 sm:$0xff]  }
  0x4d   :  { %434 = vmatprep.subr.bf16.mxu0 %v3098_v21  ;;  %507 = vmatprep.subr.bf16.mxu1 %v3100_v22  ;;  %v3916_v63 = vld [vmem:[#allocation4 + $0x18] sm:$0xff]   ;;  %v3922_v3 = vld [vmem:[#allocation9 + $0x154] ss:$24 sps:$4 sm:$0xff]   ;;  %v3925_v5 = vld [vmem:[#allocation9 + $0x150] ss:$24 sps:$4 sm:$0xff]   ;;  %s2844_s2 = sshll.u32 %s3767_s29, 4  ;;  %s5825_s2 = int_to_ptr.vmem [resolvable:$true] %s2844_s2 }
  0x4e   :  { %v3919_v1 = vld [vmem:[#allocation9 + $0x120] ss:$24 sps:$4 sm:$0xff]   ;;  %v3164_v2 = vld [vmem:[#allocation7 + $0x164] ss:$24 sps:$4 sm:$0xff]   ;;  %v3940_v10 = vld [vmem:[#allocation9 + $0x1b4] ss:$24 sps:$4 sm:$0xff]  }
  0x4f   :  { %v3162_v4 = vld [vmem:[#allocation7 + $0x160] ss:$24 sps:$4 sm:$0xff]   ;;  %v3929_v6 = vld [vmem:[#allocation9 + $0x184] ss:$24 sps:$4 sm:$0xff]   ;;  %v3947_v12 = vld [vmem:[#allocation9 + $0x1b0] ss:$24 sps:$4 sm:$0xff]  }
  0x50   :  { %435 = vmatpush1.bf16.msra.mxu0 %v3102_v23  ;;  %508 = vmatpush1.bf16.msra.mxu1 %v3103_v24  ;;  %v3932_v7 = vld [vmem:[#allocation9 + $0xc] ss:$24 sps:$4 sm:$0xff]   ;;  %v3935_v8 = vld [vmem:[#allocation9 + $0x180] ss:$24 sps:$4 sm:$0xff]   ;;  %v3944_v11 = vld [vmem:[#allocation9 + $0x3c] ss:$24 sps:$4 sm:$0xff]  }
  0x51   :  { %436 = vmatprep.subr.bf16.mxu0 %v3104_v25  ;;  %509 = vmatprep.subr.bf16.mxu1 %v3106_v26  ;;  %v3938_v9 = vld [vmem:[#allocation9 + $0x8] ss:$24 sps:$4 sm:$0xff]   ;;  %v3949_v13 = vld [vmem:[#allocation9 + $0x38] ss:$24 sps:$4 sm:$0xff]   ;;  %v3953_v14 = vld [vmem:[#allocation9 + $0x1e4] ss:$24 sps:$4 sm:$0xff]  }
  0x52   :  { %v3958_v15 = vld [vmem:[%s5862_s6 + $0x8] sm:$0xff]  ;;  %v3969_v18 = vld [vmem:[#allocation9 + $0x1e0] ss:$24 sps:$4 sm:$0xff]   ;;  %v3980_v21 = vld [vmem:[#allocation9 + $0x9c] ss:$24 sps:$4 sm:$0xff]  }
  0x53   :  { %6087 = vst [vmem:[#allocation18_spill] sm:$0xff] %v3958_v15  ;;  %v3962_v16 = vld [vmem:[#allocation9 + $0x6c] ss:$24 sps:$4 sm:$0xff]   ;;  %v3966_v17 = vpack.c.bf16 %v3958_v15, %v3958_v15  ;;  %v3974_v19 = vld [vmem:[#allocation9 + $0x68] ss:$24 sps:$4 sm:$0xff]  }
  0x54   :  { %437 = vmatpush1.bf16.msra.mxu0 %v3108_v27  ;;  %510 = vmatpush1.bf16.msra.mxu1 %v3109_v28  ;;  %v3978_v20 = vld [vmem:[#allocation9 + $0x214] ss:$24 sps:$4 sm:$0xff]   ;;  %v3982_v22 = vld [vmem:[#allocation9 + $0x210] ss:$24 sps:$4 sm:$0xff]   ;;  %v3989_v24 = vld [vmem:[#allocation9 + $0x244] ss:$24 sps:$4 sm:$0xff]  }
  0x55   :  { %438 = vmatprep.subr.bf16.mxu0 %v3110_v29  ;;  %511 = vmatprep.subr.bf16.mxu1 %v3112_v30  ;;  %v3987_v23 = vld [vmem:[#allocation9 + $0x98] ss:$24 sps:$4 sm:$0xff]   ;;  %v3993_v25 = vld [vmem:[#allocation9 + $0xcc] ss:$24 sps:$4 sm:$0xff]   ;;  %v4000_v27 = vld [vmem:[#allocation9 + $0xc8] ss:$24 sps:$4 sm:$0xff]  }
  0x56   :  { %v3996_v26 = vld [vmem:[#allocation9 + $0x240] ss:$24 sps:$4 sm:$0xff]   ;;  %v4004_v28 = vld [vmem:[#allocation9 + $0x274] ss:$24 sps:$4 sm:$0xff]   ;;  %v4008_v30 = vld [vmem:[#allocation9 + $0x270] ss:$24 sps:$4 sm:$0xff]  }
  0x57   :  { %v4006_v29 = vld [vmem:[#allocation9 + $0xfc] ss:$24 sps:$4 sm:$0xff]   ;;  %v4093_v15 = vld [vmem:[#allocation9 + $0x1e8] ss:$24 sps:$4 sm:$0xff]  }
  0x58   :  { %439 = vmatpush1.bf16.msra.mxu0 %v3114_v31  ;;  %512 = vmatpush1.bf16.msra.mxu1 %v3115_v32  ;;  %v4013_v31 = vld [vmem:[#allocation9 + $0xf8] ss:$24 sps:$4 sm:$0xff]   ;;  %v4015_v32 = vld [vmem:[#allocation9 + $0x2a4] ss:$24 sps:$4 sm:$0xff]   ;;  %6094 = vst [vmem:[#allocation25_spill] sm:$0xff] %v4093_v15 }
  0x59   :  { %570 = vmatprep.subr.bf16.mxu0 %v3119_v33  ;;  %1305 = vmatprep.subr.bf16.mxu1 %v3861_v34  ;;  %v4019_v33 = vld [vmem:[#allocation9 + $0x12c] ss:$24 sps:$4 sm:$0xff]  }
  0x5b   :  { %530 = vmatmul.mubr.bf16.vlgmr.msra.gmra.mrb[0].mxu1 %v3863_v35  ;;  %457 = vmatmul.mubr.bf16.vlgmr.msra.gmra.mrb[0].mxu0 %v3863_v35 }
  0x5c   :  { %571 = vmatpush1.bf16.msra.mxu0 %v3117_v36  ;;  %1306 = vmatpush1.bf16.msra.mxu1 %v3865_v37  ;;  %v4026_v36 = vld [vmem:[#allocation9 + $0x128] ss:$24 sps:$4 sm:$0xff]  }
  0x5d   :  { %572 = vmatprep.subr.bf16.mxu0 %v3125_v38  ;;  %1307 = vmatprep.subr.bf16.mxu1 %v3868_v39  ;;  %v4030_v38 = vld [vmem:[#allocation9 + $0x2d4] ss:$24 sps:$4 sm:$0xff]  }
  0x5e   :  { %466 = vmatprep.mubr.bf16.mxu0 %v5874_v0  ;;  %539 = vmatprep.mubr.bf16.mxu1 %v5874_v0 }
  0x60   :  { %573 = vmatpush1.bf16.msra.mxu0 %v3123_v40  ;;  %1308 = vmatpush1.bf16.msra.mxu1 %v3873_v41  ;;  %v4032_v40 = vld [vmem:[#allocation9 + $0x15c] ss:$24 sps:$4 sm:$0xff]  }
  0x61   :  { %574 = vmatprep.subr.bf16.mxu0 %v3131_v42  ;;  %1309 = vmatprep.subr.bf16.mxu1 %v3876_v43  ;;  %v4034_v42 = vld [vmem:[#allocation9 + $0x2d0] ss:$24 sps:$4 sm:$0xff]  }
  0x63   :  { %467 = vmatmul.mubr.bf16.gmra.mrb[4].mxu0 %v3880_v45  ;;  %540 = vmatmul.mubr.bf16.gmra.mrb[4].mxu1 %v3880_v45 }
  0x64   :  { %575 = vmatpush1.bf16.msra.mxu0 %v3129_v44  ;;  %1310 = vmatpush1.bf16.msra.mxu1 %v3883_v46  ;;  %v4039_v44 = vld [vmem:[#allocation9 + $0x158] ss:$24 sps:$4 sm:$0xff]  }
  0x65   :  { %576 = vmatprep.subr.bf16.mxu0 %v3138_v47  ;;  %1311 = vmatprep.subr.bf16.mxu1 %v3886_v48  ;;  %v4048_v47 = vld [vmem:[#allocation9 + $0x18c] ss:$24 sps:$4 sm:$0xff]  }
  0x66   :  { %476 = vmatprep.mubr.bf16.mxu0 %v5874_v0  ;;  %549 = vmatprep.mubr.bf16.mxu1 %v5874_v0 }
  0x68   :  { %577 = vmatpush1.bf16.msra.mxu0 %v3136_v49  ;;  %1312 = vmatpush1.bf16.msra.mxu1 %v3889_v50  ;;  %v4050_v49 = vld [vmem:[#allocation9 + $0x14] ss:$24 sps:$4 sm:$0xff]  }
  0x69   :  { %578 = vmatprep.subr.bf16.mxu0 %v3144_v51  ;;  %1313 = vmatprep.subr.bf16.mxu1 %v3894_v52 }
  0x6b   :  { %477 = vmatmul.mubr.bf16.gmra.mrb[8].mxu0 %v3898_v54  ;;  %550 = vmatmul.mubr.bf16.gmra.mrb[8].mxu1 %v3898_v54 }
  0x6c   :  { %579 = vmatpush1.bf16.msra.mxu0 %v3142_v53  ;;  %1314 = vmatpush1.bf16.msra.mxu1 %v3901_v55  ;;  %v4059_v53 = vld [vmem:[#allocation9 + $0x188] ss:$24 sps:$4 sm:$0xff]  }
  0x6d   :  { %580 = vmatprep.subr.bf16.mxu0 %v3151_v56  ;;  %1315 = vmatprep.subr.bf16.mxu1 %v3904_v57  ;;  %v4065_v56 = vld [vmem:[#allocation9 + $0x1bc] ss:$24 sps:$4 sm:$0xff]  }
  0x6e   :  { %486 = vmatprep.mubr.bf16.mxu0 %v5874_v0  ;;  %559 = vmatprep.mubr.bf16.mxu1 %v5874_v0  ;;  %6090 = vst [vmem:[#allocation21_spill] sm:$0xff] %v4065_v56 }
  0x70   :  { %581 = vmatpush1.bf16.msra.mxu0 %v3149_v58  ;;  %1316 = vmatpush1.bf16.msra.mxu1 %v3907_v59  ;;  %v4067_v58 = vld [vmem:[#allocation9 + $0x44] ss:$24 sps:$4 sm:$0xff]  }
  0x71   :  { %582 = vmatprep.subr.bf16.mxu0 %v3157_v60  ;;  %1317 = vmatprep.subr.bf16.mxu1 %v3912_v61  ;;  %6091 = vst [vmem:[#allocation22_spill] sm:$0xff] %v4067_v58  ;;  %v4072_v60 = vld [vmem:[#allocation9 + $0x1b8] ss:$24 sps:$4 sm:$0xff]  }
  0x73   :  { %487 = vmatmul.mubr.bf16.gmra.mrb[12].mxu0 %v3916_v63  ;;  %560 = vmatmul.mubr.bf16.gmra.mrb[12].mxu1 %v3916_v63 }
  0x74   :  { %583 = vmatpush1.bf16.msra.mxu0 %v3155_v62  ;;  %1318 = vmatpush1.bf16.msra.mxu1 %v3919_v1  ;;  %v4074_v62 = vld [vmem:[#allocation9 + $0x40] ss:$24 sps:$4 sm:$0xff]  }
  0x75   :  { %584 = vmatprep.subr.bf16.mxu0 %v3164_v2  ;;  %1319 = vmatprep.subr.bf16.mxu1 %v3922_v3  ;;  %6092 = vst [vmem:[#allocation23_spill] sm:$0xff] %v4074_v62  ;;  %v4083_v2 = vld [vmem:[#allocation9 + $0x1ec] ss:$24 sps:$4 sm:$0xff]  }
  0x76   :  { %602 = vmatprep.mubr.bf16.mxu0 %v5874_v0  ;;  %1337 = vmatprep.mubr.bf16.mxu1 %v3966_v17 }
  0x78   :  { %585 = vmatpush1.bf16.msra.mxu0 %v3162_v4  ;;  %1320 = vmatpush1.bf16.msra.mxu1 %v3925_v5  ;;  %v4085_v4 = vld [vmem:[#allocation9 + $0x74] ss:$24 sps:$4 sm:$0xff]  }
  0x79   :  { %1321 = vmatprep.subr.bf16.mxu1 %v3929_v6  ;;  %1346 = vmatprep.subr.bf16.mxu0 %v3932_v7  ;;  %6093 = vst [vmem:[#allocation24_spill] sm:$0xff] %v4085_v4 }
  0x7b   :  { %603 = vmatmul.mubr.bf16.vlgmr.msra.gmra.mrb[16].mxu0 %v3863_v35  ;;  %v4022_v35 = vld [vmem:[#allocation9 + $0x2a0] ss:$24 sps:$4 sm:$0xff]  }
  0x7c   :  { %1322 = vmatpush1.bf16.msra.mxu1 %v3935_v8  ;;  %1347 = vmatpush1.bf16.msra.mxu0 %v3938_v9 }
  0x7d   :  { %1323 = vmatprep.subr.bf16.mxu1 %v3940_v10  ;;  %1348 = vmatprep.subr.bf16.mxu0 %v3944_v11 }
  0x7e   :  { %612 = vmatprep.mubr.bf16.mxu0 %v5874_v0 }
  0x80   :  { %1324 = vmatpush1.bf16.msra.mxu1 %v3947_v12  ;;  %1349 = vmatpush1.bf16.msra.mxu0 %v3949_v13 }
  0x81   :  { %1325 = vmatprep.subr.bf16.mxu1 %v3953_v14  ;;  %1350 = vmatprep.subr.bf16.mxu0 %v3962_v16 }
  0x83   :  { %613 = vmatmul.mubr.bf16.gmra.mrb[20].mxu0 %v3880_v45  ;;  %v4044_v45 = vld [vmem:[%s5862_s6] sm:$0xff] }
  0x84   :  { %1326 = vmatpush1.bf16.msra.mxu1 %v3969_v18  ;;  %1351 = vmatpush1.bf16.msra.mxu0 %v3974_v19  ;;  %6088 = vst [vmem:[#allocation19_spill] sm:$0xff] %v4044_v45  ;;  %v4055_v51 = vpack.c.bf16 %v4044_v45, %v4044_v45 }
  0x85   :  { %1327 = vmatprep.subr.bf16.mxu1 %v3978_v20  ;;  %1352 = vmatprep.subr.bf16.mxu0 %v3980_v21 }
  0x86   :  { %622 = vmatprep.mubr.bf16.mxu0 %v5874_v0 }
  0x88   :  { %1328 = vmatpush1.bf16.msra.mxu1 %v3982_v22  ;;  %1353 = vmatpush1.bf16.msra.mxu0 %v3987_v23 }
  0x89   :  { %1329 = vmatprep.subr.bf16.mxu1 %v3989_v24  ;;  %1354 = vmatprep.subr.bf16.mxu0 %v3993_v25 }
  0x8b   :  { %623 = vmatmul.mubr.bf16.gmra.mrb[24].mxu0 %v3898_v54  ;;  %v4061_v54 = vld [vmem:[#allocation9 + $0x10] ss:$24 sps:$4 sm:$0xff]  }
  0x8c   :  { %1330 = vmatpush1.bf16.msra.mxu1 %v3996_v26  ;;  %1355 = vmatpush1.bf16.msra.mxu0 %v4000_v27  ;;  %6089 = vst [vmem:[#allocation20_spill] sm:$0xff] %v4061_v54 }
  0x8d   :  { %1331 = vmatprep.subr.bf16.mxu1 %v4004_v28  ;;  %1356 = vmatprep.subr.bf16.mxu0 %v4006_v29 }
  0x8e   :  { %632 = vmatprep.mubr.bf16.mxu0 %v5874_v0 }
  0x90   :  { %1332 = vmatpush1.bf16.msra.mxu1 %v4008_v30  ;;  %1357 = vmatpush1.bf16.msra.mxu0 %v4013_v31 }
  0x91   :  { %1333 = vmatprep.subr.bf16.mxu1 %v4015_v32  ;;  %1358 = vmatprep.subr.bf16.mxu0 %v4019_v33 }
  0x93   :  { %633 = vmatmul.mubr.bf16.gmra.mrb[28].mxu0 %v3916_v63  ;;  %v4079_v63 = vld [vmem:[%s5857_s1] sm:$0xff] }
  0x94   :  { %1334 = vmatpush1.bf16.msra.mxu1 %v4022_v35  ;;  %1359 = vmatpush1.bf16.msra.mxu0 %v4026_v36  ;;  %vm1478_vm0 = vcmp.gt.s32.totalorder %v4079_v63, 7  ;;  %vm1477_vm1 = vcmp.gt.s32.totalorder %v4079_v63, 0  ;;  %vm1867_vm2 = vcmp.gt.s32.totalorder %v4079_v63, 5  ;;  %vm2062_vm3 = vcmp.gt.s32.totalorder %v4079_v63, 4 }
  0x95   :  { %1335 = vmatprep.subr.bf16.mxu1 %v4030_v38  ;;  %1360 = vmatprep.subr.bf16.mxu0 %v4032_v40  ;;  %v1479_v45 = vsel %vm1477_vm1, 1, %v5874_v0  ;;  %vm1672_vm4 = vcmp.gt.s32.totalorder %v4079_v63, 6  ;;  %vm1671_vm5 = vcmp.gt.s32.totalorder %v4079_v63, 1  ;;  %vm1866_vm6 = vcmp.gt.s32.totalorder %v4079_v63, 2 }
  0x96   :  { %1378 = vmatprep.mubr.bf16.mxu0 %v3966_v17  ;;  %vm2061_vm7 = vcmp.gt.s32.totalorder %v4079_v63, 3 }
  0x98   :  { %1336 = vmatpush1.bf16.msra.mxu1 %v4034_v42  ;;  %1361 = vmatpush1.bf16.msra.mxu0 %v4039_v44 }
  0x99   :  { %1362 = vmatprep.subr.bf16.mxu0 %v4048_v47  ;;  %1387 = vmatprep.subr.bf16.mxu1 %v4050_v49 }
  0x9b   :  { %1338 = vmatmul.mubr.bf16.vlgmr.msra.gmra.mrb[16].mxu1 %v4055_v51 }
  0x9c   :  { %1363 = vmatpush1.bf16.msra.mxu0 %v4059_v53  ;;  %1388 = vmatpush1.bf16.msra.mxu1 %v4061_v54  ;;  %v1486_v54 = vsel %vm1478_vm0, 1, %v5874_v0  ;;  %v4112_v0 = vld [vmem:[#allocation9 + $0x24c] ss:$24 sps:$4 sm:$0xff]  }
  0x9d   :  { %1364 = vmatprep.subr.bf16.mxu0 %v4065_v56  ;;  %1389 = vmatprep.subr.bf16.mxu1 %v4067_v58  ;;  %v4095_v58 = vld [vmem:[#allocation9 + $0x70] ss:$24 sps:$4 sm:$0xff]   ;;  %v4100_v56 = vld [vmem:[#allocation9 + $0x21c] ss:$24 sps:$4 sm:$0xff]   ;;  %6100 = vst [vmem:[#allocation31_spill] sm:$0xff] %v4112_v0 }
  0x9e   :  { %1419 = vmatprep.mubr.bf16.mxu1 %v3966_v17  ;;  %1488 = vperm.xlu0 %3066, %v1486_v54   ;;  %6095 = vst [vmem:[#allocation26_spill] sm:$0xff] %v4095_v58  ;;  %6096 = vst [vmem:[#allocation27_spill] sm:$0xff] %v4100_v56  ;;  %v4102_v17 = vld [vmem:[#allocation9 + $0xa4] ss:$24 sps:$4 sm:$0xff]   ;;  %v4106_v54 = vld [vmem:[#allocation9 + $0x218] ss:$24 sps:$4 sm:$0xff]  }
  0x9f   :  { %6097 = vst [vmem:[#allocation28_spill] sm:$0xff] %v4102_v17  ;;  %6098 = vst [vmem:[#allocation29_spill] sm:$0xff] %v4106_v54 }
  0xa0   :  { %1365 = vmatpush1.bf16.msra.mxu0 %v4072_v60  ;;  %1390 = vmatpush1.bf16.msra.mxu1 %v4074_v62  ;;  %v4108_v62 = vld [vmem:[#allocation9 + $0xa0] ss:$24 sps:$4 sm:$0xff]  }
  0xa1   :  { %1366 = vmatprep.subr.bf16.mxu0 %v4083_v2  ;;  %1391 = vmatprep.subr.bf16.mxu1 %v4085_v4  ;;  %6099 = vst [vmem:[#allocation30_spill] sm:$0xff] %v4108_v62  ;;  %v4114_v4 = vld [vmem:[#allocation9 + $0xd4] ss:$24 sps:$4 sm:$0xff]  }
  0xa2   :  { %1481 = vperm.xlu0 %3066, %v1479_v45   ;;  %6101 = vst [vmem:[#allocation32_spill] sm:$0xff] %v4114_v4  ;;  %v4118_v45 = vld [vmem:[#allocation9 + $0x248] ss:$24 sps:$4 sm:$0xff]  }
  0xa3   :  { %6102 = vst [vmem:[#allocation33_spill] sm:$0xff] %v4118_v45 }
  0xa4   :  { %1367 = vmatpush1.bf16.msra.mxu0 %v4093_v15  ;;  %1392 = vmatpush1.bf16.msra.mxu1 %v4095_v58  ;;  %v4120_v15 = vld [vmem:[#allocation9 + $0xd0] ss:$24 sps:$4 sm:$0xff]   ;;  %v4124_v58 = vld [vmem:[#allocation9 + $0x27c] ss:$24 sps:$4 sm:$0xff]  }
  0xa5   :  { %1368 = vmatprep.subr.bf16.mxu0 %v4100_v56  ;;  %1393 = vmatprep.subr.bf16.mxu1 %v4102_v17  ;;  %6103 = vst [vmem:[#allocation34_spill] sm:$0xff] %v4120_v15  ;;  %6104 = vst [vmem:[#allocation35_spill] sm:$0xff] %v4124_v58  ;;  %v4126_v56 = vld [vmem:[#allocation9 + $0x104] ss:$24 sps:$4 sm:$0xff]   ;;  %v4130_v17 = vld [vmem:[#allocation9 + $0x278] ss:$24 sps:$4 sm:$0xff]  }
  0xa6   :  { %6105 = vst [vmem:[#allocation36_spill] sm:$0xff] %v4126_v56  ;;  %6106 = vst [vmem:[#allocation37_spill] sm:$0xff] %v4130_v17 }
  0xa8   :  { %1369 = vmatpush1.bf16.msra.mxu0 %v4106_v54  ;;  %1394 = vmatpush1.bf16.msra.mxu1 %v4108_v62  ;;  %v4132_v54 = vld [vmem:[#allocation9 + $0x100] ss:$24 sps:$4 sm:$0xff]   ;;  %v4136_v62 = vld [vmem:[#allocation9 + $0x2ac] ss:$24 sps:$4 sm:$0xff]  }
  0xa9   :  { %1370 = vmatprep.subr.bf16.mxu0 %v4112_v0  ;;  %1395 = vmatprep.subr.bf16.mxu1 %v4114_v4  ;;  %6107 = vst [vmem:[#allocation38_spill] sm:$0xff] %v4132_v54  ;;  %6108 = vst [vmem:[#allocation39_spill] sm:$0xff] %v4136_v62  ;;  %v4138_v0 = vld [vmem:[#allocation9 + $0x134] ss:$24 sps:$4 sm:$0xff]   ;;  %v4142_v4 = vld [vmem:[#allocation9 + $0x2a8] ss:$24 sps:$4 sm:$0xff]  }
  0xaa   :  { %6109 = vst [vmem:[#allocation40_spill] sm:$0xff] %v4138_v0  ;;  %6110 = vst [vmem:[#allocation41_spill] sm:$0xff] %v4142_v4 }
  0xac   :  { %1371 = vmatpush1.bf16.msra.mxu0 %v4118_v45  ;;  %1396 = vmatpush1.bf16.msra.mxu1 %v4120_v15  ;;  %v4144_v45 = vld [vmem:[#allocation9 + $0x130] ss:$24 sps:$4 sm:$0xff]   ;;  %v4148_v15 = vld [vmem:[#allocation9 + $0x2dc] ss:$24 sps:$4 sm:$0xff]  }
  0xad   :  { %1372 = vmatprep.subr.bf16.mxu0 %v4124_v58  ;;  %1397 = vmatprep.subr.bf16.mxu1 %v4126_v56  ;;  %6111 = vst [vmem:[#allocation42_spill] sm:$0xff] %v4144_v45  ;;  %6112 = vst [vmem:[#allocation43_spill] sm:$0xff] %v4148_v15  ;;  %v4150_v58 = vld [vmem:[#allocation9 + $0x164] ss:$24 sps:$4 sm:$0xff]   ;;  %v4154_v56 = vld [vmem:[#allocation9 + $0x2d8] ss:$24 sps:$4 sm:$0xff]  }
  0xae   :  { %6113 = vst [vmem:[#allocation44_spill] sm:$0xff] %v4150_v58  ;;  %6114 = vst [vmem:[#allocation45_spill] sm:$0xff] %v4154_v56 }
  0xb0   :  { %1373 = vmatpush1.bf16.msra.mxu0 %v4130_v17  ;;  %1398 = vmatpush1.bf16.msra.mxu1 %v4132_v54  ;;  %v4156_v17 = vld [vmem:[#allocation9 + $0x160] ss:$24 sps:$4 sm:$0xff]   ;;  %v4160_v54 = vld [vmem:[#allocation9 + $0x194] ss:$24 sps:$4 sm:$0xff]  }
  0xb1   :  { %1374 = vmatprep.subr.bf16.mxu0 %v4136_v62  ;;  %1399 = vmatprep.subr.bf16.mxu1 %v4138_v0  ;;  %6115 = vst [vmem:[#allocation46_spill] sm:$0xff] %v4156_v17  ;;  %6116 = vst [vmem:[#allocation47_spill] sm:$0xff] %v4160_v54  ;;  %v4164_v0 = vld [vmem:[#allocation9 + $0x190] ss:$24 sps:$4 sm:$0xff]  }
  0xb2   :  { %6117 = vst [vmem:[#allocation48_spill] sm:$0xff] %v4164_v0 }
  0xb4   :  { %1375 = vmatpush1.bf16.msra.mxu0 %v4142_v4  ;;  %1400 = vmatpush1.bf16.msra.mxu1 %v4144_v45  ;;  %v4167_v4 = vld [vmem:[#allocation9 + $0x1c4] ss:$24 sps:$4 sm:$0xff]   ;;  %v6118_v45 = vmov 0  }
  0xb5   :  { %1376 = vmatprep.subr.bf16.mxu0 %v4148_v15  ;;  %1401 = vmatprep.subr.bf16.mxu1 %v4150_v58  ;;  %v1876_v58 = vsel %vm1867_vm2, 1, %v6118_v45  ;;  %v4174_v15 = vld [vmem:[#allocation9 + $0x1c0] ss:$24 sps:$4 sm:$0xff]  }
  0xb6   :  { %1878 = vperm.xlu0 %3066, %v1876_v58   ;;  %v4200_v58 = vld [vmem:[#allocation9 + $0x250] ss:$24 sps:$4 sm:$0xff]  }
  0xb8   :  { %1377 = vmatpush1.bf16.msra.mxu0 %v4154_v56  ;;  %1402 = vmatpush1.bf16.msra.mxu1 %v4156_v17  ;;  %v4177_v17 = vld [vmem:[#allocation9 + $0x1f4] ss:$24 sps:$4 sm:$0xff]  }
  0xb9   :  { %1403 = vmatprep.subr.bf16.mxu1 %v4160_v54  ;;  %1498 = vmatprep.subr.bf16.mxu0 %v3861_v34  ;;  %v4183_v54 = vld [vmem:[#allocation9 + $0x1f0] ss:$24 sps:$4 sm:$0xff]   ;;  %v2071_v34 = vsel %vm2062_vm3, 1, %v6118_v45 }
  0xba   :  { %2073 = vperm.xlu0 %3066, %v2071_v34   ;;  %v4203_v34 = vld [vmem:[#allocation9 + $0x284] ss:$24 sps:$4 sm:$0xff]  }
  0xbb   :  { %1379 = vmatmul.mubr.bf16.vlgmr.msra.gmra.mrb[32].mxu0 %v4055_v51 }
  0xbc   :  { %1404 = vmatpush1.bf16.msra.mxu1 %v4164_v0  ;;  %1499 = vmatpush1.bf16.msra.mxu0 %v3865_v37  ;;  %v4187_v0 = vld [vmem:[#allocation9 + $0x224] ss:$24 sps:$4 sm:$0xff]   ;;  %v4192_v37 = vld [vmem:[#allocation9 + $0x220] ss:$24 sps:$4 sm:$0xff]  }
  0xbd   :  { %1405 = vmatprep.subr.bf16.mxu1 %v4167_v4  ;;  %1500 = vmatprep.subr.bf16.mxu0 %v3868_v39  ;;  %v4195_v39 = vld [vmem:[#allocation9 + $0x254] ss:$24 sps:$4 sm:$0xff]  }
  0xc0   :  { %1406 = vmatpush1.bf16.msra.mxu1 %v4174_v15  ;;  %1501 = vmatpush1.bf16.msra.mxu0 %v3873_v41  ;;  %v4208_v41 = vld [vmem:[#allocation9 + $0x280] ss:$24 sps:$4 sm:$0xff]  }
  0xc1   :  { %1407 = vmatprep.subr.bf16.mxu1 %v4177_v17  ;;  %1502 = vmatprep.subr.bf16.mxu0 %v3876_v43  ;;  %v4211_v43 = vld [vmem:[#allocation9 + $0x2b4] ss:$24 sps:$4 sm:$0xff]  }
  0xc4   :  { %1408 = vmatpush1.bf16.msra.mxu1 %v4183_v54  ;;  %1503 = vmatpush1.bf16.msra.mxu0 %v3883_v46  ;;  %v4216_v46 = vld [vmem:[#allocation9 + $0x2b0] ss:$24 sps:$4 sm:$0xff]  }
  0xc5   :  { %1409 = vmatprep.subr.bf16.mxu1 %v4187_v0  ;;  %1504 = vmatprep.subr.bf16.mxu0 %v3886_v48  ;;  %v4219_v48 = vld [vmem:[#allocation9 + $0x2e4] ss:$24 sps:$4 sm:$0xff]  }
  0xc8   :  { %1410 = vmatpush1.bf16.msra.mxu1 %v4192_v37  ;;  %1505 = vmatpush1.bf16.msra.mxu0 %v3889_v50  ;;  %v4224_v50 = vld [vmem:[#allocation9 + $0x2e0] ss:$24 sps:$4 sm:$0xff]  }
  0xc9   :  { %1411 = vmatprep.subr.bf16.mxu1 %v4195_v39  ;;  %1506 = vmatprep.subr.bf16.mxu0 %v3894_v52  ;;  %v6119_v52 = vld [vmem:[#allocation21_spill] sm:$0xff] }
  0xcc   :  { %1412 = vmatpush1.bf16.msra.mxu1 %v4200_v58  ;;  %1507 = vmatpush1.bf16.msra.mxu0 %v3901_v55  ;;  %v6120_v55 = vld [vmem:[#allocation25_spill] sm:$0xff] }
  0xcd   :  { %1413 = vmatprep.subr.bf16.mxu1 %v4203_v34  ;;  %1508 = vmatprep.subr.bf16.mxu0 %v3904_v57  ;;  %v6121_v57 = vld [vmem:[#allocation27_spill] sm:$0xff] }
  0xd0   :  { %1414 = vmatpush1.bf16.msra.mxu1 %v4208_v41  ;;  %1509 = vmatpush1.bf16.msra.mxu0 %v3907_v59  ;;  %v6122_v59 = vld [vmem:[#allocation29_spill] sm:$0xff] }
  0xd1   :  { %1415 = vmatprep.subr.bf16.mxu1 %v4211_v43  ;;  %1510 = vmatprep.subr.bf16.mxu0 %v3912_v61  ;;  %v6123_v61 = vld [vmem:[#allocation31_spill] sm:$0xff] }
  0xd4   :  { %1416 = vmatpush1.bf16.msra.mxu1 %v4216_v46  ;;  %1511 = vmatpush1.bf16.msra.mxu0 %v3919_v1  ;;  %v6124_v1 = vld [vmem:[#allocation33_spill] sm:$0xff] }
  0xd5   :  { %1417 = vmatprep.subr.bf16.mxu1 %v4219_v48  ;;  %1512 = vmatprep.subr.bf16.mxu0 %v3922_v3  ;;  %v6125_v3 = vld [vmem:[#allocation35_spill] sm:$0xff] }
  0xd8   :  { %1418 = vmatpush1.bf16.msra.mxu1 %v4224_v50  ;;  %1513 = vmatpush1.bf16.msra.mxu0 %v3925_v5  ;;  %v6126_v5 = vld [vmem:[#allocation37_spill] sm:$0xff] }
  0xd9   :  { %1539 = vmatprep.subr.bf16.mxu1 %v3932_v7  ;;  %1514 = vmatprep.subr.bf16.mxu0 %v3929_v6  ;;  %v6127_v6 = vld [vmem:[#allocation41_spill] sm:$0xff]  ;;  %v6128_v7 = vld [vmem:[#allocation43_spill] sm:$0xff] }
  0xdb   :  { %1420 = vmatmul.mubr.bf16.vlgmr.msra.gmra.mrb[20].mxu1 %v4055_v51 }
  0xdc   :  { %1540 = vmatpush1.bf16.msra.mxu1 %v3938_v9  ;;  %1515 = vmatpush1.bf16.msra.mxu0 %v3935_v8  ;;  %v6129_v8 = vld [vmem:[#allocation17_spill] sm:$0xff]  ;;  %v130_v9 = vlaneseq }
  0xdd   :  { %1541 = vmatprep.subr.bf16.mxu1 %v3944_v11  ;;  %1516 = vmatprep.subr.bf16.mxu0 %v3940_v10 }
  0xde   :  { %v4282_v10 = vshrl.u32 %v130_v9, 7 }
  0xe0   :  { %1542 = vmatpush1.bf16.msra.mxu1 %v3949_v13  ;;  %1517 = vmatpush1.bf16.msra.mxu0 %v3947_v12  ;;  %v5909_v11 = vsub.s32 3, %v4282_v10  ;;  %v4288_v12 = vld [vmem:[%s5860_s4] sm:$0x3f]  ;;  %v5910_v13 = vsub.s32 2, %v4282_v10 }
  0xe1   :  { %1543 = vmatprep.subr.bf16.mxu1 %v3962_v16  ;;  %1518 = vmatprep.subr.bf16.mxu0 %v3953_v14  ;;  %v5911_v14 = vsub.s32 0, %v4282_v10  ;;  %v5912_v16 = vsub.s32 1, %v4282_v10 }
  0xe4   :  { %1544 = vmatpush1.bf16.msra.mxu1 %v3974_v19  ;;  %1519 = vmatpush1.bf16.msra.mxu0 %v3969_v18  ;;  %v4296_v18 = vrot.slane %v4288_v12, %v5909_v11  ;;  %v4301_v19 = vrot.slane %v4288_v12, %v5910_v13 }
  0xe5   :  { %1545 = vmatprep.subr.bf16.mxu1 %v3980_v21  ;;  %1520 = vmatprep.subr.bf16.mxu0 %v3978_v20  ;;  %v4306_v20 = vrot.slane %v4288_v12, %v5911_v14 }
  0xe8   :  { %1546 = vmatpush1.bf16.msra.mxu1 %v3987_v23  ;;  %1521 = vmatpush1.bf16.msra.mxu0 %v3982_v22  ;;  %v4315_v23 = vrot.slane %v4288_v12, %v5912_v16 }
  0xe9   :  { %1547 = vmatprep.subr.bf16.mxu1 %v3993_v25  ;;  %1522 = vmatprep.subr.bf16.mxu0 %v3989_v24 }
  0xec   :  { %1548 = vmatpush1.bf16.msra.mxu1 %v4000_v27  ;;  %1523 = vmatpush1.bf16.msra.mxu0 %v3996_v26 }
  0xed   :  { %1549 = vmatprep.subr.bf16.mxu1 %v4006_v29  ;;  %1524 = vmatprep.subr.bf16.mxu0 %v4004_v28 }
  0xf0   :  { %1550 = vmatpush1.bf16.msra.mxu1 %v4013_v31  ;;  %1525 = vmatpush1.bf16.msra.mxu0 %v4008_v30 }
  0xf1   :  { %1551 = vmatprep.subr.bf16.mxu1 %v4019_v33  ;;  %1526 = vmatprep.subr.bf16.mxu0 %v4015_v32 }
  0xf4   :  { %1552 = vmatpush1.bf16.msra.mxu1 %v4026_v36  ;;  %1527 = vmatpush1.bf16.msra.mxu0 %v4022_v35 }
  0xf5   :  { %1553 = vmatprep.subr.bf16.mxu1 %v4032_v40  ;;  %1528 = vmatprep.subr.bf16.mxu0 %v4030_v38 }
  0xf8   :  { %1554 = vmatpush1.bf16.msra.mxu1 %v4039_v44  ;;  %1529 = vmatpush1.bf16.msra.mxu0 %v4034_v42 }
  0xf9   :  { %1555 = vmatprep.subr.bf16.mxu1 %v4048_v47  ;;  %1580 = vmatprep.subr.bf16.mxu0 %v4050_v49 }
  0xfc   :  { %1556 = vmatpush1.bf16.msra.mxu1 %v4059_v53 }
  0xfd   :  { %1557 = vmatprep.subr.bf16.mxu1 %v6119_v52 }
 0x100   :  { %1558 = vmatpush1.bf16.msra.mxu1 %v4072_v60 }
 0x101   :  { %1559 = vmatprep.subr.bf16.mxu1 %v4083_v2 }
 0x104   :  { %1560 = vmatpush1.bf16.msra.mxu1 %v6120_v55 }
 0x105   :  { %1561 = vmatprep.subr.bf16.mxu1 %v6121_v57 }
 0x108   :  { %1562 = vmatpush1.bf16.msra.mxu1 %v6122_v59 }
 0x109   :  { %1563 = vmatprep.subr.bf16.mxu1 %v6123_v61 }
 0x10c   :  { %1564 = vmatpush1.bf16.msra.mxu1 %v6124_v1 }
 0x10d   :  { %1565 = vmatprep.subr.bf16.mxu1 %v6125_v3 }
 0x110   :  { %1566 = vmatpush1.bf16.msra.mxu1 %v6126_v5 }
 0x111   :  { %1567 = vmatprep.subr.bf16.mxu1 %v4136_v62 }
 0x114   :  { %1568 = vmatpush1.bf16.msra.mxu1 %v6127_v6 }
 0x115   :  { %1569 = vmatprep.subr.bf16.mxu1 %v6128_v7 }
 0x118   :  { %1570 = vmatpush1.bf16.msra.mxu1 %v4154_v56 }
 0x119   :  { %1693 = vmatprep.subr.bf16.mxu1 %v6129_v8 }
 0x12e   :  { %v4308_v21 = vpop.f32.mrb[0].mxu1  ;;  %v4310_v22 = vpop.f32.mrb[0].mxu0 }
 0x12f   :  { %v533_v24 = vpop.f32.mrb[1].mxu1  ;;  %v4317_v25 = vpop.f32.mrb[1].mxu0 }
 0x130   :  { %v4320_v27 = vadd.f32 %v533_v24, %v4296_v18  ;;  %v535_v29 = vpop.f32.mrb[2].mxu1  ;;  %v462_v51 = vpop.f32.mrb[2].mxu0  ;;  %v461_v62 = vadd.f32 %v4317_v25, %v4315_v23 }
 0x131   :  { %v4323_v8 = vadd.f32 %v535_v29, %v4301_v19  ;;  %v537_v9 = vpop.f32.mrb[3].mxu1  ;;  %v4326_v11 = vadd.f32 %v462_v51, %v4306_v20  ;;  %v464_v13 = vpop.f32.mrb[3].mxu0 }
 0x132   :  { %6130 = vst [vmem:[#allocation21_spill] sm:$0xff] %v4320_v27  ;;  %v4329_v14 = vadd.f32 %v537_v9, %v4296_v18  ;;  %v4332_v16 = vadd.f32 %v464_v13, %v4315_v23 }
 0x133   :  { %6131 = vst [vmem:[#allocation17_spill] sm:$0xff] %v4323_v8  ;;  %6132 = vst [vmem:[#allocation49_spill] sm:$0xff] %v4326_v11 }
 0x134   :  { %6133 = vst [vmem:[#allocation50_spill] sm:$0xff] %v4329_v14  ;;  %6134 = vst [vmem:[#allocation51_spill] sm:$0xff] %v4332_v16 }
 0x136   :  { %v468_v56 = vpop.f32.mrb[4].mxu0  ;;  %v541_v7 = vpop.f32.mrb[4].mxu1 }
 0x137   :  { %v4335_v24 = vadd.f32 %v468_v56, %v4306_v20  ;;  %v470_v27 = vpop.f32.mrb[5].mxu0  ;;  %v4338_v29 = vadd.f32 %v541_v7, %v4301_v19  ;;  %v543_v8 = vpop.f32.mrb[5].mxu1 }
 0x138   :  { %v4341_v51 = vadd.f32 %v470_v27, %v4315_v23  ;;  %v472_v11 = vpop.f32.mrb[6].mxu0  ;;  %v4344_v9 = vadd.f32 %v543_v8, %v4296_v18  ;;  %v545_v14 = vpop.f32.mrb[6].mxu1 }
 0x139   :  { %6135 = vst [vmem:[#allocation52_spill] sm:$0xff] %v4335_v24  ;;  %6136 = vst [vmem:[#allocation53_spill] sm:$0xff] %v4338_v29  ;;  %v4347_v13 = vadd.f32 %v472_v11, %v4306_v20  ;;  %v474_v16 = vpop.f32.mrb[7].mxu0  ;;  %v4350_v56 = vadd.f32 %v545_v14, %v4301_v19  ;;  %v547_v24 = vpop.f32.mrb[7].mxu1 }
 0x13a   :  { %6137 = vst [vmem:[#allocation54_spill] sm:$0xff] %v4341_v51  ;;  %6138 = vst [vmem:[#allocation55_spill] sm:$0xff] %v4344_v9  ;;  %v4353_v7 = vadd.f32 %v474_v16, %v4315_v23  ;;  %v4356_v29 = vadd.f32 %v547_v24, %v4296_v18 }
 0x13b   :  { %6139 = vst [vmem:[#allocation56_spill] sm:$0xff] %v4347_v13  ;;  %6140 = vst [vmem:[#allocation57_spill] sm:$0xff] %v4350_v56 }
 0x13c   :  { %6141 = vst [vmem:[#allocation58_spill] sm:$0xff] %v4353_v7  ;;  %6142 = vst [vmem:[#allocation59_spill] sm:$0xff] %v4356_v29 }
 0x13e   :  { %v478_v27 = vpop.f32.mrb[8].mxu0  ;;  %v551_v51 = vpop.f32.mrb[8].mxu1 }
 0x13f   :  { %v4359_v8 = vadd.f32 %v478_v27, %v4306_v20  ;;  %v480_v9 = vpop.f32.mrb[9].mxu0  ;;  %v4362_v11 = vadd.f32 %v551_v51, %v4301_v19  ;;  %v553_v13 = vpop.f32.mrb[9].mxu1 }
 0x140   :  { %v4365_v14 = vadd.f32 %v480_v9, %v4315_v23  ;;  %v482_v56 = vpop.f32.mrb[10].mxu0  ;;  %v4368_v16 = vadd.f32 %v553_v13, %v4296_v18  ;;  %v555_v7 = vpop.f32.mrb[10].mxu1 }
 0x141   :  { %6143 = vst [vmem:[#allocation60_spill] sm:$0xff] %v4359_v8  ;;  %6144 = vst [vmem:[#allocation61_spill] sm:$0xff] %v4362_v11  ;;  %v4371_v24 = vadd.f32 %v482_v56, %v4306_v20  ;;  %v484_v29 = vpop.f32.mrb[11].mxu0  ;;  %v4374_v27 = vadd.f32 %v555_v7, %v4301_v19  ;;  %v557_v8 = vpop.f32.mrb[11].mxu1 }
 0x142   :  { %6145 = vst [vmem:[#allocation62_spill] sm:$0xff] %v4365_v14  ;;  %6146 = vst [vmem:[#allocation63_spill] sm:$0xff] %v4368_v16  ;;  %v4377_v51 = vadd.f32 %v484_v29, %v4315_v23  ;;  %v4380_v11 = vadd.f32 %v557_v8, %v4296_v18 }
 0x143   :  { %6147 = vst [vmem:[#allocation64_spill] sm:$0xff] %v4371_v24  ;;  %6148 = vst [vmem:[#allocation65_spill] sm:$0xff] %v4374_v27 }
 0x144   :  { %6149 = vst [vmem:[#allocation66_spill] sm:$0xff] %v4377_v51  ;;  %6150 = vst [vmem:[#allocation67_spill] sm:$0xff] %v4380_v11  ;;  %v5914_v51 = vsub.s32 5, %v4282_v10 }
 0x146   :  { %v488_v9 = vpop.f32.mrb[12].mxu0  ;;  %v561_v14 = vpop.f32.mrb[12].mxu1 }
 0x147   :  { %v4383_v13 = vadd.f32 %v488_v9, %v4306_v20  ;;  %v490_v16 = vpop.f32.mrb[13].mxu0  ;;  %v4387_v24 = vadd.f32 %v561_v14, %v4301_v19  ;;  %v563_v7 = vpop.f32.mrb[13].mxu1 }
 0x148   :  { %v4390_v27 = vadd.f32 %v490_v16, %v4315_v23  ;;  %v492_v29 = vpop.f32.mrb[14].mxu0  ;;  %v4394_v8 = vadd.f32 %v563_v7, %v4296_v18  ;;  %v565_v11 = vpop.f32.mrb[14].mxu1  ;;  %v6158_v16 = vsub.s32 4, %v4282_v10  ;;  %v4413_v7 = vrot.slane %v4288_v12, %v5914_v51 }
 0x149   :  { %6151 = vst [vmem:[#allocation68_spill] sm:$0xff] %v4383_v13  ;;  %6152 = vst [vmem:[#allocation69_spill] sm:$0xff] %v4387_v24  ;;  %v4397_v9 = vadd.f32 %v492_v29, %v4306_v20  ;;  %v494_v13 = vpop.f32.mrb[15].mxu0  ;;  %v4400_v56 = vadd.f32 %v565_v11, %v4301_v19  ;;  %v567_v14 = vpop.f32.mrb[15].mxu1 }
 0x14a   :  { %6153 = vst [vmem:[#allocation70_spill] sm:$0xff] %v4390_v27  ;;  %6154 = vst [vmem:[#allocation71_spill] sm:$0xff] %v4394_v8  ;;  %v4403_v24 = vadd.f32 %v494_v13, %v4315_v23  ;;  %v4408_v27 = vrot.slane %v4288_v12, %v6158_v16  ;;  %v6178_v23 = vsub.s32 3, %v4282_v10 }
 0x14b   :  { %6155 = vst [vmem:[#allocation72_spill] sm:$0xff] %v4397_v9  ;;  %6156 = vst [vmem:[#allocation73_spill] sm:$0xff] %v4400_v56 }
 0x14c   :  { %6157 = vst [vmem:[#allocation74_spill] sm:$0xff] %v4403_v24 }
 0x14e   :  { %v604_v29 = vpop.f32.mrb[16].mxu0 }
 0x14f   :  { %v4416_v9 = vadd.f32 %v604_v29, %v4408_v27  ;;  %v606_v11 = vpop.f32.mrb[17].mxu0 }
 0x150   :  { %v4419_v56 = vadd.f32 %v606_v11, %v4413_v7  ;;  %v608_v13 = vpop.f32.mrb[18].mxu0 }
 0x151   :  { %6159 = vst [vmem:[#allocation75_spill] sm:$0xff] %v4416_v9  ;;  %v4422_v24 = vadd.f32 %v608_v13, %v4408_v27  ;;  %v610_v8 = vpop.f32.mrb[19].mxu0 }
 0x152   :  { %6160 = vst [vmem:[#allocation76_spill] sm:$0xff] %v4419_v56  ;;  %v4425_v16 = vadd.f32 %v610_v8, %v4413_v7 }
 0x153   :  { %6161 = vst [vmem:[#allocation77_spill] sm:$0xff] %v4422_v24 }
 0x154   :  { %6162 = vst [vmem:[#allocation78_spill] sm:$0xff] %v4425_v16 }
 0x156   :  { %v614_v6 = vpop.f32.mrb[20].mxu0 }
 0x157   :  { %v4428_v12 = vadd.f32 %v614_v6, %v4408_v27  ;;  %v616_v51 = vpop.f32.mrb[21].mxu0 }
 0x158   :  { %v4431_v29 = vadd.f32 %v616_v51, %v4413_v7  ;;  %v618_v9 = vpop.f32.mrb[22].mxu0 }
 0x159   :  { %6163 = vst [vmem:[#allocation79_spill] sm:$0xff] %v4428_v12  ;;  %v4434_v11 = vadd.f32 %v618_v9, %v4408_v27  ;;  %v620_v56 = vpop.f32.mrb[23].mxu0 }
 0x15a   :  { %6164 = vst [vmem:[#allocation80_spill] sm:$0xff] %v4431_v29  ;;  %v4437_v13 = vadd.f32 %v620_v56, %v4413_v7 }
 0x15b   :  { %6165 = vst [vmem:[#allocation81_spill] sm:$0xff] %v4434_v11 }
 0x15c   :  { %6166 = vst [vmem:[#allocation82_spill] sm:$0xff] %v4437_v13 }
 0x15e   :  { %v624_v24 = vpop.f32.mrb[24].mxu0 }
 0x15f   :  { %v4440_v8 = vadd.f32 %v624_v24, %v4408_v27  ;;  %v626_v16 = vpop.f32.mrb[25].mxu0  ;;  %v4457_v24 = vld [vmem:[%s5861_s5] sm:$0x3f]  ;;  %s3766_s5 = smov [#allocation11]  }
 0x160   :  { %v4443_v6 = vadd.f32 %v626_v16, %v4413_v7  ;;  %v628_v12 = vpop.f32.mrb[26].mxu0  ;;  %s2856_s27 = sshll.u32 %s3766_s5, 4  ;;  %s2857_s27 = int_to_ptr.vmem [resolvable:$true] %s2856_s27 }
 0x161   :  { %6167 = vst [vmem:[#allocation83_spill] sm:$0xff] %v4440_v8  ;;  %v4446_v51 = vadd.f32 %v628_v12, %v4408_v27  ;;  %v630_v29 = vpop.f32.mrb[27].mxu0  ;;  %s3706_s28 = scalar_lea.vmem %s2857_s27, 256  ;;  %p3711_p11 = scmp.lt.s32.totalorder %s2857_s27, %s2857_s27 }
 0x162   :  { %6168 = vst [vmem:[#allocation84_spill] sm:$0xff] %v4443_v6  ;;  %v4449_v9 = vadd.f32 %v630_v29, %v4413_v7  ;;  %v6173_v29 = vsub.s32 0, %v4282_v10  ;;  %p3707_p10 = scmp.ne.s32.totalorder %s2857_s27, %s3706_s28  ;;  %p3712_p12 = scmp.lt.s32.totalorder %s3706_s28, %s3706_s28 }
 0x163   :  { %6169 = vst [vmem:[#allocation85_spill] sm:$0xff] %v4446_v51 }
 0x164   :  { %6170 = vst [vmem:[#allocation86_spill] sm:$0xff] %v4449_v9  ;;  %v4469_v8 = vrot.slane %v4457_v24, %v6173_v29  ;;  %p3713_p13 = por %p3712_p12, %p3711_p11 }
 0x166   :  { %v634_v11 = vpop.f32.mrb[28].mxu0  ;;  %6174 = vst [vmem:[#allocation89_spill] sm:$0xff] %v4469_v8  ;;  %p3714_p0 = pnand %p3713_p13, %p3707_p10 }
 0x167   :  { %v4452_v56 = vadd.f32 %v634_v11, %v4408_v27  ;;  %v636_v13 = vpop.f32.mrb[29].mxu0  ;;  %v6175_v11 = vsub.s32 1, %v4282_v10 }
 0x168   :  { %v4460_v16 = vadd.f32 %v636_v13, %v4413_v7  ;;  %v4462_v6 = vpop.f32.mrb[30].mxu0 }
 0x169   :  { %6171 = vst [vmem:[#allocation87_spill] sm:$0xff] %v4452_v56  ;;  %v4464_v12 = vpop.f32.mrb[31].mxu0  ;;  %v4474_v9 = vrot.slane %v4457_v24, %v6175_v11  ;;  %v459_v56 = vadd.f32 %v4310_v22, %v4306_v20  ;;  %v6177_v22 = vsub.s32 2, %v4282_v10 }
 0x16a   :  { %6172 = vst [vmem:[#allocation88_spill] sm:$0xff] %v4460_v16 }
 0x16b   :  { %6176 = vst [vmem:[#allocation90_spill] sm:$0xff] %v4474_v9 }
 0x16e   :  { %v1339_v51 = vpop.f32.mrb[16].mxu1 }
 0x16f   :  { %v1340_v13 = vadd.f32 %v1339_v51, %v4469_v8  ;;  %v1341_v16 = vpop.f32.mrb[17].mxu1  ;;  %v4485_v51 = vrot.slane %v4457_v24, %v6177_v22 }
 0x170   :  { %v1342_v5 = vadd.f32 %v1341_v16, %v4474_v9  ;;  %v1343_v3 = vpop.f32.mrb[18].mxu1 }
 0x171   :  { %v1435_v29 = vadd.f32 %v1340_v13, %v459_v56  ;;  %v1344_v1 = vpop.f32.mrb[19].mxu1  ;;  %v4490_v3 = vrot.slane %v4457_v24, %v6178_v23  ;;  %v532_v56 = vadd.f32 %v4308_v21, %v4301_v19  ;;  %v1868_v21 = vsel %vm1866_vm6, 1, %v6118_v45 }
 0x172   :  { %v1442_v61 = vadd.f32 %v1342_v5, %v461_v62 }
 0x173   :  { %v3022_v59 = vmul.f32 -1.442695, %v1435_v29 }
 0x174   :  { %v3023_v11 = vmul.f32 -1.442695, %v1442_v61 }
 0x175   :  { %3288 = vpow2.f32 %v3022_v59 }
 0x176   :  { %3290 = vpow2.f32 %v3023_v11 }
 0x17f   :  { %v3289_v57 = vpop.eup %3288 }
 0x180   :  { %v1439_v55 = vadd.f32 1.0, %v3289_v57  ;;  %v3291_v20 = vpop.eup %3290  ;;  %v568_v57 = vadd.f32 %v567_v14, %v4296_v18  ;;  %v1681_v18 = vsel %vm1672_vm4, 1, %v6118_v45  ;;  %v1673_v14 = vsel %vm1671_vm5, 1, %v6118_v45 }
 0x181   :  { %v1446_v1 = vadd.f32 1.0, %v3291_v20  ;;  %1683 = vperm.xlu1 %3067, %v1681_v18  }
 0x182   :  { %3292 = vrcp.f32 %v1439_v55 }
 0x183   :  { %3294 = vrcp.f32 %v1446_v1 }
 0x185   :  { %1675 = vperm.xlu1 %3067, %v1673_v14  }
 0x189   :  { %1870 = vperm.xlu1 %3067, %v1868_v21   ;;  %v641_v21 = vadd.f32 %v4464_v12, %v4413_v7 }
 0x18c   :  { %v3293_v5 = vpop.eup %3292 }
 0x18d   :  { %v3295_v20 = vpop.eup %3294 }
 0x18e   :  { %v1380_v62 = vpop.f32.mrb[32].mxu0  ;;  %v1452_v19 = vsub.f32 1.0, %v3295_v20 }
 0x18f   :  { %v1381_v59 = vadd.f32 %v1380_v62, %v4485_v51  ;;  %v1382_v61 = vpop.f32.mrb[33].mxu0 }
 0x190   :  { %v1383_v55 = vadd.f32 %v1382_v61, %v4490_v3  ;;  %v1384_v25 = vpop.f32.mrb[34].mxu0 }
 0x191   :  { %v1449_v16 = vmul.f32 %v3293_v5, %v1381_v59  ;;  %v1385_v13 = vpop.f32.mrb[35].mxu0  ;;  %v6179_v59 = vld [vmem:[#allocation19_spill] sm:$0xff]  ;;  %v6181_v25 = vsub.s32 4, %v4282_v10 }
 0x192   :  { %v1456_v29 = vadd.f32 %v1383_v55, %v568_v57  ;;  %v1454_v61 = vmul.f32 %v3295_v20, %v6179_v59  ;;  %v2063_v57 = vsel %vm2061_vm7, 1, %v6118_v45 }
 0x193   :  { %v1450_v11 = vadd.f32 %v1449_v16, %v532_v56  ;;  %2065 = vperm.xlu1 %3067, %v2063_v57   ;;  %v4511_v56 = vrot.slane %v4457_v24, %v6181_v25  ;;  %v6182_v16 = vsub.s32 5, %v4282_v10 }
 0x194   :  { %v3024_v22 = vmul.f32 -1.442695, %v1456_v29  ;;  %v639_v29 = vadd.f32 %v4462_v6, %v4408_v27  ;;  %v4524_v27 = vpop.permute.xlu0 %1488 }
 0x195   :  { %3296 = vtanh.f32 %v1450_v11  ;;  %v4516_v63 = vrot.slane %v4457_v24, %v6182_v16  ;;  %6183 = vst [vmem:[#allocation91_spill] sm:$0xff] %v4524_v27  ;;  %v6185_v16 = vld [vmem:[#allocation18_spill] sm:$0xff]  ;;  %vm1490_vm9 = vcmp.eq.s32.totalorder %v4524_v27, 1 }
 0x196   :  { %3298 = vpow2.f32 %v3024_v22  ;;  %v4694_v27 = vld [vmem:[#allocation9 + $0xfc] ss:$24 sps:$4 sm:$0xff]  }
 0x19f   :  { %v3297_v23 = vpop.eup %3296 }
 0x1a0   :  { %v3299_v1 = vpop.eup %3298  ;;  %v1453_v62 = vmul.f32 %v3297_v23, %v1452_v19 }
 0x1a1   :  { %v1460_v55 = vadd.f32 1.0, %v3299_v1 }
 0x1a2   :  { %v4505_v5 = vadd.f32 %v1454_v61, %v1453_v62  ;;  %v4526_v61 = vpop.permute.xlu0 %1481 }
 0x1a3   :  { %3300 = vrcp.f32 %v1460_v55  ;;  %6184 = vst [vmem:[#allocation92_spill] sm:$0xff] %v4526_v61  ;;  %vm1483_vm8 = vcmp.eq.s32.totalorder %v4526_v61, 1  ;;  %v4621_v61 = vld [vmem:[#allocation9 + $0x1b4] ss:$24 sps:$4 sm:$0xff]  }
 0x1a4   :  { %6180 = vst [vmem:[#allocation19_spill] sm:$0xff] %v4505_v5 }
 0x1ad   :  { %v3301_v14 = vpop.eup %3300 }
 0x1ae   :  { %v1421_v13 = vpop.f32.mrb[20].mxu1 }
 0x1af   :  { %v1422_v11 = vadd.f32 %v1421_v13, %v4511_v56  ;;  %v1423_v45 = vpop.f32.mrb[21].mxu1  ;;  %v4535_v13 = vsel %vm1483_vm8, %v4505_v5, %v6179_v59  ;;  %v6186_v59 = vld [vmem:[#allocation20_spill] sm:$0xff] }
 0x1b0   :  { %v1424_v22 = vadd.f32 %v1423_v45, %v4516_v63  ;;  %v1425_v18 = vpop.f32.mrb[22].mxu1  ;;  %v4691_v5 = vld [vmem:[#allocation9 + $0xc8] ss:$24 sps:$4 sm:$0xff]  }
 0x1b1   :  { %v1463_v20 = vadd.f32 %v1422_v11, %v639_v29  ;;  %v1426_v19 = vpop.f32.mrb[23].mxu1  ;;  %v6187_v18 = vld [vmem:[#allocation22_spill] sm:$0xff] }
 0x1b2   :  { %v1470_v10 = vmul.f32 %v3301_v14, %v1424_v22  ;;  %v4548_v22 = vpack.c.bf16 %v4535_v13, %v4535_v13  ;;  %v4554_v14 = vld [vmem:[#allocation9] ss:$24 sps:$4 sm:$0xff]  }
 0x1b3   :  { %v3025_v23 = vmul.f32 -1.442695, %v1463_v20  ;;  %v4557_v20 = vld [vmem:[#allocation9 + $0x34] ss:$24 sps:$4 sm:$0xff]   ;;  %v6188_v19 = vld [vmem:[#allocation23_spill] sm:$0xff] }
 0x1b4   :  { %v1471_v24 = vadd.f32 %v1470_v10, %v641_v21  ;;  %v6189_v21 = vld [vmem:[#allocation24_spill] sm:$0xff] }
 0x1b5   :  { %3302 = vpow2.f32 %v3025_v23  ;;  %v4562_v10 = vld [vmem:[#allocation9 + $0x30] ss:$24 sps:$4 sm:$0xff]   ;;  %v4565_v23 = vld [vmem:[#allocation9 + $0x64] ss:$24 sps:$4 sm:$0xff]  }
 0x1bf   :  { %v3303_v1 = vpop.eup %3302 }
 0x1c0   :  { %v1467_v62 = vadd.f32 1.0, %v3303_v1  ;;  %v6191_v1 = vld [vmem:[#allocation28_spill] sm:$0xff] }
 0x1c2   :  { %3304 = vrcp.f32 %v1467_v62  ;;  %v4570_v62 = vld [vmem:[#allocation9 + $0x60] ss:$24 sps:$4 sm:$0xff]  }
 0x1c3   :  { %3306 = vtanh.f32 %v1471_v24  ;;  %v6190_v24 = vld [vmem:[#allocation26_spill] sm:$0xff] }
 0x1cc   :  { %v3305_v6 = vpop.eup %3304 }
 0x1cd   :  { %v1473_v57 = vsub.f32 1.0, %v3305_v6  ;;  %v3307_v55 = vpop.eup %3306  ;;  %v1475_v7 = vmul.f32 %v3305_v6, %v6185_v16  ;;  %v4573_v6 = vld [vmem:[#allocation9 + $0x94] ss:$24 sps:$4 sm:$0xff]  }
 0x1cf   :  { %v1474_v25 = vmul.f32 %v3307_v55, %v1473_v57  ;;  %v6192_v57 = vld [vmem:[#allocation30_spill] sm:$0xff]  ;;  %v6193_v55 = vld [vmem:[#allocation32_spill] sm:$0xff] }
 0x1d1   :  { %v1476_v12 = vadd.f32 %v1475_v7, %v1474_v25  ;;  %v4578_v25 = vld [vmem:[#allocation9 + $0x90] ss:$24 sps:$4 sm:$0xff]   ;;  %v6194_v7 = vld [vmem:[#allocation34_spill] sm:$0xff] }
 0x1d3   :  { %v1491_v29 = vsel %vm1490_vm9, %v1476_v12, 0.0  ;;  %v4542_v11 = vsel %vm1490_vm9, %v1476_v12, %v6185_v16  ;;  %v4581_v16 = vld [vmem:[#allocation9 + $0xc4] ss:$24 sps:$4 sm:$0xff]   ;;  %v6195_v12 = vld [vmem:[#allocation36_spill] sm:$0xff] }
 0x1d4   :  { %1493 = vst [vmem:[#allocation10 + $0x38] sm:$0xff] %v1491_v29  ;;  %v1497_v45 = vpack.c.bf16 %v4542_v11, %v4542_v11  ;;  %v4586_v29 = vld [vmem:[#allocation9 + $0xc0] ss:$24 sps:$4 sm:$0xff]  }
 0x1d6   :  { %1530 = vmatprep.mubr.bf16.mxu0 %v1497_v45  ;;  %1571 = vmatprep.mubr.bf16.mxu1 %v1497_v45 }
 0x1d7   :  { %1531 = vmatmul.mubr.bf16.vlgmr.msra.gmra.mrb[36].mxu0 %v4548_v22  ;;  %1572 = vmatmul.mubr.bf16.vlgmr.msra.gmra.mrb[24].mxu1 %v4548_v22 }
 0x1d8   :  { %1581 = vmatpush1.bf16.msra.mxu0 %v6186_v59  ;;  %1612 = vmatprep.mubr.bf16.mxu0 %v1497_v45  ;;  %v4589_v45 = vld [vmem:[#allocation9 + $0xf4] ss:$24 sps:$4 sm:$0xff]   ;;  %v6196_v59 = vld [vmem:[#allocation38_spill] sm:$0xff] }
 0x1d9   :  { %1582 = vmatprep.subr.bf16.mxu0 %v6187_v18  ;;  %1694 = vmatpush1.bf16.msra.mxu1 %v4554_v14  ;;  %v6197_v18 = vld [vmem:[#allocation40_spill] sm:$0xff] }
 0x1da   :  { %1695 = vmatprep.subr.bf16.mxu1 %v4557_v20 }
 0x1dc   :  { %1583 = vmatpush1.bf16.msra.mxu0 %v6188_v19  ;;  %v4594_v19 = vld [vmem:[#allocation9 + $0xf0] ss:$24 sps:$4 sm:$0xff]  }
 0x1dd   :  { %1584 = vmatprep.subr.bf16.mxu0 %v6189_v21  ;;  %1696 = vmatpush1.bf16.msra.mxu1 %v4562_v10  ;;  %v4597_v21 = vld [vmem:[#allocation9 + $0x124] ss:$24 sps:$4 sm:$0xff]  }
 0x1de   :  { %1697 = vmatprep.subr.bf16.mxu1 %v4565_v23 }
 0x1e0   :  { %1585 = vmatpush1.bf16.msra.mxu0 %v6190_v24  ;;  %v6198_v24 = vld [vmem:[#allocation42_spill] sm:$0xff] }
 0x1e1   :  { %1586 = vmatprep.subr.bf16.mxu0 %v6191_v1  ;;  %1698 = vmatpush1.bf16.msra.mxu1 %v4570_v62  ;;  %v6199_v1 = vld [vmem:[#allocation44_spill] sm:$0xff] }
 0x1e2   :  { %1699 = vmatprep.subr.bf16.mxu1 %v4573_v6 }
 0x1e4   :  { %1587 = vmatpush1.bf16.msra.mxu0 %v6192_v57  ;;  %v4602_v57 = vld [vmem:[#allocation9 + $0x120] ss:$24 sps:$4 sm:$0xff]  }
 0x1e5   :  { %1588 = vmatprep.subr.bf16.mxu0 %v6193_v55  ;;  %1700 = vmatpush1.bf16.msra.mxu1 %v4578_v25  ;;  %v4605_v55 = vld [vmem:[#allocation9 + $0x154] ss:$24 sps:$4 sm:$0xff]  }
 0x1e6   :  { %1701 = vmatprep.subr.bf16.mxu1 %v4581_v16 }
 0x1e8   :  { %1589 = vmatpush1.bf16.msra.mxu0 %v6194_v7  ;;  %v6200_v7 = vld [vmem:[#allocation46_spill] sm:$0xff] }
 0x1e9   :  { %1590 = vmatprep.subr.bf16.mxu0 %v6195_v12  ;;  %1702 = vmatpush1.bf16.msra.mxu1 %v4586_v29  ;;  %v6201_v12 = vld [vmem:[#allocation47_spill] sm:$0xff]  ;;  %6218 = vst [vmem:[#allocation46_spill] sm:$0xff] %v4691_v5 }
 0x1ea   :  { %1703 = vmatprep.subr.bf16.mxu1 %v4589_v45  ;;  %6219 = vst [vmem:[#allocation47_spill] sm:$0xff] %v4694_v27 }
 0x1ec   :  { %1591 = vmatpush1.bf16.msra.mxu0 %v6196_v59  ;;  %v4610_v59 = vld [vmem:[#allocation9 + $0x150] ss:$24 sps:$4 sm:$0xff]  }
 0x1ed   :  { %1592 = vmatprep.subr.bf16.mxu0 %v6197_v18  ;;  %1704 = vmatpush1.bf16.msra.mxu1 %v4594_v19  ;;  %v4613_v18 = vld [vmem:[#allocation9 + $0x184] ss:$24 sps:$4 sm:$0xff]  }
 0x1ee   :  { %1705 = vmatprep.subr.bf16.mxu1 %v4597_v21 }
 0x1f0   :  { %1593 = vmatpush1.bf16.msra.mxu0 %v6198_v24  ;;  %v6202_v24 = vld [vmem:[#allocation48_spill] sm:$0xff] }
 0x1f1   :  { %1594 = vmatprep.subr.bf16.mxu0 %v6199_v1  ;;  %1706 = vmatpush1.bf16.msra.mxu1 %v4602_v57  ;;  %v4618_v1 = vld [vmem:[#allocation9 + $0x180] ss:$24 sps:$4 sm:$0xff]  }
 0x1f2   :  { %1707 = vmatprep.subr.bf16.mxu1 %v4605_v55 }
 0x1f4   :  { %1595 = vmatpush1.bf16.msra.mxu0 %v6200_v7  ;;  %v4626_v7 = vld [vmem:[#allocation9 + $0x1b0] ss:$24 sps:$4 sm:$0xff]  }
 0x1f5   :  { %1596 = vmatprep.subr.bf16.mxu0 %v6201_v12  ;;  %1708 = vmatpush1.bf16.msra.mxu1 %v4610_v59  ;;  %6203 = vst [vmem:[#allocation18_spill] sm:$0xff] %v4626_v7  ;;  %v4629_v12 = vld [vmem:[#allocation9 + $0x1e4] ss:$24 sps:$4 sm:$0xff]  }
 0x1f6   :  { %1709 = vmatprep.subr.bf16.mxu1 %v4613_v18  ;;  %6204 = vst [vmem:[#allocation20_spill] sm:$0xff] %v4629_v12 }
 0x1f8   :  { %1597 = vmatpush1.bf16.msra.mxu0 %v6202_v24  ;;  %v4637_v24 = vld [vmem:[#allocation9 + $0x214] ss:$24 sps:$4 sm:$0xff]  }
 0x1f9   :  { %1598 = vmatprep.subr.bf16.mxu0 %v4167_v4  ;;  %1710 = vmatpush1.bf16.msra.mxu1 %v4618_v1  ;;  %v4634_v4 = vld [vmem:[#allocation9 + $0x1e0] ss:$24 sps:$4 sm:$0xff]   ;;  %6206 = vst [vmem:[#allocation23_spill] sm:$0xff] %v4637_v24 }
 0x1fa   :  { %1711 = vmatprep.subr.bf16.mxu1 %v4621_v61  ;;  %6205 = vst [vmem:[#allocation22_spill] sm:$0xff] %v4634_v4 }
 0x1fc   :  { %1599 = vmatpush1.bf16.msra.mxu0 %v4174_v15  ;;  %v4642_v15 = vld [vmem:[#allocation9 + $0x210] ss:$24 sps:$4 sm:$0xff]  }
 0x1fd   :  { %1600 = vmatprep.subr.bf16.mxu0 %v4177_v17  ;;  %1712 = vmatpush1.bf16.msra.mxu1 %v4626_v7  ;;  %6207 = vst [vmem:[#allocation24_spill] sm:$0xff] %v4642_v15  ;;  %v4645_v17 = vld [vmem:[#allocation9 + $0x244] ss:$24 sps:$4 sm:$0xff]  }
 0x1fe   :  { %1713 = vmatprep.subr.bf16.mxu1 %v4629_v12  ;;  %6208 = vst [vmem:[#allocation26_spill] sm:$0xff] %v4645_v17 }
 0x200   :  { %1601 = vmatpush1.bf16.msra.mxu0 %v4183_v54 }
 0x201   :  { %1602 = vmatprep.subr.bf16.mxu0 %v4187_v0  ;;  %1714 = vmatpush1.bf16.msra.mxu1 %v4634_v4 }
 0x202   :  { %1715 = vmatprep.subr.bf16.mxu1 %v4637_v24 }
 0x204   :  { %1603 = vmatpush1.bf16.msra.mxu0 %v4192_v37 }
 0x205   :  { %1604 = vmatprep.subr.bf16.mxu0 %v4195_v39  ;;  %1716 = vmatpush1.bf16.msra.mxu1 %v4642_v15 }
 0x206   :  { %1717 = vmatprep.subr.bf16.mxu1 %v4645_v17 }
 0x208   :  { %1605 = vmatpush1.bf16.msra.mxu0 %v4200_v58 }
 0x209   :  { %1606 = vmatprep.subr.bf16.mxu0 %v4203_v34  ;;  %1718 = vmatpush1.bf16.msra.mxu1 %v3996_v26  ;;  %v4661_v26 = vld [vmem:[#allocation9 + $0xc] ss:$24 sps:$4 sm:$0xff]  }
 0x20a   :  { %1719 = vmatprep.subr.bf16.mxu1 %v4004_v28  ;;  %6209 = vst [vmem:[#allocation28_spill] sm:$0xff] %v4661_v26  ;;  %v4667_v28 = vld [vmem:[#allocation9 + $0x8] ss:$24 sps:$4 sm:$0xff]  }
 0x20b   :  { %6210 = vst [vmem:[#allocation30_spill] sm:$0xff] %v4667_v28 }
 0x20c   :  { %1607 = vmatpush1.bf16.msra.mxu0 %v4208_v41 }
 0x20d   :  { %1608 = vmatprep.subr.bf16.mxu0 %v4211_v43  ;;  %1720 = vmatpush1.bf16.msra.mxu1 %v4008_v30  ;;  %v4670_v30 = vld [vmem:[#allocation9 + $0x3c] ss:$24 sps:$4 sm:$0xff]  }
 0x20e   :  { %1721 = vmatprep.subr.bf16.mxu1 %v4015_v32  ;;  %6211 = vst [vmem:[#allocation32_spill] sm:$0xff] %v4670_v30  ;;  %v4673_v32 = vld [vmem:[#allocation9 + $0x38] ss:$24 sps:$4 sm:$0xff]  }
 0x20f   :  { %6212 = vst [vmem:[#allocation34_spill] sm:$0xff] %v4673_v32 }
 0x210   :  { %1609 = vmatpush1.bf16.msra.mxu0 %v4216_v46 }
 0x211   :  { %1610 = vmatprep.subr.bf16.mxu0 %v4219_v48  ;;  %1722 = vmatpush1.bf16.msra.mxu1 %v4022_v35  ;;  %v4676_v35 = vld [vmem:[#allocation9 + $0x6c] ss:$24 sps:$4 sm:$0xff]  }
 0x212   :  { %1723 = vmatprep.subr.bf16.mxu1 %v4030_v38  ;;  %6213 = vst [vmem:[#allocation36_spill] sm:$0xff] %v4676_v35  ;;  %v4679_v38 = vld [vmem:[#allocation9 + $0x68] ss:$24 sps:$4 sm:$0xff]  }
 0x213   :  { %6214 = vst [vmem:[#allocation38_spill] sm:$0xff] %v4679_v38 }
 0x214   :  { %1611 = vmatpush1.bf16.msra.mxu0 %v4224_v50 }
 0x215   :  { %1734 = vmatprep.subr.bf16.mxu0 %v4661_v26  ;;  %1724 = vmatpush1.bf16.msra.mxu1 %v4034_v42  ;;  %v4682_v42 = vld [vmem:[#allocation9 + $0x9c] ss:$24 sps:$4 sm:$0xff]  }
 0x216   :  { %1775 = vmatprep.subr.bf16.mxu1 %v4050_v49  ;;  %6215 = vst [vmem:[#allocation40_spill] sm:$0xff] %v4682_v42  ;;  %v4685_v49 = vld [vmem:[#allocation9 + $0x98] ss:$24 sps:$4 sm:$0xff]  }
 0x217   :  { %1613 = vmatmul.mubr.bf16.vlgmr.msra.gmra.mrb[40].mxu0 %v4548_v22  ;;  %6216 = vst [vmem:[#allocation42_spill] sm:$0xff] %v4685_v49  ;;  %v4688_v22 = vld [vmem:[#allocation9 + $0xcc] ss:$24 sps:$4 sm:$0xff]  }
 0x218   :  { %1735 = vmatpush1.bf16.msra.mxu0 %v4667_v28  ;;  %6217 = vst [vmem:[#allocation44_spill] sm:$0xff] %v4688_v22 }
 0x219   :  { %1736 = vmatprep.subr.bf16.mxu0 %v4670_v30 }
 0x21c   :  { %1737 = vmatpush1.bf16.msra.mxu0 %v4673_v32 }
 0x21d   :  { %1738 = vmatprep.subr.bf16.mxu0 %v4676_v35  ;;  %v6234_v35 = vld [vmem:[#allocation71_spill] sm:$0xff] }
 0x220   :  { %1739 = vmatpush1.bf16.msra.mxu0 %v4679_v38 }
 0x221   :  { %1740 = vmatprep.subr.bf16.mxu0 %v4682_v42  ;;  %v6233_v42 = vld [vmem:[#allocation51_spill] sm:$0xff] }
 0x224   :  { %1741 = vmatpush1.bf16.msra.mxu0 %v4685_v49 }
 0x225   :  { %1742 = vmatprep.subr.bf16.mxu0 %v4688_v22  ;;  %v6232_v22 = vld [vmem:[#allocation49_spill] sm:$0xff] }
 0x228   :  { %1743 = vmatpush1.bf16.msra.mxu0 %v4691_v5 }
 0x229   :  { %1744 = vmatprep.subr.bf16.mxu0 %v4694_v27  ;;  %v6220_v27 = vld [vmem:[#allocation25_spill] sm:$0xff] }
 0x22c   :  { %1745 = vmatpush1.bf16.msra.mxu0 %v4013_v31  ;;  %v6221_v31 = vld [vmem:[#allocation27_spill] sm:$0xff] }
 0x22d   :  { %1746 = vmatprep.subr.bf16.mxu0 %v4019_v33  ;;  %v6222_v33 = vld [vmem:[#allocation29_spill] sm:$0xff] }
 0x230   :  { %1747 = vmatpush1.bf16.msra.mxu0 %v4026_v36  ;;  %v6223_v36 = vld [vmem:[#allocation31_spill] sm:$0xff] }
 0x231   :  { %1748 = vmatprep.subr.bf16.mxu0 %v4032_v40  ;;  %v6224_v40 = vld [vmem:[#allocation33_spill] sm:$0xff] }
 0x234   :  { %1749 = vmatpush1.bf16.msra.mxu0 %v4039_v44  ;;  %v6225_v44 = vld [vmem:[#allocation35_spill] sm:$0xff] }
 0x235   :  { %1750 = vmatprep.subr.bf16.mxu0 %v4048_v47  ;;  %v6226_v47 = vld [vmem:[#allocation37_spill] sm:$0xff] }
 0x238   :  { %1751 = vmatpush1.bf16.msra.mxu0 %v4059_v53  ;;  %v6227_v53 = vld [vmem:[#allocation39_spill] sm:$0xff] }
 0x239   :  { %1752 = vmatprep.subr.bf16.mxu0 %v6119_v52  ;;  %v6228_v52 = vld [vmem:[#allocation41_spill] sm:$0xff] }
 0x23c   :  { %1753 = vmatpush1.bf16.msra.mxu0 %v4072_v60  ;;  %v6229_v60 = vld [vmem:[#allocation43_spill] sm:$0xff] }
 0x23d   :  { %1754 = vmatprep.subr.bf16.mxu0 %v4083_v2  ;;  %v6230_v2 = vld [vmem:[#allocation45_spill] sm:$0xff] }
 0x240   :  { %1755 = vmatpush1.bf16.msra.mxu0 %v6220_v27  ;;  %v4718_v27 = vld [vmem:[#allocation9 + $0x4] ss:$24 sps:$4 sm:$0xff]  }
 0x241   :  { %1756 = vmatprep.subr.bf16.mxu0 %v6221_v31  ;;  %6231 = vst [vmem:[#allocation48_spill] sm:$0xff] %v4718_v27 }
 0x244   :  { %1757 = vmatpush1.bf16.msra.mxu0 %v6222_v33 }
 0x245   :  { %1758 = vmatprep.subr.bf16.mxu0 %v6223_v36 }
 0x248   :  { %1759 = vmatpush1.bf16.msra.mxu0 %v6224_v40 }
 0x249   :  { %1760 = vmatprep.subr.bf16.mxu0 %v6225_v44 }
 0x24c   :  { %1761 = vmatpush1.bf16.msra.mxu0 %v6226_v47 }
 0x24d   :  { %1762 = vmatprep.subr.bf16.mxu0 %v6227_v53 }
 0x250   :  { %1763 = vmatpush1.bf16.msra.mxu0 %v6228_v52 }
 0x251   :  { %1764 = vmatprep.subr.bf16.mxu0 %v6229_v60 }
 0x254   :  { %1765 = vmatpush1.bf16.msra.mxu0 %v6230_v2 }
 0x255   :  { %1888 = vmatprep.subr.bf16.mxu0 %v4718_v27 }
 0x2aa   :  { %v1532_v31 = vpop.f32.mrb[36].mxu0  ;;  %v1573_v33 = vpop.f32.mrb[24].mxu1 }
 0x2ab   :  { %v1533_v36 = vadd.f32 %v1532_v31, %v4469_v8  ;;  %v1534_v40 = vpop.f32.mrb[37].mxu0  ;;  %v1575_v44 = vpop.f32.mrb[25].mxu1 }
 0x2ac   :  { %v1535_v47 = vadd.f32 %v1534_v40, %v4474_v9  ;;  %v1576_v53 = vadd.f32 %v1575_v44, %v4490_v3  ;;  %v1536_v5 = vpop.f32.mrb[38].mxu0  ;;  %v1577_v52 = vpop.f32.mrb[26].mxu1 }
 0x2ad   :  { %v1629_v60 = vadd.f32 %v1533_v36, %v6232_v22  ;;  %v1537_v49 = vpop.f32.mrb[39].mxu0  ;;  %v1578_v2 = vpop.f32.mrb[27].mxu1  ;;  %v1574_v5 = vadd.f32 %v1573_v33, %v4485_v51 }
 0x2ae   :  { %v1636_v38 = vadd.f32 %v1535_v47, %v6233_v42  ;;  %v1650_v27 = vadd.f32 %v1576_v53, %v6234_v35  ;;  %v6235_v49 = vld [vmem:[#allocation17_spill] sm:$0xff] }
 0x2af   :  { %v3026_v32 = vmul.f32 -1.442695, %v1629_v60 }
 0x2b0   :  { %v3027_v30 = vmul.f32 -1.442695, %v1636_v38  ;;  %v3028_v42 = vmul.f32 -1.442695, %v1650_v27 }
 0x2b1   :  { %3308 = vpow2.f32 %v3026_v32 }
 0x2b2   :  { %3310 = vpow2.f32 %v3027_v30 }
 0x2bb   :  { %v3309_v31 = vpop.eup %3308 }
 0x2bc   :  { %v1633_v8 = vadd.f32 1.0, %v3309_v31  ;;  %v3311_v40 = vpop.eup %3310 }
 0x2bd   :  { %v1640_v9 = vadd.f32 1.0, %v3311_v40  ;;  %v6237_v40 = vld [vmem:[#allocation87_spill] sm:$0xff] }
 0x2be   :  { %3312 = vrcp.f32 %v1633_v8 }
 0x2bf   :  { %3314 = vrcp.f32 %v1640_v9 }
 0x2c8   :  { %v3313_v44 = vpop.eup %3312 }
 0x2c9   :  { %v1643_v52 = vmul.f32 %v3313_v44, %v1574_v5  ;;  %v3315_v35 = vpop.eup %3314 }
 0x2ca   :  { %v1646_v36 = vsub.f32 1.0, %v3315_v35  ;;  %v1648_v30 = vmul.f32 %v3315_v35, %v4535_v13 }
 0x2cb   :  { %v1644_v22 = vadd.f32 %v1643_v52, %v6235_v49 }
 0x2cd   :  { %3316 = vtanh.f32 %v1644_v22  ;;  %v6238_v22 = vld [vmem:[#allocation88_spill] sm:$0xff] }
 0x2ce   :  { %3318 = vpow2.f32 %v3028_v42 }
 0x2d7   :  { %v3317_v32 = vpop.eup %3316 }
 0x2d8   :  { %v1647_v38 = vmul.f32 %v3317_v32, %v1646_v36  ;;  %v3319_v8 = vpop.eup %3318  ;;  %v4736_v32 = vpop.permute.xlu1 %1683 }
 0x2d9   :  { %v1654_v53 = vadd.f32 1.0, %v3319_v8  ;;  %6239 = vst [vmem:[#allocation27_spill] sm:$0xff] %v4736_v32  ;;  %vm1685_vm11 = vcmp.eq.s32.totalorder %v4736_v32, 1  ;;  %v4839_v32 = vld [vmem:[#allocation9 + $0x1f4] ss:$24 sps:$4 sm:$0xff]  }
 0x2da   :  { %v4730_v47 = vadd.f32 %v1648_v30, %v1647_v38  ;;  %6241 = vst [vmem:[#allocation31_spill] sm:$0xff] %v4839_v32 }
 0x2db   :  { %3320 = vrcp.f32 %v1654_v53 }
 0x2dc   :  { %6236 = vst [vmem:[#allocation25_spill] sm:$0xff] %v4730_v47  ;;  %v4738_v30 = vpop.permute.xlu1 %1675 }
 0x2dd   :  { %6240 = vst [vmem:[#allocation29_spill] sm:$0xff] %v4738_v30  ;;  %vm1677_vm10 = vcmp.eq.s32.totalorder %v4738_v30, 1  ;;  %v4831_v30 = vld [vmem:[#allocation9 + $0x1c4] ss:$24 sps:$4 sm:$0xff]  }
 0x2e5   :  { %v3321_v27 = vpop.eup %3320 }
 0x2ea   :  { %v1614_v33 = vpop.f32.mrb[40].mxu0 }
 0x2eb   :  { %v1615_v60 = vadd.f32 %v1614_v33, %v4511_v56  ;;  %v1616_v9 = vpop.f32.mrb[41].mxu0 }
 0x2ec   :  { %v1617_v2 = vadd.f32 %v1616_v9, %v4516_v63  ;;  %v1618_v31 = vpop.f32.mrb[42].mxu0 }
 0x2ed   :  { %v1657_v5 = vadd.f32 %v1615_v60, %v6237_v40  ;;  %v1619_v44 = vpop.f32.mrb[43].mxu0 }
 0x2ee   :  { %v1664_v52 = vmul.f32 %v3321_v27, %v1617_v2  ;;  %v4747_v2 = vsel %vm1677_vm10, %v4730_v47, %v4535_v13  ;;  %v4764_v13 = vld [vmem:[#allocation9 + $0x10] ss:$24 sps:$4 sm:$0xff]   ;;  %v4772_v44 = vld [vmem:[#allocation9 + $0x40] ss:$24 sps:$4 sm:$0xff]  }
 0x2ef   :  { %v3029_v49 = vmul.f32 -1.442695, %v1657_v5  ;;  %v4760_v5 = vpack.c.bf16 %v4747_v2, %v4747_v2  ;;  %v4836_v47 = vld [vmem:[#allocation9 + $0x1c0] ss:$24 sps:$4 sm:$0xff]  }
 0x2f0   :  { %v1665_v42 = vadd.f32 %v1664_v52, %v6238_v22  ;;  %v4775_v52 = vld [vmem:[#allocation9 + $0x74] ss:$24 sps:$4 sm:$0xff]   ;;  %v4783_v22 = vld [vmem:[#allocation9 + $0xa4] ss:$24 sps:$4 sm:$0xff]  }
 0x2f1   :  { %3322 = vpow2.f32 %v3029_v49  ;;  %v4780_v49 = vld [vmem:[#allocation9 + $0x70] ss:$24 sps:$4 sm:$0xff]  }
 0x2fb   :  { %v3323_v35 = vpop.eup %3322 }
 0x2fc   :  { %v1661_v36 = vadd.f32 1.0, %v3323_v35  ;;  %v4791_v35 = vld [vmem:[#allocation9 + $0xd4] ss:$24 sps:$4 sm:$0xff]  }
 0x2fe   :  { %3324 = vrcp.f32 %v1661_v36  ;;  %v4796_v36 = vld [vmem:[#allocation9 + $0xd0] ss:$24 sps:$4 sm:$0xff]  }
 0x2ff   :  { %3326 = vtanh.f32 %v1665_v42  ;;  %v4788_v42 = vld [vmem:[#allocation9 + $0xa0] ss:$24 sps:$4 sm:$0xff]  }
 0x308   :  { %v3325_v38 = vpop.eup %3324 }
 0x309   :  { %v1667_v8 = vsub.f32 1.0, %v3325_v38  ;;  %v3327_v53 = vpop.eup %3326  ;;  %v1669_v60 = vmul.f32 %v3325_v38, %v4542_v11  ;;  %v4799_v38 = vld [vmem:[#allocation9 + $0x104] ss:$24 sps:$4 sm:$0xff]  }
 0x30b   :  { %v1668_v33 = vmul.f32 %v3327_v53, %v1667_v8  ;;  %v4804_v8 = vld [vmem:[#allocation9 + $0x100] ss:$24 sps:$4 sm:$0xff]   ;;  %v4807_v53 = vld [vmem:[#allocation9 + $0x134] ss:$24 sps:$4 sm:$0xff]  }
 0x30d   :  { %v1670_v9 = vadd.f32 %v1669_v60, %v1668_v33  ;;  %v4812_v33 = vld [vmem:[#allocation9 + $0x130] ss:$24 sps:$4 sm:$0xff]   ;;  %v4815_v60 = vld [vmem:[#allocation9 + $0x164] ss:$24 sps:$4 sm:$0xff]  }
 0x30f   :  { %v1686_v31 = vsel %vm1685_vm11, %v1670_v9, 0.0  ;;  %v4754_v27 = vsel %vm1685_vm11, %v1670_v9, %v4542_v11  ;;  %v4767_v11 = vld [vmem:[#allocation9 + $0x44] ss:$24 sps:$4 sm:$0xff]   ;;  %v4820_v9 = vld [vmem:[#allocation9 + $0x160] ss:$24 sps:$4 sm:$0xff]  }
 0x310   :  { %1688 = vst [vmem:[#allocation10 + $0x30] sm:$0xff] %v1686_v31  ;;  %v1692_v40 = vpack.c.bf16 %v4754_v27, %v4754_v27  ;;  %v4823_v31 = vld [vmem:[#allocation9 + $0x194] ss:$24 sps:$4 sm:$0xff]  }
 0x312   :  { %1725 = vmatprep.mubr.bf16.mxu1 %v1692_v40  ;;  %1766 = vmatprep.mubr.bf16.mxu0 %v1692_v40 }
 0x313   :  { %1726 = vmatmul.mubr.bf16.vlgmr.msra.gmra.mrb[28].mxu1 %v4760_v5  ;;  %1767 = vmatmul.mubr.bf16.vlgmr.msra.gmra.mrb[44].mxu0 %v4760_v5 }
 0x314   :  { %1776 = vmatpush1.bf16.msra.mxu1 %v4764_v13  ;;  %1807 = vmatprep.mubr.bf16.mxu1 %v1692_v40  ;;  %v4828_v40 = vld [vmem:[#allocation9 + $0x190] ss:$24 sps:$4 sm:$0xff]  }
 0x315   :  { %1777 = vmatprep.subr.bf16.mxu1 %v4767_v11  ;;  %1889 = vmatpush1.bf16.msra.mxu0 %v4554_v14 }
 0x316   :  { %1890 = vmatprep.subr.bf16.mxu0 %v4557_v20 }
 0x318   :  { %1778 = vmatpush1.bf16.msra.mxu1 %v4772_v44 }
 0x319   :  { %1779 = vmatprep.subr.bf16.mxu1 %v4775_v52  ;;  %1891 = vmatpush1.bf16.msra.mxu0 %v4562_v10 }
 0x31a   :  { %1892 = vmatprep.subr.bf16.mxu0 %v4565_v23 }
 0x31c   :  { %1780 = vmatpush1.bf16.msra.mxu1 %v4780_v49 }
 0x31d   :  { %1781 = vmatprep.subr.bf16.mxu1 %v4783_v22  ;;  %1893 = vmatpush1.bf16.msra.mxu0 %v4570_v62 }
 0x31e   :  { %1894 = vmatprep.subr.bf16.mxu0 %v4573_v6 }
 0x320   :  { %1782 = vmatpush1.bf16.msra.mxu1 %v4788_v42 }
 0x321   :  { %1783 = vmatprep.subr.bf16.mxu1 %v4791_v35  ;;  %1895 = vmatpush1.bf16.msra.mxu0 %v4578_v25 }
 0x322   :  { %1896 = vmatprep.subr.bf16.mxu0 %v4581_v16 }
 0x324   :  { %1784 = vmatpush1.bf16.msra.mxu1 %v4796_v36 }
 0x325   :  { %1785 = vmatprep.subr.bf16.mxu1 %v4799_v38  ;;  %1897 = vmatpush1.bf16.msra.mxu0 %v4586_v29 }
 0x326   :  { %1898 = vmatprep.subr.bf16.mxu0 %v4589_v45 }
 0x328   :  { %1786 = vmatpush1.bf16.msra.mxu1 %v4804_v8 }
 0x329   :  { %1787 = vmatprep.subr.bf16.mxu1 %v4807_v53  ;;  %1899 = vmatpush1.bf16.msra.mxu0 %v4594_v19 }
 0x32a   :  { %1900 = vmatprep.subr.bf16.mxu0 %v4597_v21 }
 0x32c   :  { %1788 = vmatpush1.bf16.msra.mxu1 %v4812_v33 }
 0x32d   :  { %1789 = vmatprep.subr.bf16.mxu1 %v4815_v60  ;;  %1901 = vmatpush1.bf16.msra.mxu0 %v4602_v57 }
 0x32e   :  { %1902 = vmatprep.subr.bf16.mxu0 %v4605_v55 }
 0x330   :  { %1790 = vmatpush1.bf16.msra.mxu1 %v4820_v9 }
 0x331   :  { %1791 = vmatprep.subr.bf16.mxu1 %v4823_v31  ;;  %1903 = vmatpush1.bf16.msra.mxu0 %v4610_v59 }
 0x332   :  { %1904 = vmatprep.subr.bf16.mxu0 %v4613_v18 }
 0x334   :  { %1792 = vmatpush1.bf16.msra.mxu1 %v4828_v40 }
 0x335   :  { %1793 = vmatprep.subr.bf16.mxu1 %v4831_v30  ;;  %1905 = vmatpush1.bf16.msra.mxu0 %v4618_v1 }
 0x336   :  { %1906 = vmatprep.subr.bf16.mxu0 %v4621_v61 }
 0x338   :  { %1794 = vmatpush1.bf16.msra.mxu1 %v4836_v47 }
 0x339   :  { %1795 = vmatprep.subr.bf16.mxu1 %v4839_v32  ;;  %1907 = vmatpush1.bf16.msra.mxu0 %v4626_v7 }
 0x33a   :  { %1908 = vmatprep.subr.bf16.mxu0 %v4629_v12  ;;  %v4854_v12 = vld [vmem:[#allocation9 + $0x240] ss:$24 sps:$4 sm:$0xff]  }
 0x33b   :  { %6242 = vst [vmem:[#allocation33_spill] sm:$0xff] %v4854_v12 }
 0x33c   :  { %1796 = vmatpush1.bf16.msra.mxu1 %v4183_v54  ;;  %v4862_v54 = vld [vmem:[#allocation9 + $0x270] ss:$24 sps:$4 sm:$0xff]  }
 0x33d   :  { %1797 = vmatprep.subr.bf16.mxu1 %v4187_v0  ;;  %1909 = vmatpush1.bf16.msra.mxu0 %v4634_v4  ;;  %v4857_v0 = vld [vmem:[#allocation9 + $0x274] ss:$24 sps:$4 sm:$0xff]   ;;  %6244 = vst [vmem:[#allocation37_spill] sm:$0xff] %v4862_v54  ;;  %v6285_v4 = vld [vmem:[#allocation67_spill] sm:$0xff] }
 0x33e   :  { %1910 = vmatprep.subr.bf16.mxu0 %v4637_v24  ;;  %6243 = vst [vmem:[#allocation35_spill] sm:$0xff] %v4857_v0  ;;  %v6284_v24 = vld [vmem:[#allocation54_spill] sm:$0xff] }
 0x340   :  { %1798 = vmatpush1.bf16.msra.mxu1 %v4192_v37  ;;  %v4865_v37 = vld [vmem:[#allocation9 + $0x2a4] ss:$24 sps:$4 sm:$0xff]  }
 0x341   :  { %1799 = vmatprep.subr.bf16.mxu1 %v4195_v39  ;;  %1911 = vmatpush1.bf16.msra.mxu0 %v4642_v15  ;;  %6245 = vst [vmem:[#allocation39_spill] sm:$0xff] %v4865_v37  ;;  %v4870_v39 = vld [vmem:[#allocation9 + $0x2a0] ss:$24 sps:$4 sm:$0xff]  }
 0x342   :  { %1912 = vmatprep.subr.bf16.mxu0 %v4645_v17  ;;  %6246 = vst [vmem:[#allocation41_spill] sm:$0xff] %v4870_v39 }
 0x344   :  { %1800 = vmatpush1.bf16.msra.mxu1 %v4200_v58  ;;  %v4873_v58 = vld [vmem:[#allocation9 + $0x2d4] ss:$24 sps:$4 sm:$0xff]  }
 0x345   :  { %1801 = vmatprep.subr.bf16.mxu1 %v4203_v34  ;;  %1913 = vmatpush1.bf16.msra.mxu0 %v4854_v12  ;;  %6247 = vst [vmem:[#allocation43_spill] sm:$0xff] %v4873_v58  ;;  %v4878_v34 = vld [vmem:[#allocation9 + $0x2d0] ss:$24 sps:$4 sm:$0xff]  }
 0x346   :  { %1914 = vmatprep.subr.bf16.mxu0 %v4857_v0  ;;  %6248 = vst [vmem:[#allocation45_spill] sm:$0xff] %v4878_v34  ;;  %v6283_v12 = vld [vmem:[#allocation52_spill] sm:$0xff] }
 0x348   :  { %1802 = vmatpush1.bf16.msra.mxu1 %v4208_v41  ;;  %v4881_v41 = vld [vmem:[#allocation9 + $0x14] ss:$24 sps:$4 sm:$0xff]  }
 0x349   :  { %1803 = vmatprep.subr.bf16.mxu1 %v4211_v43  ;;  %1915 = vmatpush1.bf16.msra.mxu0 %v4862_v54  ;;  %6249 = vst [vmem:[#allocation49_spill] sm:$0xff] %v4881_v41  ;;  %v6250_v43 = vld [vmem:[#allocation32_spill] sm:$0xff] }
 0x34a   :  { %1916 = vmatprep.subr.bf16.mxu0 %v4865_v37 }
 0x34c   :  { %1804 = vmatpush1.bf16.msra.mxu1 %v4216_v46  ;;  %v6251_v46 = vld [vmem:[#allocation34_spill] sm:$0xff] }
 0x34d   :  { %1805 = vmatprep.subr.bf16.mxu1 %v4219_v48  ;;  %1917 = vmatpush1.bf16.msra.mxu0 %v4870_v39  ;;  %v6252_v48 = vld [vmem:[#allocation36_spill] sm:$0xff]  ;;  %v6257_v39 = vld [vmem:[#allocation46_spill] sm:$0xff] }
 0x34e   :  { %1918 = vmatprep.subr.bf16.mxu0 %v4873_v58  ;;  %v6255_v58 = vld [vmem:[#allocation42_spill] sm:$0xff] }
 0x350   :  { %1806 = vmatpush1.bf16.msra.mxu1 %v4224_v50  ;;  %v6253_v50 = vld [vmem:[#allocation38_spill] sm:$0xff] }
 0x351   :  { %1929 = vmatprep.subr.bf16.mxu1 %v4661_v26  ;;  %1919 = vmatpush1.bf16.msra.mxu0 %v4878_v34  ;;  %v6254_v26 = vld [vmem:[#allocation40_spill] sm:$0xff] }
 0x352   :  { %1970 = vmatprep.subr.bf16.mxu0 %v4881_v41  ;;  %v6256_v34 = vld [vmem:[#allocation44_spill] sm:$0xff]  ;;  %v6258_v41 = vld [vmem:[#allocation47_spill] sm:$0xff] }
 0x353   :  { %1808 = vmatmul.mubr.bf16.vlgmr.msra.gmra.mrb[32].mxu1 %v4760_v5  ;;  %v4895_v5 = vld [vmem:[#allocation9 + $0xf8] ss:$24 sps:$4 sm:$0xff]  }
 0x354   :  { %1930 = vmatpush1.bf16.msra.mxu1 %v4667_v28  ;;  %6259 = vst [vmem:[#allocation51_spill] sm:$0xff] %v4895_v5  ;;  %v6282_v28 = vld [vmem:[#allocation90_spill] sm:$0xff] }
 0x355   :  { %1931 = vmatprep.subr.bf16.mxu1 %v6250_v43  ;;  %v4898_v43 = vld [vmem:[#allocation9 + $0x12c] ss:$24 sps:$4 sm:$0xff]  }
 0x356   :  { %6260 = vst [vmem:[#allocation71_spill] sm:$0xff] %v4898_v43 }
 0x358   :  { %1932 = vmatpush1.bf16.msra.mxu1 %v6251_v46 }
 0x359   :  { %1933 = vmatprep.subr.bf16.mxu1 %v6252_v48  ;;  %v4901_v48 = vld [vmem:[#allocation9 + $0x128] ss:$24 sps:$4 sm:$0xff]  }
 0x35a   :  { %6261 = vst [vmem:[#allocation17_spill] sm:$0xff] %v4901_v48 }
 0x35c   :  { %1934 = vmatpush1.bf16.msra.mxu1 %v6253_v50 }
 0x35d   :  { %1935 = vmatprep.subr.bf16.mxu1 %v6254_v26  ;;  %v4904_v26 = vld [vmem:[#allocation9 + $0x15c] ss:$24 sps:$4 sm:$0xff]  }
 0x35e   :  { %6262 = vst [vmem:[#allocation87_spill] sm:$0xff] %v4904_v26 }
 0x360   :  { %1936 = vmatpush1.bf16.msra.mxu1 %v6255_v58  ;;  %v6281_v58 = vld [vmem:[#allocation89_spill] sm:$0xff] }
 0x361   :  { %1937 = vmatprep.subr.bf16.mxu1 %v6256_v34  ;;  %v4907_v34 = vld [vmem:[#allocation9 + $0x158] ss:$24 sps:$4 sm:$0xff]  }
 0x362   :  { %6263 = vst [vmem:[#allocation88_spill] sm:$0xff] %v4907_v34 }
 0x364   :  { %1938 = vmatpush1.bf16.msra.mxu1 %v6257_v39 }
 0x365   :  { %1939 = vmatprep.subr.bf16.mxu1 %v6258_v41  ;;  %v4910_v41 = vld [vmem:[#allocation9 + $0x18c] ss:$24 sps:$4 sm:$0xff]  }
 0x366   :  { %6264 = vst [vmem:[#allocation93_spill] sm:$0xff] %v4910_v41 }
 0x368   :  { %1940 = vmatpush1.bf16.msra.mxu1 %v4895_v5  ;;  %v4913_v5 = vld [vmem:[#allocation9 + $0x188] ss:$24 sps:$4 sm:$0xff]  }
 0x369   :  { %1941 = vmatprep.subr.bf16.mxu1 %v4898_v43  ;;  %6265 = vst [vmem:[#allocation94_spill] sm:$0xff] %v4913_v5  ;;  %v4916_v43 = vld [vmem:[#allocation9 + $0x1bc] ss:$24 sps:$4 sm:$0xff]  }
 0x36a   :  { %6266 = vst [vmem:[#allocation95_spill] sm:$0xff] %v4916_v43 }
 0x36c   :  { %1942 = vmatpush1.bf16.msra.mxu1 %v4901_v48  ;;  %v4919_v48 = vld [vmem:[#allocation9 + $0x1b8] ss:$24 sps:$4 sm:$0xff]  }
 0x36d   :  { %1943 = vmatprep.subr.bf16.mxu1 %v4904_v26  ;;  %6267 = vst [vmem:[#allocation96_spill] sm:$0xff] %v4919_v48  ;;  %v4922_v26 = vld [vmem:[#allocation9 + $0x1ec] ss:$24 sps:$4 sm:$0xff]  }
 0x36e   :  { %6268 = vst [vmem:[#allocation97_spill] sm:$0xff] %v4922_v26 }
 0x370   :  { %1944 = vmatpush1.bf16.msra.mxu1 %v4907_v34  ;;  %v4925_v34 = vld [vmem:[#allocation9 + $0x1e8] ss:$24 sps:$4 sm:$0xff]  }
 0x371   :  { %1945 = vmatprep.subr.bf16.mxu1 %v4910_v41  ;;  %6269 = vst [vmem:[#allocation98_spill] sm:$0xff] %v4925_v34  ;;  %v4928_v41 = vld [vmem:[#allocation9 + $0x21c] ss:$24 sps:$4 sm:$0xff]  }
 0x372   :  { %6270 = vst [vmem:[#allocation99_spill] sm:$0xff] %v4928_v41 }
 0x374   :  { %1946 = vmatpush1.bf16.msra.mxu1 %v4913_v5  ;;  %v4931_v5 = vld [vmem:[#allocation9 + $0x218] ss:$24 sps:$4 sm:$0xff]  }
 0x375   :  { %1947 = vmatprep.subr.bf16.mxu1 %v4916_v43  ;;  %6271 = vst [vmem:[#allocation100_spill] sm:$0xff] %v4931_v5  ;;  %v4934_v43 = vld [vmem:[#allocation9 + $0x24c] ss:$24 sps:$4 sm:$0xff]  }
 0x376   :  { %6272 = vst [vmem:[#allocation101_spill] sm:$0xff] %v4934_v43 }
 0x378   :  { %1948 = vmatpush1.bf16.msra.mxu1 %v4919_v48  ;;  %v4937_v48 = vld [vmem:[#allocation9 + $0x248] ss:$24 sps:$4 sm:$0xff]  }
 0x379   :  { %1949 = vmatprep.subr.bf16.mxu1 %v4922_v26  ;;  %6273 = vst [vmem:[#allocation102_spill] sm:$0xff] %v4937_v48  ;;  %v4940_v26 = vld [vmem:[#allocation9 + $0x27c] ss:$24 sps:$4 sm:$0xff]  }
 0x37a   :  { %6274 = vst [vmem:[#allocation103_spill] sm:$0xff] %v4940_v26 }
 0x37c   :  { %1950 = vmatpush1.bf16.msra.mxu1 %v4925_v34  ;;  %v4943_v34 = vld [vmem:[#allocation9 + $0x278] ss:$24 sps:$4 sm:$0xff]  }
 0x37d   :  { %1951 = vmatprep.subr.bf16.mxu1 %v4928_v41  ;;  %6275 = vst [vmem:[#allocation104_spill] sm:$0xff] %v4943_v34  ;;  %v4946_v41 = vld [vmem:[#allocation9 + $0x2ac] ss:$24 sps:$4 sm:$0xff]  }
 0x37e   :  { %6276 = vst [vmem:[#allocation105_spill] sm:$0xff] %v4946_v41 }
 0x380   :  { %1952 = vmatpush1.bf16.msra.mxu1 %v4931_v5  ;;  %v4949_v5 = vld [vmem:[#allocation9 + $0x2a8] ss:$24 sps:$4 sm:$0xff]  }
 0x381   :  { %1953 = vmatprep.subr.bf16.mxu1 %v4934_v43  ;;  %6277 = vst [vmem:[#allocation106_spill] sm:$0xff] %v4949_v5  ;;  %v4952_v43 = vld [vmem:[#allocation9 + $0x2dc] ss:$24 sps:$4 sm:$0xff]  }
 0x382   :  { %6278 = vst [vmem:[#allocation107_spill] sm:$0xff] %v4952_v43 }
 0x384   :  { %1954 = vmatpush1.bf16.msra.mxu1 %v4937_v48  ;;  %v4955_v48 = vld [vmem:[#allocation9 + $0x2d8] ss:$24 sps:$4 sm:$0xff]  }
 0x385   :  { %1955 = vmatprep.subr.bf16.mxu1 %v4940_v26  ;;  %6279 = vst [vmem:[#allocation108_spill] sm:$0xff] %v4955_v48  ;;  %v6280_v26 = vld [vmem:[#allocation48_spill] sm:$0xff] }
 0x388   :  { %1956 = vmatpush1.bf16.msra.mxu1 %v4943_v34 }
 0x389   :  { %1957 = vmatprep.subr.bf16.mxu1 %v4946_v41 }
 0x38c   :  { %1958 = vmatpush1.bf16.msra.mxu1 %v4949_v5 }
 0x38d   :  { %1959 = vmatprep.subr.bf16.mxu1 %v4952_v43 }
 0x390   :  { %1960 = vmatpush1.bf16.msra.mxu1 %v4955_v48 }
 0x391   :  { %2083 = vmatprep.subr.bf16.mxu1 %v6280_v26 }
 0x3e6   :  { %v1727_v39 = vpop.f32.mrb[28].mxu1  ;;  %v1768_v34 = vpop.f32.mrb[44].mxu0 }
 0x3e7   :  { %v1728_v50 = vadd.f32 %v1727_v39, %v6281_v58  ;;  %v1729_v46 = vpop.f32.mrb[29].mxu1  ;;  %v1770_v41 = vpop.f32.mrb[45].mxu0 }
 0x3e8   :  { %v1730_v37 = vadd.f32 %v1729_v46, %v6282_v28  ;;  %v1771_v5 = vadd.f32 %v1770_v41, %v4490_v3  ;;  %v1731_v54 = vpop.f32.mrb[30].mxu1  ;;  %v1772_v0 = vpop.f32.mrb[46].mxu0 }
 0x3e9   :  { %v1824_v43 = vadd.f32 %v1728_v50, %v6283_v12  ;;  %v1732_v17 = vpop.f32.mrb[31].mxu1  ;;  %v1773_v15 = vpop.f32.mrb[47].mxu0  ;;  %v1769_v54 = vadd.f32 %v1768_v34, %v4485_v51  ;;  %v6286_v12 = vld [vmem:[#allocation53_spill] sm:$0xff] }
 0x3ea   :  { %v1831_v48 = vadd.f32 %v1730_v37, %v6284_v24  ;;  %v1845_v26 = vadd.f32 %v1771_v5, %v6285_v4 }
 0x3eb   :  { %v3030_v7 = vmul.f32 -1.442695, %v1824_v43 }
 0x3ec   :  { %v3031_v32 = vmul.f32 -1.442695, %v1831_v48  ;;  %v3032_v24 = vmul.f32 -1.442695, %v1845_v26 }
 0x3ed   :  { %3328 = vpow2.f32 %v3030_v7 }
 0x3ee   :  { %3330 = vpow2.f32 %v3031_v32 }
 0x3f7   :  { %v3329_v39 = vpop.eup %3328 }
 0x3f8   :  { %v1828_v58 = vadd.f32 1.0, %v3329_v39  ;;  %v3331_v46 = vpop.eup %3330 }
 0x3f9   :  { %v1835_v28 = vadd.f32 1.0, %v3331_v46  ;;  %v6288_v46 = vld [vmem:[#allocation85_spill] sm:$0xff] }
 0x3fa   :  { %3332 = vrcp.f32 %v1828_v58 }
 0x3fb   :  { %3334 = vrcp.f32 %v1835_v28 }
 0x404   :  { %v3333_v0 = vpop.eup %3332 }
 0x405   :  { %v1838_v41 = vmul.f32 %v3333_v0, %v1769_v54  ;;  %v3335_v4 = vpop.eup %3334 }
 0x406   :  { %v1841_v17 = vsub.f32 1.0, %v3335_v4  ;;  %v1843_v32 = vmul.f32 %v3335_v4, %v4747_v2 }
 0x407   :  { %v1839_v15 = vadd.f32 %v1838_v41, %v6286_v12 }
 0x409   :  { %3336 = vtanh.f32 %v1839_v15  ;;  %v6289_v15 = vld [vmem:[#allocation86_spill] sm:$0xff] }
 0x40a   :  { %3338 = vpow2.f32 %v3032_v24 }
 0x413   :  { %v3337_v7 = vpop.eup %3336 }
 0x414   :  { %v1842_v37 = vmul.f32 %v3337_v7, %v1841_v17  ;;  %v3339_v58 = vpop.eup %3338 }
 0x415   :  { %v1849_v48 = vadd.f32 1.0, %v3339_v58 }
 0x416   :  { %v4968_v43 = vadd.f32 %v1843_v32, %v1842_v37 }
 0x417   :  { %3340 = vrcp.f32 %v1849_v48 }
 0x418   :  { %6287 = vst [vmem:[#allocation52_spill] sm:$0xff] %v4968_v43 }
 0x421   :  { %v3341_v26 = vpop.eup %3340 }
 0x426   :  { %v1809_v34 = vpop.f32.mrb[32].mxu1 }
 0x427   :  { %v1810_v50 = vadd.f32 %v1809_v34, %v4511_v56  ;;  %v1811_v28 = vpop.f32.mrb[33].mxu1  ;;  %v4975_v34 = vpop.permute.xlu1 %1870 }
 0x428   :  { %v1812_v5 = vadd.f32 %v1811_v28, %v4516_v63  ;;  %v1813_v39 = vpop.f32.mrb[34].mxu1  ;;  %6290 = vst [vmem:[#allocation54_spill] sm:$0xff] %v4975_v34  ;;  %v4977_v28 = vpop.permute.xlu0 %1878  ;;  %vm1872_vm12 = vcmp.eq.s32.totalorder %v4975_v34, 1  ;;  %v6336_v34 = vld [vmem:[#allocation103_spill] sm:$0xff] }
 0x429   :  { %v1852_v54 = vadd.f32 %v1810_v50, %v6288_v46  ;;  %v1814_v0 = vpop.f32.mrb[35].mxu1  ;;  %6291 = vst [vmem:[#allocation67_spill] sm:$0xff] %v4977_v28  ;;  %vm1880_vm13 = vcmp.eq.s32.totalorder %v4977_v28, 1  ;;  %v6338_v28 = vld [vmem:[#allocation105_spill] sm:$0xff] }
 0x42a   :  { %v1859_v41 = vmul.f32 %v3341_v26, %v1812_v5  ;;  %v4987_v5 = vsel %vm1872_vm12, %v4968_v43, %v4747_v2  ;;  %v6303_v2 = vld [vmem:[#allocation39_spill] sm:$0xff]  ;;  %v6305_v0 = vld [vmem:[#allocation41_spill] sm:$0xff]  ;;  %v6337_v43 = vld [vmem:[#allocation104_spill] sm:$0xff] }
 0x42b   :  { %v3033_v12 = vmul.f32 -1.442695, %v1852_v54  ;;  %v4999_v46 = vpack.c.bf16 %v4987_v5, %v4987_v5  ;;  %v5078_v54 = vld [vmem:[#allocation9 + $0x2e4] ss:$24 sps:$4 sm:$0xff]  }
 0x42c   :  { %v1860_v24 = vadd.f32 %v1859_v41, %v6289_v15  ;;  %6304 = vst [vmem:[#allocation85_spill] sm:$0xff] %v5078_v54  ;;  %v6306_v41 = vld [vmem:[#allocation43_spill] sm:$0xff]  ;;  %v6308_v15 = vld [vmem:[#allocation28_spill] sm:$0xff] }
 0x42d   :  { %3342 = vpow2.f32 %v3033_v12  ;;  %v5083_v12 = vld [vmem:[#allocation9 + $0x2e0] ss:$24 sps:$4 sm:$0xff]  }
 0x42e   :  { %6307 = vst [vmem:[#allocation86_spill] sm:$0xff] %v5083_v12 }
 0x437   :  { %v3343_v4 = vpop.eup %3342 }
 0x438   :  { %v1856_v17 = vadd.f32 1.0, %v3343_v4  ;;  %v6310_v4 = vld [vmem:[#allocation49_spill] sm:$0xff] }
 0x43a   :  { %3344 = vrcp.f32 %v1856_v17  ;;  %v6311_v17 = vld [vmem:[#allocation30_spill] sm:$0xff] }
 0x43b   :  { %3346 = vtanh.f32 %v1860_v24  ;;  %v6309_v24 = vld [vmem:[#allocation45_spill] sm:$0xff] }
 0x444   :  { %v3345_v7 = vpop.eup %3344 }
 0x445   :  { %v1862_v37 = vsub.f32 1.0, %v3345_v7  ;;  %v3347_v32 = vpop.eup %3346  ;;  %v1864_v48 = vmul.f32 %v3345_v7, %v4754_v27  ;;  %v6312_v7 = vld [vmem:[#allocation32_spill] sm:$0xff] }
 0x447   :  { %v1863_v58 = vmul.f32 %v3347_v32, %v1862_v37  ;;  %v6313_v37 = vld [vmem:[#allocation34_spill] sm:$0xff]  ;;  %v6314_v32 = vld [vmem:[#allocation36_spill] sm:$0xff] }
 0x449   :  { %v4980_v50 = vadd.f32 %v1864_v48, %v1863_v58  ;;  %v6315_v58 = vld [vmem:[#allocation38_spill] sm:$0xff]  ;;  %v6316_v48 = vld [vmem:[#allocation40_spill] sm:$0xff] }
 0x44b   :  { %6292 = vst [vmem:[#allocation53_spill] sm:$0xff] %v4980_v50  ;;  %v4993_v39 = vsel %vm1880_vm13, %v4980_v50, %v4754_v27  ;;  %v5075_v27 = vld [vmem:[#allocation9 + $0x2b0] ss:$24 sps:$4 sm:$0xff]   ;;  %v6339_v50 = vld [vmem:[#allocation106_spill] sm:$0xff] }
 0x44c   :  { %v1887_v26 = vpack.c.bf16 %v4993_v39, %v4993_v39 }
 0x44e   :  { %1920 = vmatprep.mubr.bf16.mxu0 %v1887_v26  ;;  %1961 = vmatprep.mubr.bf16.mxu1 %v1887_v26 }
 0x44f   :  { %1921 = vmatmul.mubr.bf16.vlgmr.msra.gmra.mrb[48].mxu0 %v4999_v46  ;;  %1962 = vmatmul.mubr.bf16.vlgmr.msra.gmra.mrb[36].mxu1 %v4999_v46 }
 0x450   :  { %1971 = vmatpush1.bf16.msra.mxu0 %v4764_v13  ;;  %2002 = vmatprep.mubr.bf16.mxu0 %v1887_v26  ;;  %v6317_v26 = vld [vmem:[#allocation42_spill] sm:$0xff] }
 0x451   :  { %1972 = vmatprep.subr.bf16.mxu0 %v4767_v11  ;;  %2084 = vmatpush1.bf16.msra.mxu1 %v4554_v14  ;;  %v6293_v14 = vld [vmem:[#allocation31_spill] sm:$0xff] }
 0x452   :  { %2085 = vmatprep.subr.bf16.mxu1 %v4557_v20  ;;  %v6294_v20 = vld [vmem:[#allocation18_spill] sm:$0xff] }
 0x454   :  { %1973 = vmatpush1.bf16.msra.mxu0 %v4772_v44 }
 0x455   :  { %1974 = vmatprep.subr.bf16.mxu0 %v4775_v52  ;;  %2086 = vmatpush1.bf16.msra.mxu1 %v4562_v10  ;;  %v6295_v10 = vld [vmem:[#allocation20_spill] sm:$0xff] }
 0x456   :  { %2087 = vmatprep.subr.bf16.mxu1 %v4565_v23  ;;  %v5043_v23 = vld [vmem:[#allocation9 + $0x1f0] ss:$24 sps:$4 sm:$0xff]  }
 0x458   :  { %1975 = vmatpush1.bf16.msra.mxu0 %v4780_v49 }
 0x459   :  { %1976 = vmatprep.subr.bf16.mxu0 %v4783_v22  ;;  %2088 = vmatpush1.bf16.msra.mxu1 %v4570_v62  ;;  %v5046_v62 = vld [vmem:[#allocation9 + $0x224] ss:$24 sps:$4 sm:$0xff]  }
 0x45a   :  { %2089 = vmatprep.subr.bf16.mxu1 %v4573_v6  ;;  %v6296_v6 = vld [vmem:[#allocation22_spill] sm:$0xff] }
 0x45c   :  { %1977 = vmatpush1.bf16.msra.mxu0 %v4788_v42 }
 0x45d   :  { %1978 = vmatprep.subr.bf16.mxu0 %v4791_v35  ;;  %2090 = vmatpush1.bf16.msra.mxu1 %v4578_v25  ;;  %v6297_v25 = vld [vmem:[#allocation23_spill] sm:$0xff] }
 0x45e   :  { %2091 = vmatprep.subr.bf16.mxu1 %v4581_v16  ;;  %v5054_v16 = vld [vmem:[#allocation9 + $0x254] ss:$24 sps:$4 sm:$0xff]  }
 0x460   :  { %1979 = vmatpush1.bf16.msra.mxu0 %v4796_v36 }
 0x461   :  { %1980 = vmatprep.subr.bf16.mxu0 %v4799_v38  ;;  %2092 = vmatpush1.bf16.msra.mxu1 %v4586_v29  ;;  %v6298_v29 = vld [vmem:[#allocation24_spill] sm:$0xff] }
 0x462   :  { %2093 = vmatprep.subr.bf16.mxu1 %v4589_v45  ;;  %v6299_v45 = vld [vmem:[#allocation26_spill] sm:$0xff] }
 0x464   :  { %1981 = vmatpush1.bf16.msra.mxu0 %v4804_v8 }
 0x465   :  { %1982 = vmatprep.subr.bf16.mxu0 %v4807_v53  ;;  %2094 = vmatpush1.bf16.msra.mxu1 %v4594_v19  ;;  %v5059_v19 = vld [vmem:[#allocation9 + $0x250] ss:$24 sps:$4 sm:$0xff]  }
 0x466   :  { %2095 = vmatprep.subr.bf16.mxu1 %v4597_v21  ;;  %v5062_v21 = vld [vmem:[#allocation9 + $0x284] ss:$24 sps:$4 sm:$0xff]  }
 0x468   :  { %1983 = vmatpush1.bf16.msra.mxu0 %v4812_v33 }
 0x469   :  { %1984 = vmatprep.subr.bf16.mxu0 %v4815_v60  ;;  %2096 = vmatpush1.bf16.msra.mxu1 %v4602_v57  ;;  %v6300_v57 = vld [vmem:[#allocation33_spill] sm:$0xff] }
 0x46a   :  { %2097 = vmatprep.subr.bf16.mxu1 %v4605_v55  ;;  %v6301_v55 = vld [vmem:[#allocation35_spill] sm:$0xff] }
 0x46c   :  { %1985 = vmatpush1.bf16.msra.mxu0 %v4820_v9 }
 0x46d   :  { %1986 = vmatprep.subr.bf16.mxu0 %v4823_v31  ;;  %2098 = vmatpush1.bf16.msra.mxu1 %v4610_v59  ;;  %v5067_v59 = vld [vmem:[#allocation9 + $0x280] ss:$24 sps:$4 sm:$0xff]  }
 0x46e   :  { %2099 = vmatprep.subr.bf16.mxu1 %v4613_v18  ;;  %v5070_v18 = vld [vmem:[#allocation9 + $0x2b4] ss:$24 sps:$4 sm:$0xff]  }
 0x470   :  { %1987 = vmatpush1.bf16.msra.mxu0 %v4828_v40 }
 0x471   :  { %1988 = vmatprep.subr.bf16.mxu0 %v4831_v30  ;;  %2100 = vmatpush1.bf16.msra.mxu1 %v4618_v1  ;;  %v6302_v1 = vld [vmem:[#allocation37_spill] sm:$0xff] }
 0x472   :  { %2101 = vmatprep.subr.bf16.mxu1 %v4621_v61  ;;  %v5051_v61 = vld [vmem:[#allocation9 + $0x220] ss:$24 sps:$4 sm:$0xff]  }
 0x474   :  { %1989 = vmatpush1.bf16.msra.mxu0 %v4836_v47 }
 0x475   :  { %1990 = vmatprep.subr.bf16.mxu0 %v6293_v14  ;;  %2102 = vmatpush1.bf16.msra.mxu1 %v6294_v20  ;;  %v6318_v20 = vld [vmem:[#allocation44_spill] sm:$0xff] }
 0x476   :  { %2103 = vmatprep.subr.bf16.mxu1 %v6295_v10  ;;  %v6319_v10 = vld [vmem:[#allocation46_spill] sm:$0xff] }
 0x478   :  { %1991 = vmatpush1.bf16.msra.mxu0 %v5043_v23 }
 0x479   :  { %1992 = vmatprep.subr.bf16.mxu0 %v5046_v62  ;;  %2104 = vmatpush1.bf16.msra.mxu1 %v6296_v6  ;;  %v6320_v6 = vld [vmem:[#allocation47_spill] sm:$0xff] }
 0x47a   :  { %2105 = vmatprep.subr.bf16.mxu1 %v6297_v25  ;;  %v6322_v25 = vld [vmem:[#allocation71_spill] sm:$0xff] }
 0x47c   :  { %1993 = vmatpush1.bf16.msra.mxu0 %v5051_v61 }
 0x47d   :  { %1994 = vmatprep.subr.bf16.mxu0 %v5054_v16  ;;  %2106 = vmatpush1.bf16.msra.mxu1 %v6298_v29  ;;  %v6323_v29 = vld [vmem:[#allocation17_spill] sm:$0xff] }
 0x47e   :  { %2107 = vmatprep.subr.bf16.mxu1 %v6299_v45  ;;  %v6324_v45 = vld [vmem:[#allocation87_spill] sm:$0xff] }
 0x480   :  { %1995 = vmatpush1.bf16.msra.mxu0 %v5059_v19 }
 0x481   :  { %1996 = vmatprep.subr.bf16.mxu0 %v5062_v21  ;;  %2108 = vmatpush1.bf16.msra.mxu1 %v6300_v57 }
 0x482   :  { %2109 = vmatprep.subr.bf16.mxu1 %v6301_v55 }
 0x484   :  { %1997 = vmatpush1.bf16.msra.mxu0 %v5067_v59 }
 0x485   :  { %1998 = vmatprep.subr.bf16.mxu0 %v5070_v18  ;;  %2110 = vmatpush1.bf16.msra.mxu1 %v6302_v1 }
 0x486   :  { %2111 = vmatprep.subr.bf16.mxu1 %v6303_v2 }
 0x488   :  { %1999 = vmatpush1.bf16.msra.mxu0 %v5075_v27 }
 0x489   :  { %2000 = vmatprep.subr.bf16.mxu0 %v5078_v54  ;;  %2112 = vmatpush1.bf16.msra.mxu1 %v6305_v0 }
 0x48a   :  { %2113 = vmatprep.subr.bf16.mxu1 %v6306_v41 }
 0x48c   :  { %2001 = vmatpush1.bf16.msra.mxu0 %v5083_v12 }
 0x48d   :  { %2124 = vmatprep.subr.bf16.mxu0 %v6308_v15  ;;  %2114 = vmatpush1.bf16.msra.mxu1 %v6309_v24  ;;  %v6325_v15 = vld [vmem:[#allocation88_spill] sm:$0xff] }
 0x48e   :  { %2165 = vmatprep.subr.bf16.mxu1 %v6310_v4 }
 0x48f   :  { %2003 = vmatmul.mubr.bf16.vlgmr.msra.gmra.mrb[52].mxu0 %v4999_v46  ;;  %v6321_v46 = vld [vmem:[#allocation51_spill] sm:$0xff] }
 0x490   :  { %2125 = vmatpush1.bf16.msra.mxu0 %v6311_v17  ;;  %v6326_v17 = vld [vmem:[#allocation93_spill] sm:$0xff] }
 0x491   :  { %2126 = vmatprep.subr.bf16.mxu0 %v6312_v7  ;;  %v6327_v7 = vld [vmem:[#allocation94_spill] sm:$0xff] }
 0x494   :  { %2127 = vmatpush1.bf16.msra.mxu0 %v6313_v37  ;;  %v6328_v37 = vld [vmem:[#allocation95_spill] sm:$0xff] }
 0x495   :  { %2128 = vmatprep.subr.bf16.mxu0 %v6314_v32  ;;  %v6329_v32 = vld [vmem:[#allocation96_spill] sm:$0xff] }
 0x498   :  { %2129 = vmatpush1.bf16.msra.mxu0 %v6315_v58  ;;  %v6330_v58 = vld [vmem:[#allocation97_spill] sm:$0xff] }
 0x499   :  { %2130 = vmatprep.subr.bf16.mxu0 %v6316_v48  ;;  %v6331_v48 = vld [vmem:[#allocation98_spill] sm:$0xff] }
 0x49c   :  { %2131 = vmatpush1.bf16.msra.mxu0 %v6317_v26  ;;  %v6332_v26 = vld [vmem:[#allocation99_spill] sm:$0xff] }
 0x49d   :  { %2132 = vmatprep.subr.bf16.mxu0 %v6318_v20  ;;  %v6333_v20 = vld [vmem:[#allocation100_spill] sm:$0xff] }
 0x4a0   :  { %2133 = vmatpush1.bf16.msra.mxu0 %v6319_v10  ;;  %v6334_v10 = vld [vmem:[#allocation101_spill] sm:$0xff] }
 0x4a1   :  { %2134 = vmatprep.subr.bf16.mxu0 %v6320_v6  ;;  %v6335_v6 = vld [vmem:[#allocation102_spill] sm:$0xff] }
 0x4a4   :  { %2135 = vmatpush1.bf16.msra.mxu0 %v6321_v46  ;;  %v6347_v46 = vld [vmem:[#allocation63_spill] sm:$0xff] }
 0x4a5   :  { %2136 = vmatprep.subr.bf16.mxu0 %v6322_v25  ;;  %v6346_v25 = vld [vmem:[#allocation58_spill] sm:$0xff] }
 0x4a8   :  { %2137 = vmatpush1.bf16.msra.mxu0 %v6323_v29 }
 0x4a9   :  { %2138 = vmatprep.subr.bf16.mxu0 %v6324_v45  ;;  %v6345_v45 = vld [vmem:[#allocation56_spill] sm:$0xff] }
 0x4ac   :  { %2139 = vmatpush1.bf16.msra.mxu0 %v6325_v15 }
 0x4ad   :  { %2140 = vmatprep.subr.bf16.mxu0 %v6326_v17  ;;  %v6344_v17 = vld [vmem:[#allocation90_spill] sm:$0xff] }
 0x4b0   :  { %2141 = vmatpush1.bf16.msra.mxu0 %v6327_v7 }
 0x4b1   :  { %2142 = vmatprep.subr.bf16.mxu0 %v6328_v37  ;;  %v6343_v37 = vld [vmem:[#allocation89_spill] sm:$0xff] }
 0x4b4   :  { %2143 = vmatpush1.bf16.msra.mxu0 %v6329_v32  ;;  %v6340_v32 = vld [vmem:[#allocation107_spill] sm:$0xff] }
 0x4b5   :  { %2144 = vmatprep.subr.bf16.mxu0 %v6330_v58  ;;  %v6341_v58 = vld [vmem:[#allocation108_spill] sm:$0xff] }
 0x4b8   :  { %2145 = vmatpush1.bf16.msra.mxu0 %v6331_v48  ;;  %v6342_v48 = vld [vmem:[#allocation48_spill] sm:$0xff] }
 0x4b9   :  { %2146 = vmatprep.subr.bf16.mxu0 %v6332_v26 }
 0x4bc   :  { %2147 = vmatpush1.bf16.msra.mxu0 %v6333_v20 }
 0x4bd   :  { %2148 = vmatprep.subr.bf16.mxu0 %v6334_v10 }
 0x4c0   :  { %2149 = vmatpush1.bf16.msra.mxu0 %v6335_v6 }
 0x4c1   :  { %2150 = vmatprep.subr.bf16.mxu0 %v6336_v34 }
 0x4c4   :  { %2151 = vmatpush1.bf16.msra.mxu0 %v6337_v43 }
 0x4c5   :  { %2152 = vmatprep.subr.bf16.mxu0 %v6338_v28 }
 0x4c8   :  { %2153 = vmatpush1.bf16.msra.mxu0 %v6339_v50 }
 0x4c9   :  { %2154 = vmatprep.subr.bf16.mxu0 %v6340_v32 }
 0x4cc   :  { %2155 = vmatpush1.bf16.msra.mxu0 %v6341_v58 }
 0x4cd   :  { %2264 = vmatprep.subr.bf16.mxu0 %v6342_v48 }
 0x522   :  { %v1922_v26 = vpop.f32.mrb[48].mxu0  ;;  %v1963_v20 = vpop.f32.mrb[36].mxu1 }
 0x523   :  { %v1923_v10 = vadd.f32 %v1922_v26, %v6343_v37  ;;  %v1924_v7 = vpop.f32.mrb[49].mxu0  ;;  %v1965_v6 = vpop.f32.mrb[37].mxu1 }
 0x524   :  { %v1925_v34 = vadd.f32 %v1924_v7, %v6344_v17  ;;  %v1966_v43 = vadd.f32 %v1965_v6, %v4490_v3  ;;  %v1926_v15 = vpop.f32.mrb[50].mxu0  ;;  %v1967_v28 = vpop.f32.mrb[38].mxu1 }
 0x525   :  { %v2019_v50 = vadd.f32 %v1923_v10, %v6345_v45  ;;  %v1927_v29 = vpop.f32.mrb[51].mxu0  ;;  %v1968_v32 = vpop.f32.mrb[39].mxu1  ;;  %v1964_v15 = vadd.f32 %v1963_v20, %v4485_v51 }
 0x526   :  { %v2026_v58 = vadd.f32 %v1925_v34, %v6346_v25  ;;  %v2040_v48 = vadd.f32 %v1966_v43, %v6347_v46  ;;  %v6348_v29 = vld [vmem:[#allocation57_spill] sm:$0xff] }
 0x527   :  { %v3034_v4 = vmul.f32 -1.442695, %v2019_v50 }
 0x528   :  { %v3035_v24 = vmul.f32 -1.442695, %v2026_v58  ;;  %v3036_v34 = vmul.f32 -1.442695, %v2040_v48 }
 0x529   :  { %3348 = vpow2.f32 %v3034_v4 }
 0x52a   :  { %3350 = vpow2.f32 %v3035_v24 }
 0x533   :  { %v3349_v26 = vpop.eup %3348 }
 0x534   :  { %v2023_v37 = vadd.f32 1.0, %v3349_v26  ;;  %v3351_v7 = vpop.eup %3350 }
 0x535   :  { %v2030_v17 = vadd.f32 1.0, %v3351_v7  ;;  %v6349_v7 = vld [vmem:[#allocation83_spill] sm:$0xff] }
 0x536   :  { %3352 = vrcp.f32 %v2023_v37 }
 0x537   :  { %3354 = vrcp.f32 %v2030_v17 }
 0x540   :  { %v3353_v28 = vpop.eup %3352 }
 0x541   :  { %v2033_v6 = vmul.f32 %v3353_v28, %v1964_v15  ;;  %v3355_v43 = vpop.eup %3354 }
 0x542   :  { %v2036_v50 = vsub.f32 1.0, %v3355_v43  ;;  %v2038_v24 = vmul.f32 %v3355_v43, %v4987_v5 }
 0x543   :  { %v2034_v45 = vadd.f32 %v2033_v6, %v6348_v29 }
 0x545   :  { %3356 = vtanh.f32 %v2034_v45  ;;  %v6350_v45 = vld [vmem:[#allocation84_spill] sm:$0xff] }
 0x546   :  { %3358 = vpow2.f32 %v3036_v34 }
 0x54f   :  { %v3357_v4 = vpop.eup %3356 }
 0x550   :  { %v2037_v46 = vmul.f32 %v3357_v4, %v2036_v50  ;;  %v3359_v37 = vpop.eup %3358 }
 0x551   :  { %v2044_v32 = vadd.f32 1.0, %v3359_v37  ;;  %v5137_v37 = vpop.permute.xlu1 %2065 }
 0x552   :  { %v5131_v25 = vadd.f32 %v2038_v24, %v2037_v46  ;;  %vm2067_vm14 = vcmp.eq.s32.totalorder %v5137_v37, 1  ;;  %v5380_v37 = vld [vmem:[#allocation9 + $0x44] ss:$24 sps:$4 sm:$0xff]  }
 0x553   :  { %3360 = vrcp.f32 %v2044_v32  ;;  %v5139_v32 = vpop.permute.xlu0 %2073 }
 0x554   :  { %vm2075_vm15 = vcmp.eq.s32.totalorder %v5139_v32, 1 }
 0x55d   :  { %v3361_v48 = vpop.eup %3360 }
 0x562   :  { %v2004_v58 = vpop.f32.mrb[52].mxu0 }
 0x563   :  { %v2005_v20 = vadd.f32 %v2004_v58, %v4511_v56  ;;  %v2006_v17 = vpop.f32.mrb[53].mxu0 }
 0x564   :  { %v2007_v10 = vadd.f32 %v2006_v17, %v4516_v63  ;;  %v2008_v26 = vpop.f32.mrb[54].mxu0 }
 0x565   :  { %v2047_v15 = vadd.f32 %v2005_v20, %v6349_v7  ;;  %v2009_v28 = vpop.f32.mrb[55].mxu0 }
 0x566   :  { %v2054_v6 = vmul.f32 %v3361_v48, %v2007_v10  ;;  %v5150_v10 = vsel %vm2067_vm14, %v5131_v25, %v4987_v5  ;;  %v5168_v5 = vld [vmem:[#allocation9] ss:$24 sps:$4 sm:$0xff]   ;;  %v5187_v28 = vld [vmem:[#allocation9 + $0x94] ss:$24 sps:$4 sm:$0xff]  }
 0x567   :  { %v3037_v29 = vmul.f32 -1.442695, %v2047_v15  ;;  %v5162_v7 = vpack.c.bf16 %v5150_v10, %v5150_v10  ;;  %v5176_v15 = vld [vmem:[#allocation9 + $0x30] ss:$24 sps:$4 sm:$0xff]  }
 0x568   :  { %v2055_v34 = vadd.f32 %v2054_v6, %v6350_v45  ;;  %v6359_v6 = vld [vmem:[#allocation49_spill] sm:$0xff] }
 0x569   :  { %3362 = vpow2.f32 %v3037_v29  ;;  %v5293_v29 = vld [vmem:[#allocation9 + $0x68] ss:$24 sps:$4 sm:$0xff]   ;;  %v5296_v45 = vld [vmem:[#allocation9 + $0x9c] ss:$24 sps:$4 sm:$0xff]  }
 0x56a   :  { %6364 = vst [vmem:[#allocation41_spill] sm:$0xff] %v5293_v29  ;;  %6365 = vst [vmem:[#allocation43_spill] sm:$0xff] %v5296_v45 }
 0x573   :  { %v3363_v43 = vpop.eup %3362 }
 0x574   :  { %v2051_v50 = vadd.f32 1.0, %v3363_v43  ;;  %v5302_v43 = vld [vmem:[#allocation9 + $0xcc] ss:$24 sps:$4 sm:$0xff]  }
 0x575   :  { %6367 = vst [vmem:[#allocation30_spill] sm:$0xff] %v5302_v43 }
 0x576   :  { %3364 = vrcp.f32 %v2051_v50  ;;  %v5305_v50 = vld [vmem:[#allocation9 + $0xc8] ss:$24 sps:$4 sm:$0xff]  }
 0x577   :  { %3366 = vtanh.f32 %v2055_v34  ;;  %v5299_v34 = vld [vmem:[#allocation9 + $0x98] ss:$24 sps:$4 sm:$0xff]   ;;  %6368 = vst [vmem:[#allocation32_spill] sm:$0xff] %v5305_v50 }
 0x578   :  { %6366 = vst [vmem:[#allocation28_spill] sm:$0xff] %v5299_v34 }
 0x580   :  { %v3365_v4 = vpop.eup %3364 }
 0x581   :  { %v2057_v46 = vsub.f32 1.0, %v3365_v4  ;;  %v3367_v24 = vpop.eup %3366  ;;  %v2059_v20 = vmul.f32 %v3365_v4, %v4993_v39  ;;  %v5308_v4 = vld [vmem:[#allocation9 + $0xfc] ss:$24 sps:$4 sm:$0xff]  }
 0x582   :  { %6369 = vst [vmem:[#allocation34_spill] sm:$0xff] %v5308_v4 }
 0x583   :  { %v2058_v58 = vmul.f32 %v3367_v24, %v2057_v46  ;;  %v6370_v46 = vld [vmem:[#allocation51_spill] sm:$0xff] }
 0x584   :  { %v6371_v24 = vld [vmem:[#allocation71_spill] sm:$0xff] }
 0x585   :  { %v5143_v17 = vadd.f32 %v2059_v20, %v2058_v58  ;;  %v6372_v58 = vld [vmem:[#allocation17_spill] sm:$0xff]  ;;  %v6373_v20 = vld [vmem:[#allocation87_spill] sm:$0xff] }
 0x587   :  { %v5156_v26 = vsel %vm2075_vm15, %v5143_v17, %v4993_v39  ;;  %v5171_v39 = vld [vmem:[#allocation9 + $0x34] ss:$24 sps:$4 sm:$0xff]  }
 0x588   :  { %v2082_v48 = vpack.c.bf16 %v5156_v26, %v5156_v26 }
 0x58a   :  { %2115 = vmatprep.mubr.bf16.mxu1 %v2082_v48  ;;  %2156 = vmatprep.mubr.bf16.mxu0 %v2082_v48 }
 0x58b   :  { %2116 = vmatmul.mubr.bf16.vlgmr.msra.gmra.mrb[40].mxu1 %v5162_v7  ;;  %2157 = vmatmul.mubr.bf16.vlgmr.msra.gmra.mrb[56].mxu0 %v5162_v7 }
 0x58c   :  { %2166 = vmatpush1.bf16.msra.mxu1 %v4764_v13  ;;  %2197 = vmatprep.mubr.bf16.mxu1 %v2082_v48  ;;  %v5179_v13 = vld [vmem:[#allocation9 + $0x64] ss:$24 sps:$4 sm:$0xff]   ;;  %v6374_v48 = vld [vmem:[#allocation88_spill] sm:$0xff] }
 0x58d   :  { %2167 = vmatprep.subr.bf16.mxu1 %v4767_v11  ;;  %2265 = vmatpush1.bf16.msra.mxu0 %v5168_v5  ;;  %v5184_v11 = vld [vmem:[#allocation9 + $0x60] ss:$24 sps:$4 sm:$0xff]  }
 0x58e   :  { %2266 = vmatprep.subr.bf16.mxu0 %v5171_v39 }
 0x590   :  { %2168 = vmatpush1.bf16.msra.mxu1 %v4772_v44  ;;  %v5192_v44 = vld [vmem:[#allocation9 + $0x90] ss:$24 sps:$4 sm:$0xff]  }
 0x591   :  { %2169 = vmatprep.subr.bf16.mxu1 %v4775_v52  ;;  %2267 = vmatpush1.bf16.msra.mxu0 %v5176_v15  ;;  %v5195_v52 = vld [vmem:[#allocation9 + $0xc4] ss:$24 sps:$4 sm:$0xff]  }
 0x592   :  { %2268 = vmatprep.subr.bf16.mxu0 %v5179_v13 }
 0x594   :  { %2170 = vmatpush1.bf16.msra.mxu1 %v4780_v49  ;;  %v5200_v49 = vld [vmem:[#allocation9 + $0xc0] ss:$24 sps:$4 sm:$0xff]  }
 0x595   :  { %2171 = vmatprep.subr.bf16.mxu1 %v4783_v22  ;;  %2269 = vmatpush1.bf16.msra.mxu0 %v5184_v11  ;;  %v5203_v22 = vld [vmem:[#allocation9 + $0xf4] ss:$24 sps:$4 sm:$0xff]  }
 0x596   :  { %2270 = vmatprep.subr.bf16.mxu0 %v5187_v28 }
 0x598   :  { %2172 = vmatpush1.bf16.msra.mxu1 %v4788_v42  ;;  %v5208_v42 = vld [vmem:[#allocation9 + $0xf0] ss:$24 sps:$4 sm:$0xff]  }
 0x599   :  { %2173 = vmatprep.subr.bf16.mxu1 %v4791_v35  ;;  %2271 = vmatpush1.bf16.msra.mxu0 %v5192_v44  ;;  %v5211_v35 = vld [vmem:[#allocation9 + $0x124] ss:$24 sps:$4 sm:$0xff]  }
 0x59a   :  { %2272 = vmatprep.subr.bf16.mxu0 %v5195_v52 }
 0x59c   :  { %2174 = vmatpush1.bf16.msra.mxu1 %v4796_v36  ;;  %v5216_v36 = vld [vmem:[#allocation9 + $0x120] ss:$24 sps:$4 sm:$0xff]  }
 0x59d   :  { %2175 = vmatprep.subr.bf16.mxu1 %v4799_v38  ;;  %2273 = vmatpush1.bf16.msra.mxu0 %v5200_v49  ;;  %v5219_v38 = vld [vmem:[#allocation9 + $0x154] ss:$24 sps:$4 sm:$0xff]  }
 0x59e   :  { %2274 = vmatprep.subr.bf16.mxu0 %v5203_v22 }
 0x5a0   :  { %2176 = vmatpush1.bf16.msra.mxu1 %v4804_v8  ;;  %v5224_v8 = vld [vmem:[#allocation9 + $0x150] ss:$24 sps:$4 sm:$0xff]  }
 0x5a1   :  { %2177 = vmatprep.subr.bf16.mxu1 %v4807_v53  ;;  %2275 = vmatpush1.bf16.msra.mxu0 %v5208_v42  ;;  %v5227_v53 = vld [vmem:[#allocation9 + $0x184] ss:$24 sps:$4 sm:$0xff]  }
 0x5a2   :  { %2276 = vmatprep.subr.bf16.mxu0 %v5211_v35 }
 0x5a4   :  { %2178 = vmatpush1.bf16.msra.mxu1 %v4812_v33  ;;  %v5232_v33 = vld [vmem:[#allocation9 + $0x180] ss:$24 sps:$4 sm:$0xff]  }
 0x5a5   :  { %2179 = vmatprep.subr.bf16.mxu1 %v4815_v60  ;;  %2277 = vmatpush1.bf16.msra.mxu0 %v5216_v36  ;;  %v5235_v60 = vld [vmem:[#allocation9 + $0x1b4] ss:$24 sps:$4 sm:$0xff]  }
 0x5a6   :  { %2278 = vmatprep.subr.bf16.mxu0 %v5219_v38 }
 0x5a8   :  { %2180 = vmatpush1.bf16.msra.mxu1 %v4820_v9  ;;  %v5240_v9 = vld [vmem:[#allocation9 + $0x1b0] ss:$24 sps:$4 sm:$0xff]  }
 0x5a9   :  { %2181 = vmatprep.subr.bf16.mxu1 %v4823_v31  ;;  %2279 = vmatpush1.bf16.msra.mxu0 %v5224_v8  ;;  %6351 = vst [vmem:[#allocation31_spill] sm:$0xff] %v5240_v9  ;;  %v5243_v31 = vld [vmem:[#allocation9 + $0x1e4] ss:$24 sps:$4 sm:$0xff]  }
 0x5aa   :  { %2280 = vmatprep.subr.bf16.mxu0 %v5227_v53  ;;  %6352 = vst [vmem:[#allocation18_spill] sm:$0xff] %v5243_v31 }
 0x5ac   :  { %2182 = vmatpush1.bf16.msra.mxu1 %v4828_v40  ;;  %v5251_v40 = vld [vmem:[#allocation9 + $0x214] ss:$24 sps:$4 sm:$0xff]  }
 0x5ad   :  { %2183 = vmatprep.subr.bf16.mxu1 %v4831_v30  ;;  %2281 = vmatpush1.bf16.msra.mxu0 %v5232_v33  ;;  %v5248_v30 = vld [vmem:[#allocation9 + $0x1e0] ss:$24 sps:$4 sm:$0xff]   ;;  %6354 = vst [vmem:[#allocation22_spill] sm:$0xff] %v5251_v40 }
 0x5ae   :  { %2282 = vmatprep.subr.bf16.mxu0 %v5235_v60  ;;  %6353 = vst [vmem:[#allocation20_spill] sm:$0xff] %v5248_v30 }
 0x5b0   :  { %2184 = vmatpush1.bf16.msra.mxu1 %v4836_v47  ;;  %v5256_v47 = vld [vmem:[#allocation9 + $0x210] ss:$24 sps:$4 sm:$0xff]  }
 0x5b1   :  { %2185 = vmatprep.subr.bf16.mxu1 %v6293_v14  ;;  %2283 = vmatpush1.bf16.msra.mxu0 %v5240_v9  ;;  %6355 = vst [vmem:[#allocation23_spill] sm:$0xff] %v5256_v47  ;;  %v5259_v14 = vld [vmem:[#allocation9 + $0x244] ss:$24 sps:$4 sm:$0xff]  }
 0x5b2   :  { %2284 = vmatprep.subr.bf16.mxu0 %v5243_v31  ;;  %6356 = vst [vmem:[#allocation24_spill] sm:$0xff] %v5259_v14 }
 0x5b4   :  { %2186 = vmatpush1.bf16.msra.mxu1 %v5043_v23 }
 0x5b5   :  { %2187 = vmatprep.subr.bf16.mxu1 %v5046_v62  ;;  %2285 = vmatpush1.bf16.msra.mxu0 %v5248_v30 }
 0x5b6   :  { %2286 = vmatprep.subr.bf16.mxu0 %v5251_v40 }
 0x5b8   :  { %2188 = vmatpush1.bf16.msra.mxu1 %v5051_v61 }
 0x5b9   :  { %2189 = vmatprep.subr.bf16.mxu1 %v5054_v16  ;;  %2287 = vmatpush1.bf16.msra.mxu0 %v5256_v47 }
 0x5ba   :  { %2288 = vmatprep.subr.bf16.mxu0 %v5259_v14 }
 0x5bc   :  { %2190 = vmatpush1.bf16.msra.mxu1 %v5059_v19 }
 0x5bd   :  { %2191 = vmatprep.subr.bf16.mxu1 %v5062_v21  ;;  %2289 = vmatpush1.bf16.msra.mxu0 %v6300_v57  ;;  %v5275_v57 = vld [vmem:[#allocation9 + $0xc] ss:$24 sps:$4 sm:$0xff]  }
 0x5be   :  { %2290 = vmatprep.subr.bf16.mxu0 %v6301_v55  ;;  %6357 = vst [vmem:[#allocation26_spill] sm:$0xff] %v5275_v57  ;;  %v6358_v55 = vld [vmem:[#allocation45_spill] sm:$0xff] }
 0x5c0   :  { %2192 = vmatpush1.bf16.msra.mxu1 %v5067_v59 }
 0x5c1   :  { %2193 = vmatprep.subr.bf16.mxu1 %v5070_v18  ;;  %2291 = vmatpush1.bf16.msra.mxu0 %v6302_v1  ;;  %v5281_v1 = vld [vmem:[#allocation9 + $0x8] ss:$24 sps:$4 sm:$0xff]  }
 0x5c2   :  { %2292 = vmatprep.subr.bf16.mxu0 %v6303_v2  ;;  %6360 = vst [vmem:[#allocation33_spill] sm:$0xff] %v5281_v1  ;;  %v5284_v2 = vld [vmem:[#allocation9 + $0x3c] ss:$24 sps:$4 sm:$0xff]  }
 0x5c3   :  { %6361 = vst [vmem:[#allocation35_spill] sm:$0xff] %v5284_v2 }
 0x5c4   :  { %2194 = vmatpush1.bf16.msra.mxu1 %v5075_v27 }
 0x5c5   :  { %2195 = vmatprep.subr.bf16.mxu1 %v5078_v54  ;;  %2293 = vmatpush1.bf16.msra.mxu0 %v6305_v0  ;;  %v5287_v0 = vld [vmem:[#allocation9 + $0x38] ss:$24 sps:$4 sm:$0xff]  }
 0x5c6   :  { %2294 = vmatprep.subr.bf16.mxu0 %v6306_v41  ;;  %6362 = vst [vmem:[#allocation37_spill] sm:$0xff] %v5287_v0  ;;  %v5290_v41 = vld [vmem:[#allocation9 + $0x6c] ss:$24 sps:$4 sm:$0xff]  }
 0x5c7   :  { %6363 = vst [vmem:[#allocation39_spill] sm:$0xff] %v5290_v41 }
 0x5c8   :  { %2196 = vmatpush1.bf16.msra.mxu1 %v5083_v12 }
 0x5c9   :  { %2305 = vmatprep.subr.bf16.mxu1 %v5275_v57  ;;  %2295 = vmatpush1.bf16.msra.mxu0 %v6358_v55  ;;  %v6376_v55 = vld [vmem:[#allocation94_spill] sm:$0xff]  ;;  %v6396_v57 = vld [vmem:[#allocation59_spill] sm:$0xff] }
 0x5ca   :  { %2346 = vmatprep.subr.bf16.mxu0 %v6359_v6  ;;  %v6377_v6 = vld [vmem:[#allocation95_spill] sm:$0xff] }
 0x5cb   :  { %2198 = vmatmul.mubr.bf16.vlgmr.msra.gmra.mrb[44].mxu1 %v5162_v7  ;;  %v6375_v7 = vld [vmem:[#allocation93_spill] sm:$0xff] }
 0x5cc   :  { %2306 = vmatpush1.bf16.msra.mxu1 %v5281_v1 }
 0x5cd   :  { %2307 = vmatprep.subr.bf16.mxu1 %v5284_v2  ;;  %v6395_v2 = vld [vmem:[#allocation62_spill] sm:$0xff] }
 0x5d0   :  { %2308 = vmatpush1.bf16.msra.mxu1 %v5287_v0 }
 0x5d1   :  { %2309 = vmatprep.subr.bf16.mxu1 %v5290_v41  ;;  %v6394_v41 = vld [vmem:[#allocation60_spill] sm:$0xff] }
 0x5d4   :  { %2310 = vmatpush1.bf16.msra.mxu1 %v5293_v29 }
 0x5d5   :  { %2311 = vmatprep.subr.bf16.mxu1 %v5296_v45  ;;  %v6393_v45 = vld [vmem:[#allocation90_spill] sm:$0xff] }
 0x5d8   :  { %2312 = vmatpush1.bf16.msra.mxu1 %v5299_v34 }
 0x5d9   :  { %2313 = vmatprep.subr.bf16.mxu1 %v5302_v43  ;;  %v6379_v43 = vld [vmem:[#allocation97_spill] sm:$0xff] }
 0x5dc   :  { %2314 = vmatpush1.bf16.msra.mxu1 %v5305_v50  ;;  %v6378_v50 = vld [vmem:[#allocation96_spill] sm:$0xff] }
 0x5dd   :  { %2315 = vmatprep.subr.bf16.mxu1 %v5308_v4  ;;  %v6380_v4 = vld [vmem:[#allocation98_spill] sm:$0xff] }
 0x5e0   :  { %2316 = vmatpush1.bf16.msra.mxu1 %v6370_v46  ;;  %v6381_v46 = vld [vmem:[#allocation99_spill] sm:$0xff] }
 0x5e1   :  { %2317 = vmatprep.subr.bf16.mxu1 %v6371_v24  ;;  %v6382_v24 = vld [vmem:[#allocation100_spill] sm:$0xff] }
 0x5e4   :  { %2318 = vmatpush1.bf16.msra.mxu1 %v6372_v58  ;;  %v6383_v58 = vld [vmem:[#allocation101_spill] sm:$0xff] }
 0x5e5   :  { %2319 = vmatprep.subr.bf16.mxu1 %v6373_v20  ;;  %v6384_v20 = vld [vmem:[#allocation102_spill] sm:$0xff] }
 0x5e8   :  { %2320 = vmatpush1.bf16.msra.mxu1 %v6374_v48  ;;  %v6385_v48 = vld [vmem:[#allocation103_spill] sm:$0xff] }
 0x5e9   :  { %2321 = vmatprep.subr.bf16.mxu1 %v6375_v7  ;;  %v6386_v7 = vld [vmem:[#allocation104_spill] sm:$0xff] }
 0x5ec   :  { %2322 = vmatpush1.bf16.msra.mxu1 %v6376_v55  ;;  %v6387_v55 = vld [vmem:[#allocation105_spill] sm:$0xff] }
 0x5ed   :  { %2323 = vmatprep.subr.bf16.mxu1 %v6377_v6  ;;  %v6388_v6 = vld [vmem:[#allocation106_spill] sm:$0xff] }
 0x5f0   :  { %2324 = vmatpush1.bf16.msra.mxu1 %v6378_v50  ;;  %v6389_v50 = vld [vmem:[#allocation107_spill] sm:$0xff] }
 0x5f1   :  { %2325 = vmatprep.subr.bf16.mxu1 %v6379_v43  ;;  %v6390_v43 = vld [vmem:[#allocation108_spill] sm:$0xff] }
 0x5f4   :  { %2326 = vmatpush1.bf16.msra.mxu1 %v6380_v4  ;;  %v5332_v4 = vld [vmem:[#allocation9 + $0x4] ss:$24 sps:$4 sm:$0xff]  }
 0x5f5   :  { %2327 = vmatprep.subr.bf16.mxu1 %v6381_v46  ;;  %6391 = vst [vmem:[#allocation36_spill] sm:$0xff] %v5332_v4 }
 0x5f8   :  { %2328 = vmatpush1.bf16.msra.mxu1 %v6382_v24 }
 0x5f9   :  { %2329 = vmatprep.subr.bf16.mxu1 %v6383_v58  ;;  %v6392_v58 = vld [vmem:[#allocation89_spill] sm:$0xff] }
 0x5fc   :  { %2330 = vmatpush1.bf16.msra.mxu1 %v6384_v20 }
 0x5fd   :  { %2331 = vmatprep.subr.bf16.mxu1 %v6385_v48 }
 0x600   :  { %2332 = vmatpush1.bf16.msra.mxu1 %v6386_v7 }
 0x601   :  { %2333 = vmatprep.subr.bf16.mxu1 %v6387_v55 }
 0x604   :  { %2334 = vmatpush1.bf16.msra.mxu1 %v6388_v6 }
 0x605   :  { %2335 = vmatprep.subr.bf16.mxu1 %v6389_v50 }
 0x608   :  { %2336 = vmatpush1.bf16.msra.mxu1 %v6390_v43 }
 0x609   :  { %2445 = vmatprep.subr.bf16.mxu1 %v5332_v4 }
 0x65e   :  { %v2117_v46 = vpop.f32.mrb[40].mxu1  ;;  %v2158_v24 = vpop.f32.mrb[56].mxu0 }
 0x65f   :  { %v2118_v20 = vadd.f32 %v2117_v46, %v6392_v58  ;;  %v2119_v34 = vpop.f32.mrb[41].mxu1  ;;  %v2160_v48 = vpop.f32.mrb[57].mxu0 }
 0x660   :  { %v2120_v7 = vadd.f32 %v2119_v34, %v6393_v45  ;;  %v2161_v55 = vadd.f32 %v2160_v48, %v4490_v3  ;;  %v2121_v29 = vpop.f32.mrb[42].mxu1  ;;  %v2162_v6 = vpop.f32.mrb[58].mxu0 }
 0x661   :  { %v2212_v50 = vadd.f32 %v2118_v20, %v6394_v41  ;;  %v2122_v0 = vpop.f32.mrb[43].mxu1  ;;  %v2163_v43 = vpop.f32.mrb[59].mxu0  ;;  %v2159_v29 = vadd.f32 %v2158_v24, %v4485_v51  ;;  %v2076_v24 = vsel %vm2075_vm15, %v5143_v17, 0.0 }
 0x662   :  { %v2219_v1 = vadd.f32 %v2120_v7, %v6395_v2  ;;  %v2233_v4 = vadd.f32 %v2161_v55, %v6396_v57  ;;  %v6397_v0 = vld [vmem:[#allocation61_spill] sm:$0xff] }
 0x663   :  { %v3038_v12 = vmul.f32 -1.442695, %v2212_v50 }
 0x664   :  { %v3039_v54 = vmul.f32 -1.442695, %v2219_v1  ;;  %v3040_v2 = vmul.f32 -1.442695, %v2233_v4 }
 0x665   :  { %3368 = vpow2.f32 %v3038_v12 }
 0x666   :  { %3370 = vpow2.f32 %v3039_v54 }
 0x66f   :  { %v3369_v46 = vpop.eup %3368 }
 0x670   :  { %v2216_v58 = vadd.f32 1.0, %v3369_v46  ;;  %v3371_v34 = vpop.eup %3370 }
 0x671   :  { %v2223_v45 = vadd.f32 1.0, %v3371_v34 }
 0x672   :  { %3372 = vrcp.f32 %v2216_v58 }
 0x673   :  { %3374 = vrcp.f32 %v2223_v45 }
 0x67c   :  { %v3373_v48 = vpop.eup %3372 }
 0x67d   :  { %v2226_v6 = vmul.f32 %v3373_v48, %v2159_v29  ;;  %v3375_v57 = vpop.eup %3374 }
 0x67e   :  { %v2229_v20 = vsub.f32 1.0, %v3375_v57  ;;  %v2231_v54 = vmul.f32 %v3375_v57, %v5150_v10  ;;  %v6399_v57 = vld [vmem:[#allocation82_spill] sm:$0xff] }
 0x67f   :  { %v2227_v41 = vadd.f32 %v2226_v6, %v6397_v0  ;;  %v6398_v6 = vld [vmem:[#allocation81_spill] sm:$0xff] }
 0x681   :  { %3376 = vtanh.f32 %v2227_v41 }
 0x682   :  { %3378 = vpow2.f32 %v3040_v2 }
 0x68b   :  { %v3377_v12 = vpop.eup %3376 }
 0x68c   :  { %v2230_v1 = vmul.f32 %v3377_v12, %v2229_v20  ;;  %v3379_v58 = vpop.eup %3378 }
 0x68d   :  { %v2237_v50 = vadd.f32 1.0, %v3379_v58 }
 0x68e   :  { %v2232_v7 = vadd.f32 %v2231_v54, %v2230_v1 }
 0x68f   :  { %3380 = vrcp.f32 %v2237_v50 }
 0x690   :  { %v2254_v45 = vsel %vm2075_vm15, %v2232_v7, 0.0 }
 0x691   :  { %v2827_v55 = vadd.f32 %v2254_v45, %v2076_v24 }
 0x693   :  { %2835 = vst [vmem:[#allocation10 + $0x20] sm:$0xff] %v2827_v55 }
 0x699   :  { %v3381_v48 = vpop.eup %3380 }
 0x69e   :  { %v2199_v4 = vpop.f32.mrb[44].mxu1 }
 0x69f   :  { %v2200_v43 = vadd.f32 %v2199_v4, %v4511_v56  ;;  %v2201_v46 = vpop.f32.mrb[45].mxu1  ;;  %v5357_v4 = vsel %vm2075_vm15, %v2232_v7, %v5150_v10  ;;  %v5385_v10 = vld [vmem:[#allocation9 + $0x40] ss:$24 sps:$4 sm:$0xff]   ;;  %v5393_v7 = vld [vmem:[#allocation9 + $0x70] ss:$24 sps:$4 sm:$0xff]  }
 0x6a0   :  { %v2202_v34 = vadd.f32 %v2201_v46, %v4516_v63  ;;  %v2203_v29 = vpop.f32.mrb[46].mxu1  ;;  %v5373_v32 = vpack.c.bf16 %v5357_v4, %v5357_v4 }
 0x6a1   :  { %v2240_v0 = vadd.f32 %v2200_v43, %v6398_v6  ;;  %v2204_v41 = vpop.f32.mrb[47].mxu1  ;;  %v2068_v43 = vsel %vm2067_vm14, %v5131_v25, 0.0  ;;  %v5377_v25 = vld [vmem:[#allocation9 + $0x10] ss:$24 sps:$4 sm:$0xff]   ;;  %v5396_v6 = vld [vmem:[#allocation9 + $0xa4] ss:$24 sps:$4 sm:$0xff]  }
 0x6a2   :  { %v2247_v2 = vmul.f32 %v3381_v48, %v2202_v34  ;;  %v5404_v41 = vld [vmem:[#allocation9 + $0xd4] ss:$24 sps:$4 sm:$0xff]  }
 0x6a3   :  { %v3041_v17 = vmul.f32 -1.442695, %v2240_v0  ;;  %v5401_v0 = vld [vmem:[#allocation9 + $0xa0] ss:$24 sps:$4 sm:$0xff]  }
 0x6a4   :  { %v2248_v20 = vadd.f32 %v2247_v2, %v6399_v57  ;;  %v5409_v2 = vld [vmem:[#allocation9 + $0xd0] ss:$24 sps:$4 sm:$0xff]   ;;  %v5417_v57 = vld [vmem:[#allocation9 + $0x100] ss:$24 sps:$4 sm:$0xff]  }
 0x6a5   :  { %3382 = vpow2.f32 %v3041_v17  ;;  %v5412_v17 = vld [vmem:[#allocation9 + $0x104] ss:$24 sps:$4 sm:$0xff]  }
 0x6af   :  { %v3383_v12 = vpop.eup %3382 }
 0x6b0   :  { %v2244_v1 = vadd.f32 1.0, %v3383_v12  ;;  %v5425_v12 = vld [vmem:[#allocation9 + $0x130] ss:$24 sps:$4 sm:$0xff]  }
 0x6b2   :  { %3384 = vrcp.f32 %v2244_v1  ;;  %v5428_v1 = vld [vmem:[#allocation9 + $0x164] ss:$24 sps:$4 sm:$0xff]  }
 0x6b3   :  { %3386 = vtanh.f32 %v2248_v20  ;;  %v5420_v20 = vld [vmem:[#allocation9 + $0x134] ss:$24 sps:$4 sm:$0xff]  }
 0x6bc   :  { %v3385_v54 = vpop.eup %3384 }
 0x6bd   :  { %v2250_v58 = vsub.f32 1.0, %v3385_v54  ;;  %v3387_v24 = vpop.eup %3386  ;;  %v2252_v55 = vmul.f32 %v3385_v54, %v5156_v26  ;;  %v5433_v54 = vld [vmem:[#allocation9 + $0x160] ss:$24 sps:$4 sm:$0xff]  }
 0x6bf   :  { %v2251_v45 = vmul.f32 %v3387_v24, %v2250_v58  ;;  %v5436_v58 = vld [vmem:[#allocation9 + $0x194] ss:$24 sps:$4 sm:$0xff]   ;;  %v5441_v24 = vld [vmem:[#allocation9 + $0x190] ss:$24 sps:$4 sm:$0xff]  }
 0x6c1   :  { %v2253_v50 = vadd.f32 %v2252_v55, %v2251_v45  ;;  %v5444_v45 = vld [vmem:[#allocation9 + $0x1c4] ss:$24 sps:$4 sm:$0xff]   ;;  %v5449_v55 = vld [vmem:[#allocation9 + $0x1c0] ss:$24 sps:$4 sm:$0xff]  }
 0x6c3   :  { %v2257_v46 = vsel %vm2067_vm14, %v2253_v50, 0.0  ;;  %v5367_v34 = vsel %vm2067_vm14, %v2253_v50, %v5156_v26  ;;  %v5388_v26 = vld [vmem:[#allocation9 + $0x74] ss:$24 sps:$4 sm:$0xff]  }
 0x6c4   :  { %v2263_v29 = vpack.c.bf16 %v5367_v34, %v5367_v34  ;;  %v2826_v48 = vadd.f32 %v2257_v46, %v2068_v43  ;;  %v5452_v50 = vld [vmem:[#allocation9 + $0x1f4] ss:$24 sps:$4 sm:$0xff]   ;;  %v5467_v43 = vld [vmem:[#allocation9 + $0x240] ss:$24 sps:$4 sm:$0xff]   ;;  %v5491_v46 = vld [vmem:[#allocation9 + $0x2d0] ss:$24 sps:$4 sm:$0xff]  }
 0x6c5   :  { %6400 = vst [vmem:[#allocation38_spill] sm:$0xff] %v5452_v50  ;;  %6401 = vst [vmem:[#allocation40_spill] sm:$0xff] %v5467_v43 }
 0x6c6   :  { %2296 = vmatprep.mubr.bf16.mxu0 %v2263_v29  ;;  %2834 = vst [vmem:[#allocation10 + $0x18] sm:$0xff] %v2826_v48  ;;  %2337 = vmatprep.mubr.bf16.mxu1 %v2263_v29  ;;  %6410 = vst [vmem:[#allocation56_spill] sm:$0xff] %v5491_v46  ;;  %v6413_v48 = vld [vmem:[#allocation35_spill] sm:$0xff] }
 0x6c7   :  { %2297 = vmatmul.mubr.bf16.vlgmr.msra.gmra.mrb[60].mxu0 %v5373_v32  ;;  %2338 = vmatmul.mubr.bf16.vlgmr.msra.gmra.mrb[48].mxu1 %v5373_v32 }
 0x6c8   :  { %2347 = vmatpush1.bf16.msra.mxu0 %v5377_v25  ;;  %2378 = vmatprep.mubr.bf16.mxu0 %v2263_v29  ;;  %v5494_v29 = vld [vmem:[#allocation9 + $0x14] ss:$24 sps:$4 sm:$0xff]  }
 0x6c9   :  { %2348 = vmatprep.subr.bf16.mxu0 %v5380_v37  ;;  %2446 = vmatpush1.bf16.msra.mxu1 %v5168_v5  ;;  %6411 = vst [vmem:[#allocation58_spill] sm:$0xff] %v5494_v29 }
 0x6ca   :  { %2447 = vmatprep.subr.bf16.mxu1 %v5171_v39 }
 0x6cc   :  { %2349 = vmatpush1.bf16.msra.mxu0 %v5385_v10 }
 0x6cd   :  { %2350 = vmatprep.subr.bf16.mxu0 %v5388_v26  ;;  %2448 = vmatpush1.bf16.msra.mxu1 %v5176_v15 }
 0x6ce   :  { %2449 = vmatprep.subr.bf16.mxu1 %v5179_v13 }
 0x6d0   :  { %2351 = vmatpush1.bf16.msra.mxu0 %v5393_v7 }
 0x6d1   :  { %2352 = vmatprep.subr.bf16.mxu0 %v5396_v6  ;;  %2450 = vmatpush1.bf16.msra.mxu1 %v5184_v11 }
 0x6d2   :  { %2451 = vmatprep.subr.bf16.mxu1 %v5187_v28 }
 0x6d4   :  { %2353 = vmatpush1.bf16.msra.mxu0 %v5401_v0 }
 0x6d5   :  { %2354 = vmatprep.subr.bf16.mxu0 %v5404_v41  ;;  %2452 = vmatpush1.bf16.msra.mxu1 %v5192_v44 }
 0x6d6   :  { %2453 = vmatprep.subr.bf16.mxu1 %v5195_v52 }
 0x6d8   :  { %2355 = vmatpush1.bf16.msra.mxu0 %v5409_v2 }
 0x6d9   :  { %2356 = vmatprep.subr.bf16.mxu0 %v5412_v17  ;;  %2454 = vmatpush1.bf16.msra.mxu1 %v5200_v49 }
 0x6da   :  { %2455 = vmatprep.subr.bf16.mxu1 %v5203_v22 }
 0x6dc   :  { %2357 = vmatpush1.bf16.msra.mxu0 %v5417_v57 }
 0x6dd   :  { %2358 = vmatprep.subr.bf16.mxu0 %v5420_v20  ;;  %2456 = vmatpush1.bf16.msra.mxu1 %v5208_v42 }
 0x6de   :  { %2457 = vmatprep.subr.bf16.mxu1 %v5211_v35 }
 0x6e0   :  { %2359 = vmatpush1.bf16.msra.mxu0 %v5425_v12 }
 0x6e1   :  { %2360 = vmatprep.subr.bf16.mxu0 %v5428_v1  ;;  %2458 = vmatpush1.bf16.msra.mxu1 %v5216_v36 }
 0x6e2   :  { %2459 = vmatprep.subr.bf16.mxu1 %v5219_v38 }
 0x6e4   :  { %2361 = vmatpush1.bf16.msra.mxu0 %v5433_v54 }
 0x6e5   :  { %2362 = vmatprep.subr.bf16.mxu0 %v5436_v58  ;;  %2460 = vmatpush1.bf16.msra.mxu1 %v5224_v8 }
 0x6e6   :  { %2461 = vmatprep.subr.bf16.mxu1 %v5227_v53 }
 0x6e8   :  { %2363 = vmatpush1.bf16.msra.mxu0 %v5441_v24 }
 0x6e9   :  { %2364 = vmatprep.subr.bf16.mxu0 %v5444_v45  ;;  %2462 = vmatpush1.bf16.msra.mxu1 %v5232_v33 }
 0x6ea   :  { %2463 = vmatprep.subr.bf16.mxu1 %v5235_v60 }
 0x6ec   :  { %2365 = vmatpush1.bf16.msra.mxu0 %v5449_v55 }
 0x6ed   :  { %2366 = vmatprep.subr.bf16.mxu0 %v5452_v50  ;;  %2464 = vmatpush1.bf16.msra.mxu1 %v5240_v9 }
 0x6ee   :  { %2465 = vmatprep.subr.bf16.mxu1 %v5243_v31  ;;  %v6448_v31 = vld [vmem:[#allocation55_spill] sm:$0xff] }
 0x6f0   :  { %2367 = vmatpush1.bf16.msra.mxu0 %v5043_v23  ;;  %v5470_v23 = vld [vmem:[#allocation9 + $0x274] ss:$24 sps:$4 sm:$0xff]  }
 0x6f1   :  { %2368 = vmatprep.subr.bf16.mxu0 %v5046_v62  ;;  %2466 = vmatpush1.bf16.msra.mxu1 %v5248_v30  ;;  %6402 = vst [vmem:[#allocation42_spill] sm:$0xff] %v5470_v23  ;;  %v5475_v62 = vld [vmem:[#allocation9 + $0x270] ss:$24 sps:$4 sm:$0xff]   ;;  %v6447_v30 = vld [vmem:[#allocation66_spill] sm:$0xff] }
 0x6f2   :  { %2467 = vmatprep.subr.bf16.mxu1 %v5251_v40  ;;  %6403 = vst [vmem:[#allocation44_spill] sm:$0xff] %v5475_v62 }
 0x6f4   :  { %2369 = vmatpush1.bf16.msra.mxu0 %v5051_v61  ;;  %v5478_v61 = vld [vmem:[#allocation9 + $0x2a4] ss:$24 sps:$4 sm:$0xff]  }
 0x6f5   :  { %2370 = vmatprep.subr.bf16.mxu0 %v5054_v16  ;;  %2468 = vmatpush1.bf16.msra.mxu1 %v5256_v47  ;;  %6404 = vst [vmem:[#allocation46_spill] sm:$0xff] %v5478_v61  ;;  %v6405_v16 = vld [vmem:[#allocation85_spill] sm:$0xff] }
 0x6f6   :  { %2469 = vmatprep.subr.bf16.mxu1 %v5259_v14  ;;  %v6446_v14 = vld [vmem:[#allocation64_spill] sm:$0xff] }
 0x6f8   :  { %2371 = vmatpush1.bf16.msra.mxu0 %v5059_v19  ;;  %v5483_v19 = vld [vmem:[#allocation9 + $0x2a0] ss:$24 sps:$4 sm:$0xff]  }
 0x6f9   :  { %2372 = vmatprep.subr.bf16.mxu0 %v5062_v21  ;;  %2470 = vmatpush1.bf16.msra.mxu1 %v5467_v43  ;;  %6406 = vst [vmem:[#allocation47_spill] sm:$0xff] %v5483_v19  ;;  %v5486_v21 = vld [vmem:[#allocation9 + $0x2d4] ss:$24 sps:$4 sm:$0xff]  }
 0x6fa   :  { %2471 = vmatprep.subr.bf16.mxu1 %v5470_v23  ;;  %6407 = vst [vmem:[#allocation48_spill] sm:$0xff] %v5486_v21 }
 0x6fc   :  { %2373 = vmatpush1.bf16.msra.mxu0 %v5067_v59  ;;  %v6408_v59 = vld [vmem:[#allocation86_spill] sm:$0xff] }
 0x6fd   :  { %2374 = vmatprep.subr.bf16.mxu0 %v5070_v18  ;;  %2472 = vmatpush1.bf16.msra.mxu1 %v5475_v62  ;;  %v6409_v18 = vld [vmem:[#allocation26_spill] sm:$0xff] }
 0x6fe   :  { %2473 = vmatprep.subr.bf16.mxu1 %v5478_v61  ;;  %v6420_v61 = vld [vmem:[#allocation32_spill] sm:$0xff] }
 0x700   :  { %2375 = vmatpush1.bf16.msra.mxu0 %v5075_v27  ;;  %v6412_v27 = vld [vmem:[#allocation33_spill] sm:$0xff] }
 0x701   :  { %2376 = vmatprep.subr.bf16.mxu0 %v6405_v16  ;;  %2474 = vmatpush1.bf16.msra.mxu1 %v5483_v19  ;;  %v6414_v16 = vld [vmem:[#allocation37_spill] sm:$0xff]  ;;  %v6418_v19 = vld [vmem:[#allocation28_spill] sm:$0xff] }
 0x702   :  { %2475 = vmatprep.subr.bf16.mxu1 %v5486_v21  ;;  %v6415_v21 = vld [vmem:[#allocation39_spill] sm:$0xff] }
 0x704   :  { %2377 = vmatpush1.bf16.msra.mxu0 %v6408_v59  ;;  %v6416_v59 = vld [vmem:[#allocation41_spill] sm:$0xff] }
 0x705   :  { %2486 = vmatprep.subr.bf16.mxu0 %v6409_v18  ;;  %2476 = vmatpush1.bf16.msra.mxu1 %v5491_v46  ;;  %v6417_v18 = vld [vmem:[#allocation43_spill] sm:$0xff]  ;;  %v6419_v46 = vld [vmem:[#allocation30_spill] sm:$0xff] }
 0x706   :  { %2527 = vmatprep.subr.bf16.mxu1 %v5494_v29  ;;  %v6421_v29 = vld [vmem:[#allocation34_spill] sm:$0xff] }
 0x707   :  { %2379 = vmatmul.mubr.bf16.vlgmr.msra.gmra.mrb[64].mxu0 %v5373_v32  ;;  %v5508_v32 = vld [vmem:[#allocation9 + $0xf8] ss:$24 sps:$4 sm:$0xff]  }
 0x708   :  { %2487 = vmatpush1.bf16.msra.mxu0 %v6412_v27  ;;  %6422 = vst [vmem:[#allocation63_spill] sm:$0xff] %v5508_v32  ;;  %v6445_v27 = vld [vmem:[#allocation90_spill] sm:$0xff] }
 0x709   :  { %2488 = vmatprep.subr.bf16.mxu0 %v6413_v48  ;;  %v5511_v48 = vld [vmem:[#allocation9 + $0x12c] ss:$24 sps:$4 sm:$0xff]  }
 0x70a   :  { %6423 = vst [vmem:[#allocation57_spill] sm:$0xff] %v5511_v48 }
 0x70c   :  { %2489 = vmatpush1.bf16.msra.mxu0 %v6414_v16 }
 0x70d   :  { %2490 = vmatprep.subr.bf16.mxu0 %v6415_v21  ;;  %v5514_v21 = vld [vmem:[#allocation9 + $0x128] ss:$24 sps:$4 sm:$0xff]  }
 0x70e   :  { %6424 = vst [vmem:[#allocation83_spill] sm:$0xff] %v5514_v21 }
 0x710   :  { %2491 = vmatpush1.bf16.msra.mxu0 %v6416_v59 }
 0x711   :  { %2492 = vmatprep.subr.bf16.mxu0 %v6417_v18  ;;  %v5517_v18 = vld [vmem:[#allocation9 + $0x15c] ss:$24 sps:$4 sm:$0xff]  }
 0x712   :  { %6425 = vst [vmem:[#allocation84_spill] sm:$0xff] %v5517_v18 }
 0x714   :  { %2493 = vmatpush1.bf16.msra.mxu0 %v6418_v19  ;;  %v6444_v19 = vld [vmem:[#allocation89_spill] sm:$0xff] }
 0x715   :  { %2494 = vmatprep.subr.bf16.mxu0 %v6419_v46  ;;  %v5520_v46 = vld [vmem:[#allocation9 + $0x158] ss:$24 sps:$4 sm:$0xff]  }
 0x716   :  { %6426 = vst [vmem:[#allocation45_spill] sm:$0xff] %v5520_v46 }
 0x718   :  { %2495 = vmatpush1.bf16.msra.mxu0 %v6420_v61 }
 0x719   :  { %2496 = vmatprep.subr.bf16.mxu0 %v6421_v29  ;;  %v5523_v29 = vld [vmem:[#allocation9 + $0x18c] ss:$24 sps:$4 sm:$0xff]  }
 0x71a   :  { %6427 = vst [vmem:[#allocation49_spill] sm:$0xff] %v5523_v29 }
 0x71c   :  { %2497 = vmatpush1.bf16.msra.mxu0 %v5508_v32  ;;  %v5526_v32 = vld [vmem:[#allocation9 + $0x188] ss:$24 sps:$4 sm:$0xff]  }
 0x71d   :  { %2498 = vmatprep.subr.bf16.mxu0 %v5511_v48  ;;  %6428 = vst [vmem:[#allocation51_spill] sm:$0xff] %v5526_v32  ;;  %v5529_v48 = vld [vmem:[#allocation9 + $0x1bc] ss:$24 sps:$4 sm:$0xff]  }
 0x71e   :  { %6429 = vst [vmem:[#allocation71_spill] sm:$0xff] %v5529_v48 }
 0x720   :  { %2499 = vmatpush1.bf16.msra.mxu0 %v5514_v21  ;;  %v5532_v21 = vld [vmem:[#allocation9 + $0x1b8] ss:$24 sps:$4 sm:$0xff]  }
 0x721   :  { %2500 = vmatprep.subr.bf16.mxu0 %v5517_v18  ;;  %6430 = vst [vmem:[#allocation17_spill] sm:$0xff] %v5532_v21  ;;  %v5535_v18 = vld [vmem:[#allocation9 + $0x1ec] ss:$24 sps:$4 sm:$0xff]  }
 0x722   :  { %6431 = vst [vmem:[#allocation87_spill] sm:$0xff] %v5535_v18 }
 0x724   :  { %2501 = vmatpush1.bf16.msra.mxu0 %v5520_v46  ;;  %v5538_v46 = vld [vmem:[#allocation9 + $0x1e8] ss:$24 sps:$4 sm:$0xff]  }
 0x725   :  { %2502 = vmatprep.subr.bf16.mxu0 %v5523_v29  ;;  %6432 = vst [vmem:[#allocation88_spill] sm:$0xff] %v5538_v46  ;;  %v5541_v29 = vld [vmem:[#allocation9 + $0x21c] ss:$24 sps:$4 sm:$0xff]  }
 0x726   :  { %6433 = vst [vmem:[#allocation93_spill] sm:$0xff] %v5541_v29 }
 0x728   :  { %2503 = vmatpush1.bf16.msra.mxu0 %v5526_v32  ;;  %v5544_v32 = vld [vmem:[#allocation9 + $0x218] ss:$24 sps:$4 sm:$0xff]  }
 0x729   :  { %2504 = vmatprep.subr.bf16.mxu0 %v5529_v48  ;;  %6434 = vst [vmem:[#allocation94_spill] sm:$0xff] %v5544_v32  ;;  %v5547_v48 = vld [vmem:[#allocation9 + $0x24c] ss:$24 sps:$4 sm:$0xff]  }
 0x72a   :  { %6435 = vst [vmem:[#allocation95_spill] sm:$0xff] %v5547_v48 }
 0x72c   :  { %2505 = vmatpush1.bf16.msra.mxu0 %v5532_v21  ;;  %v5550_v21 = vld [vmem:[#allocation9 + $0x248] ss:$24 sps:$4 sm:$0xff]  }
 0x72d   :  { %2506 = vmatprep.subr.bf16.mxu0 %v5535_v18  ;;  %6436 = vst [vmem:[#allocation96_spill] sm:$0xff] %v5550_v21  ;;  %v5553_v18 = vld [vmem:[#allocation9 + $0x27c] ss:$24 sps:$4 sm:$0xff]  }
 0x72e   :  { %6437 = vst [vmem:[#allocation97_spill] sm:$0xff] %v5553_v18 }
 0x730   :  { %2507 = vmatpush1.bf16.msra.mxu0 %v5538_v46  ;;  %v5556_v46 = vld [vmem:[#allocation9 + $0x278] ss:$24 sps:$4 sm:$0xff]  }
 0x731   :  { %2508 = vmatprep.subr.bf16.mxu0 %v5541_v29  ;;  %6438 = vst [vmem:[#allocation98_spill] sm:$0xff] %v5556_v46  ;;  %v5559_v29 = vld [vmem:[#allocation9 + $0x2ac] ss:$24 sps:$4 sm:$0xff]  }
 0x732   :  { %6439 = vst [vmem:[#allocation99_spill] sm:$0xff] %v5559_v29 }
 0x734   :  { %2509 = vmatpush1.bf16.msra.mxu0 %v5544_v32  ;;  %v5562_v32 = vld [vmem:[#allocation9 + $0x2a8] ss:$24 sps:$4 sm:$0xff]  }
 0x735   :  { %2510 = vmatprep.subr.bf16.mxu0 %v5547_v48  ;;  %6440 = vst [vmem:[#allocation100_spill] sm:$0xff] %v5562_v32  ;;  %v5565_v48 = vld [vmem:[#allocation9 + $0x2dc] ss:$24 sps:$4 sm:$0xff]  }
 0x736   :  { %6441 = vst [vmem:[#allocation101_spill] sm:$0xff] %v5565_v48 }
 0x738   :  { %2511 = vmatpush1.bf16.msra.mxu0 %v5550_v21  ;;  %v5568_v21 = vld [vmem:[#allocation9 + $0x2d8] ss:$24 sps:$4 sm:$0xff]  }
 0x739   :  { %2512 = vmatprep.subr.bf16.mxu0 %v5553_v18  ;;  %6442 = vst [vmem:[#allocation102_spill] sm:$0xff] %v5568_v21  ;;  %v6443_v18 = vld [vmem:[#allocation36_spill] sm:$0xff] }
 0x73c   :  { %2513 = vmatpush1.bf16.msra.mxu0 %v5556_v46 }
 0x73d   :  { %2514 = vmatprep.subr.bf16.mxu0 %v5559_v29 }
 0x740   :  { %2515 = vmatpush1.bf16.msra.mxu0 %v5562_v32 }
 0x741   :  { %2516 = vmatprep.subr.bf16.mxu0 %v5565_v48 }
 0x744   :  { %2517 = vmatpush1.bf16.msra.mxu0 %v5568_v21 }
 0x745   :  { %2626 = vmatprep.subr.bf16.mxu0 %v6443_v18 }
 0x79a   :  { %v2298_v61 = vpop.f32.mrb[60].mxu0  ;;  %v2339_v46 = vpop.f32.mrb[48].mxu1 }
 0x79b   :  { %v2299_v59 = vadd.f32 %v2298_v61, %v6444_v19  ;;  %v2300_v16 = vpop.f32.mrb[61].mxu0  ;;  %v2341_v29 = vpop.f32.mrb[49].mxu1 }
 0x79c   :  { %v2301_v62 = vadd.f32 %v2300_v16, %v6445_v27  ;;  %v2342_v32 = vadd.f32 %v2341_v29, %v4490_v3  ;;  %v2302_v23 = vpop.f32.mrb[62].mxu0  ;;  %v2343_v43 = vpop.f32.mrb[50].mxu1 }
 0x79d   :  { %v2393_v48 = vadd.f32 %v2299_v59, %v6446_v14  ;;  %v2303_v47 = vpop.f32.mrb[63].mxu0  ;;  %v2344_v40 = vpop.f32.mrb[51].mxu1  ;;  %v2340_v23 = vadd.f32 %v2339_v46, %v4485_v51  ;;  %v5689_v59 = vld [vmem:[#allocation9 + $0x2e4] ss:$24 sps:$4 sm:$0xff]  }
 0x79e   :  { %v2400_v21 = vadd.f32 %v2301_v62, %v6447_v30  ;;  %v2414_v18 = vadd.f32 %v2342_v32, %v6448_v31  ;;  %v6449_v47 = vld [vmem:[#allocation65_spill] sm:$0xff] }
 0x79f   :  { %v3042_v9 = vmul.f32 -1.442695, %v2393_v48  ;;  %v6450_v48 = vld [vmem:[#allocation53_spill] sm:$0xff] }
 0x7a0   :  { %v3043_v50 = vmul.f32 -1.442695, %v2400_v21  ;;  %v3044_v30 = vmul.f32 -1.442695, %v2414_v18  ;;  %v1881_v46 = vsel %vm1880_vm13, %v6450_v48, 0.0 }
 0x7a1   :  { %3388 = vpow2.f32 %v3042_v9 }
 0x7a2   :  { %3390 = vpow2.f32 %v3043_v50 }
 0x7ab   :  { %v3389_v61 = vpop.eup %3388 }
 0x7ac   :  { %v2397_v19 = vadd.f32 1.0, %v3389_v61  ;;  %v3391_v16 = vpop.eup %3390 }
 0x7ad   :  { %v2404_v27 = vadd.f32 1.0, %v3391_v16 }
 0x7ae   :  { %3392 = vrcp.f32 %v2397_v19 }
 0x7af   :  { %3394 = vrcp.f32 %v2404_v27 }
 0x7b8   :  { %v3393_v43 = vpop.eup %3392 }
 0x7b9   :  { %v2407_v29 = vmul.f32 %v3393_v43, %v2340_v23  ;;  %v3395_v31 = vpop.eup %3394 }
 0x7ba   :  { %v2410_v14 = vsub.f32 1.0, %v3395_v31  ;;  %v2412_v50 = vmul.f32 %v3395_v31, %v5357_v4 }
 0x7bb   :  { %v2408_v40 = vadd.f32 %v2407_v29, %v6449_v47 }
 0x7bd   :  { %3396 = vtanh.f32 %v2408_v40  ;;  %v6452_v40 = vld [vmem:[#allocation79_spill] sm:$0xff] }
 0x7be   :  { %3398 = vpow2.f32 %v3044_v30 }
 0x7c7   :  { %v3397_v9 = vpop.eup %3396 }
 0x7c8   :  { %v2411_v62 = vmul.f32 %v3397_v9, %v2410_v14  ;;  %v3399_v19 = vpop.eup %3398 }
 0x7c9   :  { %v2418_v61 = vadd.f32 1.0, %v3399_v19 }
 0x7ca   :  { %v2413_v21 = vadd.f32 %v2412_v50, %v2411_v62  ;;  %v6453_v62 = vld [vmem:[#allocation80_spill] sm:$0xff] }
 0x7cb   :  { %3400 = vrcp.f32 %v2418_v61 }
 0x7cc   :  { %v2435_v27 = vsel %vm1880_vm13, %v2413_v21, 0.0 }
 0x7cd   :  { %v2828_v32 = vadd.f32 %v2435_v27, %v1881_v46 }
 0x7cf   :  { %2836 = vst [vmem:[#allocation10 + $0x28] sm:$0xff] %v2828_v32 }
 0x7d5   :  { %v3401_v47 = vpop.eup %3400 }
 0x7da   :  { %v2380_v18 = vpop.f32.mrb[64].mxu0 }
 0x7db   :  { %v2381_v16 = vadd.f32 %v2380_v18, %v4511_v56  ;;  %v2382_v23 = vpop.f32.mrb[65].mxu0 }
 0x7dc   :  { %v2383_v43 = vadd.f32 %v2382_v23, %v4516_v63  ;;  %v2384_v29 = vpop.f32.mrb[66].mxu0 }
 0x7dd   :  { %v2421_v30 = vadd.f32 %v2381_v16, %v6452_v40  ;;  %v2385_v31 = vpop.f32.mrb[67].mxu0  ;;  %v5594_v16 = vsel %vm1880_vm13, %v2413_v21, %v5357_v4  ;;  %v5686_v21 = vld [vmem:[#allocation9 + $0x2b0] ss:$24 sps:$4 sm:$0xff]  }
 0x7de   :  { %v2428_v14 = vmul.f32 %v3401_v47, %v2383_v43  ;;  %v6454_v43 = vld [vmem:[#allocation52_spill] sm:$0xff]  ;;  %v5610_v4 = vpack.c.bf16 %v5594_v16, %v5594_v16 }
 0x7df   :  { %v3045_v9 = vmul.f32 -1.442695, %v2421_v30  ;;  %v1873_v47 = vsel %vm1872_vm12, %v6454_v43, 0.0  ;;  %v6477_v43 = vld [vmem:[#allocation43_spill] sm:$0xff]  ;;  %v6478_v29 = vld [vmem:[#allocation28_spill] sm:$0xff] }
 0x7e0   :  { %v2429_v50 = vadd.f32 %v2428_v14, %v6453_v62  ;;  %v6468_v62 = vld [vmem:[#allocation48_spill] sm:$0xff] }
 0x7e1   :  { %3402 = vpow2.f32 %v3045_v9  ;;  %v6467_v9 = vld [vmem:[#allocation47_spill] sm:$0xff] }
 0x7eb   :  { %v3403_v48 = vpop.eup %3402 }
 0x7ec   :  { %v2425_v19 = vadd.f32 1.0, %v3403_v48  ;;  %v6469_v48 = vld [vmem:[#allocation26_spill] sm:$0xff] }
 0x7ee   :  { %3404 = vrcp.f32 %v2425_v19  ;;  %v6470_v19 = vld [vmem:[#allocation56_spill] sm:$0xff] }
 0x7ef   :  { %3406 = vtanh.f32 %v2429_v50  ;;  %v5694_v50 = vld [vmem:[#allocation9 + $0x2e0] ss:$24 sps:$4 sm:$0xff]  }
 0x7f8   :  { %v3405_v46 = vpop.eup %3404 }
 0x7f9   :  { %v2431_v27 = vsub.f32 1.0, %v3405_v46  ;;  %v3407_v32 = vpop.eup %3406  ;;  %v2433_v18 = vmul.f32 %v3405_v46, %v5367_v34  ;;  %v6471_v46 = vld [vmem:[#allocation58_spill] sm:$0xff] }
 0x7fb   :  { %v2432_v61 = vmul.f32 %v3407_v32, %v2431_v27  ;;  %v6472_v27 = vld [vmem:[#allocation33_spill] sm:$0xff]  ;;  %v6473_v32 = vld [vmem:[#allocation35_spill] sm:$0xff] }
 0x7fd   :  { %v2434_v23 = vadd.f32 %v2433_v18, %v2432_v61  ;;  %v6474_v61 = vld [vmem:[#allocation37_spill] sm:$0xff]  ;;  %v6475_v18 = vld [vmem:[#allocation39_spill] sm:$0xff] }
 0x7ff   :  { %v2438_v40 = vsel %vm1872_vm12, %v2434_v23, 0.0  ;;  %v5604_v30 = vsel %vm1872_vm12, %v2434_v23, %v5367_v34  ;;  %v6466_v34 = vld [vmem:[#allocation46_spill] sm:$0xff]  ;;  %v6476_v23 = vld [vmem:[#allocation41_spill] sm:$0xff] }
 0x800   :  { %v2444_v31 = vpack.c.bf16 %v5604_v30, %v5604_v30  ;;  %v2825_v14 = vadd.f32 %v2438_v40, %v1873_v47  ;;  %v6479_v47 = vld [vmem:[#allocation30_spill] sm:$0xff]  ;;  %v6480_v40 = vld [vmem:[#allocation32_spill] sm:$0xff] }
 0x802   :  { %2477 = vmatprep.mubr.bf16.mxu1 %v2444_v31  ;;  %2833 = vst [vmem:[#allocation10 + $0x10] sm:$0xff] %v2825_v14  ;;  %2518 = vmatprep.mubr.bf16.mxu0 %v2444_v31  ;;  %v6482_v14 = vld [vmem:[#allocation63_spill] sm:$0xff] }
 0x803   :  { %2478 = vmatmul.mubr.bf16.vlgmr.msra.gmra.mrb[52].mxu1 %v5610_v4  ;;  %2519 = vmatmul.mubr.bf16.vlgmr.msra.gmra.mrb[68].mxu0 %v5610_v4 }
 0x804   :  { %2528 = vmatpush1.bf16.msra.mxu1 %v5377_v25  ;;  %2559 = vmatprep.mubr.bf16.mxu1 %v2444_v31  ;;  %v6481_v31 = vld [vmem:[#allocation34_spill] sm:$0xff] }
 0x805   :  { %2529 = vmatprep.subr.bf16.mxu1 %v5380_v37  ;;  %2627 = vmatpush1.bf16.msra.mxu0 %v5168_v5  ;;  %v6456_v5 = vld [vmem:[#allocation38_spill] sm:$0xff] }
 0x806   :  { %2628 = vmatprep.subr.bf16.mxu0 %v5171_v39  ;;  %v6457_v39 = vld [vmem:[#allocation31_spill] sm:$0xff] }
 0x808   :  { %2530 = vmatpush1.bf16.msra.mxu1 %v5385_v10 }
 0x809   :  { %2531 = vmatprep.subr.bf16.mxu1 %v5388_v26  ;;  %2629 = vmatpush1.bf16.msra.mxu0 %v5176_v15  ;;  %v6458_v15 = vld [vmem:[#allocation18_spill] sm:$0xff] }
 0x80a   :  { %2630 = vmatprep.subr.bf16.mxu0 %v5179_v13  ;;  %v5654_v13 = vld [vmem:[#allocation9 + $0x1f0] ss:$24 sps:$4 sm:$0xff]  }
 0x80c   :  { %2532 = vmatpush1.bf16.msra.mxu1 %v5393_v7 }
 0x80d   :  { %2533 = vmatprep.subr.bf16.mxu1 %v5396_v6  ;;  %2631 = vmatpush1.bf16.msra.mxu0 %v5184_v11  ;;  %v5657_v11 = vld [vmem:[#allocation9 + $0x224] ss:$24 sps:$4 sm:$0xff]  }
 0x80e   :  { %2632 = vmatprep.subr.bf16.mxu0 %v5187_v28  ;;  %v6459_v28 = vld [vmem:[#allocation20_spill] sm:$0xff] }
 0x810   :  { %2534 = vmatpush1.bf16.msra.mxu1 %v5401_v0 }
 0x811   :  { %2535 = vmatprep.subr.bf16.mxu1 %v5404_v41  ;;  %2633 = vmatpush1.bf16.msra.mxu0 %v5192_v44  ;;  %v6460_v44 = vld [vmem:[#allocation22_spill] sm:$0xff] }
 0x812   :  { %2634 = vmatprep.subr.bf16.mxu0 %v5195_v52  ;;  %v5662_v52 = vld [vmem:[#allocation9 + $0x220] ss:$24 sps:$4 sm:$0xff]  }
 0x814   :  { %2536 = vmatpush1.bf16.msra.mxu1 %v5409_v2 }
 0x815   :  { %2537 = vmatprep.subr.bf16.mxu1 %v5412_v17  ;;  %2635 = vmatpush1.bf16.msra.mxu0 %v5200_v49  ;;  %v5665_v49 = vld [vmem:[#allocation9 + $0x254] ss:$24 sps:$4 sm:$0xff]  }
 0x816   :  { %2636 = vmatprep.subr.bf16.mxu0 %v5203_v22  ;;  %v6461_v22 = vld [vmem:[#allocation23_spill] sm:$0xff] }
 0x818   :  { %2538 = vmatpush1.bf16.msra.mxu1 %v5417_v57 }
 0x819   :  { %2539 = vmatprep.subr.bf16.mxu1 %v5420_v20  ;;  %2637 = vmatpush1.bf16.msra.mxu0 %v5208_v42  ;;  %v6462_v42 = vld [vmem:[#allocation24_spill] sm:$0xff] }
 0x81a   :  { %2638 = vmatprep.subr.bf16.mxu0 %v5211_v35  ;;  %v5670_v35 = vld [vmem:[#allocation9 + $0x250] ss:$24 sps:$4 sm:$0xff]  }
 0x81c   :  { %2540 = vmatpush1.bf16.msra.mxu1 %v5425_v12 }
 0x81d   :  { %2541 = vmatprep.subr.bf16.mxu1 %v5428_v1  ;;  %2639 = vmatpush1.bf16.msra.mxu0 %v5216_v36  ;;  %v5673_v36 = vld [vmem:[#allocation9 + $0x284] ss:$24 sps:$4 sm:$0xff]  }
 0x81e   :  { %2640 = vmatprep.subr.bf16.mxu0 %v5219_v38  ;;  %v6463_v38 = vld [vmem:[#allocation40_spill] sm:$0xff] }
 0x820   :  { %2542 = vmatpush1.bf16.msra.mxu1 %v5433_v54 }
 0x821   :  { %2543 = vmatprep.subr.bf16.mxu1 %v5436_v58  ;;  %2641 = vmatpush1.bf16.msra.mxu0 %v5224_v8  ;;  %v6464_v8 = vld [vmem:[#allocation42_spill] sm:$0xff] }
 0x822   :  { %2642 = vmatprep.subr.bf16.mxu0 %v5227_v53  ;;  %v5678_v53 = vld [vmem:[#allocation9 + $0x280] ss:$24 sps:$4 sm:$0xff]  }
 0x824   :  { %2544 = vmatpush1.bf16.msra.mxu1 %v5441_v24 }
 0x825   :  { %2545 = vmatprep.subr.bf16.mxu1 %v5444_v45  ;;  %2643 = vmatpush1.bf16.msra.mxu0 %v5232_v33  ;;  %v5681_v33 = vld [vmem:[#allocation9 + $0x2b4] ss:$24 sps:$4 sm:$0xff]  }
 0x826   :  { %2644 = vmatprep.subr.bf16.mxu0 %v5235_v60  ;;  %v6465_v60 = vld [vmem:[#allocation44_spill] sm:$0xff] }
 0x828   :  { %2546 = vmatpush1.bf16.msra.mxu1 %v5449_v55 }
 0x829   :  { %2547 = vmatprep.subr.bf16.mxu1 %v6456_v5  ;;  %2645 = vmatpush1.bf16.msra.mxu0 %v6457_v39  ;;  %v6484_v39 = vld [vmem:[#allocation83_spill] sm:$0xff] }
 0x82a   :  { %2646 = vmatprep.subr.bf16.mxu0 %v6458_v15  ;;  %v6485_v15 = vld [vmem:[#allocation84_spill] sm:$0xff] }
 0x82c   :  { %2548 = vmatpush1.bf16.msra.mxu1 %v5654_v13 }
 0x82d   :  { %2549 = vmatprep.subr.bf16.mxu1 %v5657_v11  ;;  %2647 = vmatpush1.bf16.msra.mxu0 %v6459_v28  ;;  %v6486_v28 = vld [vmem:[#allocation45_spill] sm:$0xff] }
 0x82e   :  { %2648 = vmatprep.subr.bf16.mxu0 %v6460_v44  ;;  %v6487_v44 = vld [vmem:[#allocation49_spill] sm:$0xff] }
 0x830   :  { %2550 = vmatpush1.bf16.msra.mxu1 %v5662_v52 }
 0x831   :  { %2551 = vmatprep.subr.bf16.mxu1 %v5665_v49  ;;  %2649 = vmatpush1.bf16.msra.mxu0 %v6461_v22  ;;  %v6488_v22 = vld [vmem:[#allocation51_spill] sm:$0xff] }
 0x832   :  { %2650 = vmatprep.subr.bf16.mxu0 %v6462_v42  ;;  %v6489_v42 = vld [vmem:[#allocation71_spill] sm:$0xff] }
 0x834   :  { %2552 = vmatpush1.bf16.msra.mxu1 %v5670_v35 }
 0x835   :  { %2553 = vmatprep.subr.bf16.mxu1 %v5673_v36  ;;  %2651 = vmatpush1.bf16.msra.mxu0 %v6463_v38  ;;  %v6490_v38 = vld [vmem:[#allocation17_spill] sm:$0xff] }
 0x836   :  { %2652 = vmatprep.subr.bf16.mxu0 %v6464_v8  ;;  %v6491_v8 = vld [vmem:[#allocation87_spill] sm:$0xff] }
 0x838   :  { %2554 = vmatpush1.bf16.msra.mxu1 %v5678_v53 }
 0x839   :  { %2555 = vmatprep.subr.bf16.mxu1 %v5681_v33  ;;  %2653 = vmatpush1.bf16.msra.mxu0 %v6465_v60  ;;  %v6492_v60 = vld [vmem:[#allocation88_spill] sm:$0xff] }
 0x83a   :  { %2654 = vmatprep.subr.bf16.mxu0 %v6466_v34  ;;  %v6493_v34 = vld [vmem:[#allocation93_spill] sm:$0xff] }
 0x83c   :  { %2556 = vmatpush1.bf16.msra.mxu1 %v5686_v21 }
 0x83d   :  { %2557 = vmatprep.subr.bf16.mxu1 %v5689_v59  ;;  %2655 = vmatpush1.bf16.msra.mxu0 %v6467_v9  ;;  %v6494_v9 = vld [vmem:[#allocation94_spill] sm:$0xff] }
 0x83e   :  { %2656 = vmatprep.subr.bf16.mxu0 %v6468_v62  ;;  %v6495_v62 = vld [vmem:[#allocation95_spill] sm:$0xff] }
 0x840   :  { %2558 = vmatpush1.bf16.msra.mxu1 %v5694_v50 }
 0x841   :  { %2667 = vmatprep.subr.bf16.mxu1 %v6469_v48  ;;  %2657 = vmatpush1.bf16.msra.mxu0 %v6470_v19  ;;  %v6496_v48 = vld [vmem:[#allocation96_spill] sm:$0xff]  ;;  %v6497_v19 = vld [vmem:[#allocation97_spill] sm:$0xff] }
 0x842   :  { %2708 = vmatprep.subr.bf16.mxu0 %v6471_v46  ;;  %v6498_v46 = vld [vmem:[#allocation98_spill] sm:$0xff] }
 0x843   :  { %2560 = vmatmul.mubr.bf16.vlgmr.msra.gmra.mrb[56].mxu1 %v5610_v4  ;;  %v6483_v4 = vld [vmem:[#allocation57_spill] sm:$0xff] }
 0x844   :  { %2668 = vmatpush1.bf16.msra.mxu1 %v6472_v27  ;;  %v6499_v27 = vld [vmem:[#allocation99_spill] sm:$0xff] }
 0x845   :  { %2669 = vmatprep.subr.bf16.mxu1 %v6473_v32  ;;  %v6500_v32 = vld [vmem:[#allocation100_spill] sm:$0xff] }
 0x848   :  { %2670 = vmatpush1.bf16.msra.mxu1 %v6474_v61  ;;  %v6501_v61 = vld [vmem:[#allocation101_spill] sm:$0xff] }
 0x849   :  { %2671 = vmatprep.subr.bf16.mxu1 %v6475_v18  ;;  %v6502_v18 = vld [vmem:[#allocation102_spill] sm:$0xff] }
 0x84c   :  { %2672 = vmatpush1.bf16.msra.mxu1 %v6476_v23 }
 0x84d   :  { %2673 = vmatprep.subr.bf16.mxu1 %v6477_v43 }
 0x850   :  { %2674 = vmatpush1.bf16.msra.mxu1 %v6478_v29  ;;  %v6503_v29 = vld [vmem:[#allocation89_spill] sm:$0xff] }
 0x851   :  { %2675 = vmatprep.subr.bf16.mxu1 %v6479_v47 }
 0x854   :  { %2676 = vmatpush1.bf16.msra.mxu1 %v6480_v40 }
 0x855   :  { %2677 = vmatprep.subr.bf16.mxu1 %v6481_v31 }
 0x858   :  { %2678 = vmatpush1.bf16.msra.mxu1 %v6482_v14  ;;  %v6504_v14 = vld [vmem:[#allocation90_spill] sm:$0xff] }
 0x859   :  { %2679 = vmatprep.subr.bf16.mxu1 %v6483_v4 }
 0x85c   :  { %2680 = vmatpush1.bf16.msra.mxu1 %v6484_v39 }
 0x85d   :  { %2681 = vmatprep.subr.bf16.mxu1 %v6485_v15 }
 0x860   :  { %2682 = vmatpush1.bf16.msra.mxu1 %v6486_v28 }
 0x861   :  { %2683 = vmatprep.subr.bf16.mxu1 %v6487_v44  ;;  %v6505_v44 = vld [vmem:[#allocation68_spill] sm:$0xff] }
 0x864   :  { %2684 = vmatpush1.bf16.msra.mxu1 %v6488_v22 }
 0x865   :  { %2685 = vmatprep.subr.bf16.mxu1 %v6489_v42 }
 0x868   :  { %2686 = vmatpush1.bf16.msra.mxu1 %v6490_v38 }
 0x869   :  { %2687 = vmatprep.subr.bf16.mxu1 %v6491_v8  ;;  %v6506_v8 = vld [vmem:[#allocation70_spill] sm:$0xff] }
 0x86c   :  { %2688 = vmatpush1.bf16.msra.mxu1 %v6492_v60 }
 0x86d   :  { %2689 = vmatprep.subr.bf16.mxu1 %v6493_v34  ;;  %v6507_v34 = vld [vmem:[#allocation50_spill] sm:$0xff] }
 0x870   :  { %2690 = vmatpush1.bf16.msra.mxu1 %v6494_v9 }
 0x871   :  { %2691 = vmatprep.subr.bf16.mxu1 %v6495_v62 }
 0x874   :  { %2692 = vmatpush1.bf16.msra.mxu1 %v6496_v48 }
 0x875   :  { %2693 = vmatprep.subr.bf16.mxu1 %v6497_v19 }
 0x878   :  { %2694 = vmatpush1.bf16.msra.mxu1 %v6498_v46 }
 0x879   :  { %2695 = vmatprep.subr.bf16.mxu1 %v6499_v27 }
 0x87c   :  { %2696 = vmatpush1.bf16.msra.mxu1 %v6500_v32 }
 0x87d   :  { %2697 = vmatprep.subr.bf16.mxu1 %v6501_v61 }
 0x880   :  { %2698 = vmatpush1.bf16.msra.mxu1 %v6502_v18 }
 0x8d6   :  { %v2479_v23 = vpop.f32.mrb[52].mxu1  ;;  %v2520_v43 = vpop.f32.mrb[68].mxu0 }
 0x8d7   :  { %v2480_v47 = vadd.f32 %v2479_v23, %v6503_v29  ;;  %v2481_v40 = vpop.f32.mrb[53].mxu1  ;;  %v2522_v31 = vpop.f32.mrb[69].mxu0  ;;  %v2521_v61 = vadd.f32 %v2520_v43, %v4485_v51  ;;  %v2813_v43 = vld [vmem:[#allocation10 + $0x30] sm:$0xff] }
 0x8d8   :  { %v2482_v4 = vadd.f32 %v2481_v40, %v6504_v14  ;;  %v2523_v39 = vadd.f32 %v2522_v31, %v4490_v3  ;;  %v2483_v15 = vpop.f32.mrb[54].mxu1  ;;  %v2524_v28 = vpop.f32.mrb[70].mxu0 }
 0x8d9   :  { %v2574_v22 = vadd.f32 %v2480_v47, %v6505_v44  ;;  %v2484_v42 = vpop.f32.mrb[55].mxu1  ;;  %v2525_v38 = vpop.f32.mrb[71].mxu0  ;;  %v6508_v47 = vld [vmem:[#allocation69_spill] sm:$0xff] }
 0x8da   :  { %v2581_v60 = vadd.f32 %v2482_v4, %v6506_v8  ;;  %v2595_v9 = vadd.f32 %v2523_v39, %v6507_v34 }
 0x8db   :  { %v3046_v62 = vmul.f32 -1.442695, %v2574_v22 }
 0x8dc   :  { %v3047_v48 = vmul.f32 -1.442695, %v2581_v60  ;;  %v3048_v31 = vmul.f32 -1.442695, %v2595_v9 }
 0x8dd   :  { %3408 = vpow2.f32 %v3046_v62 }
 0x8de   :  { %3410 = vpow2.f32 %v3047_v48 }
 0x8e7   :  { %v3409_v19 = vpop.eup %3408 }
 0x8e8   :  { %v2578_v46 = vadd.f32 1.0, %v3409_v19  ;;  %v3411_v27 = vpop.eup %3410 }
 0x8e9   :  { %v2585_v32 = vadd.f32 1.0, %v3411_v27 }
 0x8ea   :  { %3412 = vrcp.f32 %v2578_v46 }
 0x8eb   :  { %3414 = vrcp.f32 %v2585_v32  ;;  %v6510_v32 = vld [vmem:[#allocation77_spill] sm:$0xff] }
 0x8f4   :  { %v3413_v18 = vpop.eup %3412 }
 0x8f5   :  { %v2588_v23 = vmul.f32 %v3413_v18, %v2521_v61  ;;  %v3415_v4 = vpop.eup %3414 }
 0x8f6   :  { %v2591_v39 = vsub.f32 1.0, %v3415_v4  ;;  %v2593_v44 = vmul.f32 %v3415_v4, %v5594_v16 }
 0x8f7   :  { %v2589_v40 = vadd.f32 %v2588_v23, %v6508_v47 }
 0x8f9   :  { %3416 = vtanh.f32 %v2589_v40  ;;  %v6511_v40 = vld [vmem:[#allocation78_spill] sm:$0xff] }
 0x8fa   :  { %3418 = vpow2.f32 %v3048_v31 }
 0x903   :  { %v3417_v15 = vpop.eup %3416 }
 0x904   :  { %v2592_v28 = vmul.f32 %v3417_v15, %v2591_v39  ;;  %v3419_v42 = vpop.eup %3418 }
 0x905   :  { %v2599_v34 = vadd.f32 1.0, %v3419_v42 }
 0x906   :  { %v2594_v22 = vadd.f32 %v2593_v44, %v2592_v28 }
 0x907   :  { %3420 = vrcp.f32 %v2599_v34  ;;  %v6512_v34 = vld [vmem:[#allocation25_spill] sm:$0xff] }
 0x908   :  { %v2616_v8 = vsel %vm1685_vm11, %v2594_v22, 0.0 }
 0x909   :  { %v2829_v60 = vadd.f32 %v2813_v43, %v2616_v8 }
 0x90b   :  { %2837 = vst [vmem:[#allocation10 + $0x30] sm:$0xff] %v2829_v60  ;;  %v5751_v60 = vsel %vm1685_vm11, %v2594_v22, %v5594_v16 }
 0x90c   :  { %v2624_v16 = vpack.c.bf16 %v5751_v60, %v5751_v60 }
 0x911   :  { %v3421_v27 = vpop.eup %3420 }
 0x916   :  { %v2561_v62 = vpop.f32.mrb[56].mxu1 }
 0x917   :  { %v2562_v9 = vadd.f32 %v2561_v62, %v4511_v56  ;;  %v2563_v48 = vpop.f32.mrb[57].mxu1 }
 0x918   :  { %v2564_v19 = vadd.f32 %v2563_v48, %v4516_v63  ;;  %v2565_v46 = vpop.f32.mrb[58].mxu1 }
 0x919   :  { %v2602_v61 = vadd.f32 %v2562_v9, %v6510_v32  ;;  %v2566_v18 = vpop.f32.mrb[59].mxu1  ;;  %v1678_v9 = vsel %vm1677_vm10, %v6512_v34, 0.0  ;;  %v6520_v34 = vld [vmem:[#allocation76_spill] sm:$0xff] }
 0x91a   :  { %v2609_v23 = vmul.f32 %v3421_v27, %v2564_v19 }
 0x91b   :  { %v3049_v47 = vmul.f32 -1.442695, %v2602_v61 }
 0x91c   :  { %v2610_v31 = vadd.f32 %v2609_v23, %v6511_v40 }
 0x91d   :  { %3422 = vpow2.f32 %v3049_v47 }
 0x927   :  { %v3423_v4 = vpop.eup %3422 }
 0x928   :  { %v2606_v39 = vadd.f32 1.0, %v3423_v4 }
 0x92a   :  { %3424 = vrcp.f32 %v2606_v39 }
 0x92b   :  { %3426 = vtanh.f32 %v2610_v31 }
 0x934   :  { %v3425_v15 = vpop.eup %3424 }
 0x935   :  { %v2612_v28 = vsub.f32 1.0, %v3425_v15  ;;  %v3427_v44 = vpop.eup %3426  ;;  %v2614_v8 = vmul.f32 %v3425_v15, %v5604_v30 }
 0x937   :  { %v2613_v42 = vmul.f32 %v3427_v44, %v2612_v28  ;;  %v6519_v28 = vld [vmem:[#allocation75_spill] sm:$0xff] }
 0x939   :  { %v2615_v43 = vadd.f32 %v2614_v8, %v2613_v42 }
 0x93b   :  { %v2619_v48 = vsel %vm1677_vm10, %v2615_v43, 0.0  ;;  %v5761_v19 = vsel %vm1677_vm10, %v2615_v43, %v5604_v30 }
 0x93c   :  { %v2625_v46 = vpack.c.bf16 %v5761_v19, %v5761_v19  ;;  %v2824_v27 = vadd.f32 %v2619_v48, %v1678_v9 }
 0x93e   :  { %2658 = vmatprep.mubr.bf16.mxu0 %v2625_v46  ;;  %2832 = vst [vmem:[#allocation10 + $0x8] sm:$0xff] %v2824_v27  ;;  %2699 = vmatprep.mubr.bf16.mxu1 %v2625_v46 }
 0x93f   :  { %2659 = vmatmul.mubr.bf16.vlgmr.msra.gmra.mrb[72].mxu0 %v2624_v16  ;;  %2700 = vmatmul.mubr.bf16.vlgmr.msra.gmra.mrb[60].mxu1 %v2624_v16 }
 0x940   :  { %2709 = vmatpush1.bf16.msra.mxu0 %v5377_v25  ;;  %2740 = vmatprep.mubr.bf16.mxu0 %v2625_v46 }
 0x941   :  { %2710 = vmatprep.subr.bf16.mxu0 %v5380_v37 }
 0x944   :  { %2711 = vmatpush1.bf16.msra.mxu0 %v5385_v10 }
 0x945   :  { %2712 = vmatprep.subr.bf16.mxu0 %v5388_v26 }
 0x948   :  { %2713 = vmatpush1.bf16.msra.mxu0 %v5393_v7 }
 0x949   :  { %2714 = vmatprep.subr.bf16.mxu0 %v5396_v6 }
 0x94c   :  { %2715 = vmatpush1.bf16.msra.mxu0 %v5401_v0 }
 0x94d   :  { %2716 = vmatprep.subr.bf16.mxu0 %v5404_v41 }
 0x950   :  { %2717 = vmatpush1.bf16.msra.mxu0 %v5409_v2 }
 0x951   :  { %2718 = vmatprep.subr.bf16.mxu0 %v5412_v17  ;;  %v6514_v17 = vld [vmem:[#allocation72_spill] sm:$0xff] }
 0x954   :  { %2719 = vmatpush1.bf16.msra.mxu0 %v5417_v57 }
 0x955   :  { %2720 = vmatprep.subr.bf16.mxu0 %v5420_v20 }
 0x958   :  { %2721 = vmatpush1.bf16.msra.mxu0 %v5425_v12 }
 0x959   :  { %2722 = vmatprep.subr.bf16.mxu0 %v5428_v1  ;;  %v6515_v1 = vld [vmem:[#allocation74_spill] sm:$0xff] }
 0x95c   :  { %2723 = vmatpush1.bf16.msra.mxu0 %v5433_v54 }
 0x95d   :  { %2724 = vmatprep.subr.bf16.mxu0 %v5436_v58  ;;  %v6516_v58 = vld [vmem:[#allocation21_spill] sm:$0xff] }
 0x960   :  { %2725 = vmatpush1.bf16.msra.mxu0 %v5441_v24 }
 0x961   :  { %2726 = vmatprep.subr.bf16.mxu0 %v5444_v45 }
 0x964   :  { %2727 = vmatpush1.bf16.msra.mxu0 %v5449_v55 }
 0x965   :  { %2728 = vmatprep.subr.bf16.mxu0 %v6456_v5 }
 0x968   :  { %2729 = vmatpush1.bf16.msra.mxu0 %v5654_v13 }
 0x969   :  { %2730 = vmatprep.subr.bf16.mxu0 %v5657_v11 }
 0x96c   :  { %2731 = vmatpush1.bf16.msra.mxu0 %v5662_v52 }
 0x96d   :  { %2732 = vmatprep.subr.bf16.mxu0 %v5665_v49 }
 0x970   :  { %2733 = vmatpush1.bf16.msra.mxu0 %v5670_v35  ;;  %v6517_v35 = vld [vmem:[#allocation73_spill] sm:$0xff] }
 0x971   :  { %2734 = vmatprep.subr.bf16.mxu0 %v5673_v36 }
 0x974   :  { %2735 = vmatpush1.bf16.msra.mxu0 %v5678_v53 }
 0x975   :  { %2736 = vmatprep.subr.bf16.mxu0 %v5681_v33 }
 0x978   :  { %2737 = vmatpush1.bf16.msra.mxu0 %v5686_v21 }
 0x979   :  { %2738 = vmatprep.subr.bf16.mxu0 %v5689_v59 }
 0x97c   :  { %2739 = vmatpush1.bf16.msra.mxu0 %v5694_v50 }
 0x97f   :  { %2741 = vmatmul.mubr.bf16.vlgmr.msra.gmra.mrb[76].mxu0 %v2624_v16 }
 0xa12   :  { %v2660_v25 = vpop.f32.mrb[72].mxu0  ;;  %v2701_v37 = vpop.f32.mrb[60].mxu1 }
 0xa13   :  { %v2661_v10 = vadd.f32 %v2660_v25, %v6503_v29  ;;  %v2662_v26 = vpop.f32.mrb[73].mxu0  ;;  %v2703_v7 = vpop.f32.mrb[61].mxu1  ;;  %v6521_v25 = vld [vmem:[#allocation19_spill] sm:$0xff] }
 0xa14   :  { %v2663_v6 = vadd.f32 %v2662_v26, %v6504_v14  ;;  %v2704_v0 = vadd.f32 %v2703_v7, %v4490_v3  ;;  %v2664_v41 = vpop.f32.mrb[74].mxu0  ;;  %v2705_v2 = vpop.f32.mrb[62].mxu1  ;;  %v2702_v3 = vadd.f32 %v2701_v37, %v4485_v51  ;;  %v2814_v51 = vld [vmem:[#allocation10 + $0x38] sm:$0xff] }
 0xa15   :  { %v2755_v57 = vadd.f32 %v2661_v10, %v6514_v17  ;;  %v2665_v20 = vpop.f32.mrb[75].mxu0  ;;  %v2706_v12 = vpop.f32.mrb[63].mxu1  ;;  %v1484_v10 = vsel %vm1483_vm8, %v6521_v25, 0.0 }
 0xa16   :  { %v2762_v54 = vadd.f32 %v2663_v6, %v6515_v1  ;;  %v2776_v24 = vadd.f32 %v2704_v0, %v6516_v58 }
 0xa17   :  { %v3050_v45 = vmul.f32 -1.442695, %v2755_v57 }
 0xa18   :  { %v3051_v55 = vmul.f32 -1.442695, %v2762_v54  ;;  %v3052_v53 = vmul.f32 -1.442695, %v2776_v24 }
 0xa19   :  { %3428 = vpow2.f32 %v3050_v45 }
 0xa1a   :  { %3430 = vpow2.f32 %v3051_v55 }
 0xa23   :  { %v3429_v30 = vpop.eup %3428 }
 0xa24   :  { %v2759_v5 = vadd.f32 1.0, %v3429_v30  ;;  %v3431_v13 = vpop.eup %3430 }
 0xa25   :  { %v2766_v11 = vadd.f32 1.0, %v3431_v13 }
 0xa26   :  { %3432 = vrcp.f32 %v2759_v5 }
 0xa27   :  { %3434 = vrcp.f32 %v2766_v11 }
 0xa30   :  { %v3433_v52 = vpop.eup %3432 }
 0xa31   :  { %v2769_v49 = vmul.f32 %v3433_v52, %v2702_v3  ;;  %v3435_v33 = vpop.eup %3434 }
 0xa32   :  { %v2772_v21 = vsub.f32 1.0, %v3435_v33  ;;  %v2774_v29 = vmul.f32 %v3435_v33, %v5751_v60 }
 0xa33   :  { %v2770_v36 = vadd.f32 %v2769_v49, %v6517_v35 }
 0xa35   :  { %3436 = vtanh.f32 %v2770_v36 }
 0xa36   :  { %3438 = vpow2.f32 %v3052_v53 }
 0xa3f   :  { %v3437_v59 = vpop.eup %3436 }
 0xa40   :  { %v2773_v50 = vmul.f32 %v3437_v59, %v2772_v21  ;;  %v3439_v22 = vpop.eup %3438 }
 0xa41   :  { %v2780_v23 = vadd.f32 1.0, %v3439_v22 }
 0xa42   :  { %v2775_v14 = vadd.f32 %v2774_v29, %v2773_v50 }
 0xa43   :  { %3440 = vrcp.f32 %v2780_v23 }
 0xa44   :  { %v2797_v32 = vsel %vm1490_vm9, %v2775_v14, 0.0  ;;  %v2802_v61 = vsel %vm1490_vm9, %v2775_v14, %v5751_v60 }
 0xa45   :  { %v2830_v18 = vadd.f32 %v2814_v51, %v2797_v32  ;;  %2804 = vst [vmem:[#allocation11] sm:$0xff] %v2802_v61 }
 0xa47   :  { %2838 = vst [vmem:[#allocation10 + $0x38] sm:$0xff] %v2830_v18 }
 0xa4d   :  { %v3441_v15 = vpop.eup %3440 }
 0xa52   :  { %v2742_v47 = vpop.f32.mrb[76].mxu0 }
 0xa53   :  { %v2743_v40 = vadd.f32 %v2742_v47, %v4511_v56  ;;  %v2744_v31 = vpop.f32.mrb[77].mxu0 }
 0xa54   :  { %v2745_v4 = vadd.f32 %v2744_v31, %v4516_v63  ;;  %v2746_v39 = vpop.f32.mrb[78].mxu0 }
 0xa55   :  { %v2783_v44 = vadd.f32 %v2743_v40, %v6519_v28  ;;  %v2747_v42 = vpop.f32.mrb[79].mxu0 }
 0xa56   :  { %v2790_v8 = vmul.f32 %v3441_v15, %v2745_v4 }
 0xa57   :  { %v3053_v43 = vmul.f32 -1.442695, %v2783_v44 }
 0xa58   :  { %v2791_v60 = vadd.f32 %v2790_v8, %v6520_v34 }
 0xa59   :  { %3442 = vpow2.f32 %v3053_v43 }
 0xa63   :  { %v3443_v62 = vpop.eup %3442 }
 0xa64   :  { %v2787_v9 = vadd.f32 1.0, %v3443_v62 }
 0xa66   :  { %3444 = vrcp.f32 %v2787_v9 }
 0xa67   :  { %3446 = vtanh.f32 %v2791_v60 }
 0xa70   :  { %v3445_v48 = vpop.eup %3444 }
 0xa71   :  { %v2793_v46 = vsub.f32 1.0, %v3445_v48  ;;  %v3447_v56 = vpop.eup %3446  ;;  %v2795_v27 = vmul.f32 %v3445_v48, %v5761_v19 }
 0xa73   :  { %v2794_v63 = vmul.f32 %v3447_v56, %v2793_v46 }
 0xa75   :  { %v2796_v16 = vadd.f32 %v2795_v27, %v2794_v63 }
 0xa77   :  { %v2800_v26 = vsel %vm1483_vm8, %v2796_v16, 0.0  ;;  %v2803_v7 = vsel %vm1483_vm8, %v2796_v16, %v5761_v19 }
 0xa78   :  { %v2823_v6 = vadd.f32 %v2800_v26, %v1484_v10  ;;  %2806 = vst [vmem:[#allocation11 + $0x8] sm:$0xff] %v2803_v7 }
 0xa79   :  { %3717 = shalt.err (!%p3714_p0)
}
 0xa7a   :  { %s3718_s10 = scalar_lea.hbm %s5864_s8, 256 }
 0xa7b   :  { %p3719_p1 = scmp.ne.s32.totalorder %s5864_s8, %s3718_s10  ;;  %p3722_p2 = scmp.lt.u32.totalorder %s3718_s10, %s5864_s8 }
 0xa7d   :  { %p3724_p3 = pnand %p3722_p2, %p3719_p1 }
 0xa7f   :  { %3727 = shalt.err (!%p3724_p3)
}
 0xa80   :  { %s3768_s17 = smov 128   ;;  %s3769_s18 = smov 8   ;;  %2831 = vst [vmem:[#allocation10] sm:$0xff] %v2823_v6 }
 0xa81   :  { %2862 = dma.vmem_to_hbm [thread:$0]  %s2857_s27, 256, %s5864_s8, [#allocation12], %s3768_s17, %s3768_s17, %s3769_s18  }
 0xa82   :  { %s3728_s22 = scalar_lea.vmem %s5825_s2, 1024  ;;  %p3733_p5 = scmp.lt.s32.totalorder %s5825_s2, %s5825_s2 }
 0xa83   :  { %p3729_p4 = scmp.ne.s32.totalorder %s5825_s2, %s3728_s22  ;;  %p3734_p6 = scmp.lt.s32.totalorder %s3728_s22, %s3728_s22 }
 0xa85   :  { %p3735_p7 = por %p3734_p6, %p3733_p5 }
 0xa87   :  { %p3736_p8 = pnand %p3735_p7, %p3729_p4 }
 0xa89   :  { %3739 = shalt.err (!%p3736_p8)
}
 0xa8a   :  { %s3740_s3 = scalar_lea.hbm %s5863_s7, 1024 }
 0xa8b   :  { %p3741_p9 = scmp.ne.s32.totalorder %s5863_s7, %s3740_s3  ;;  %p3744_p10 = scmp.lt.u32.totalorder %s3740_s3, %s5863_s7 }
 0xa8d   :  { %p3746_p11 = pnand %p3744_p10, %p3741_p9 }
 0xa8f   :  { %3749 = shalt.err (!%p3746_p11)
}
 0xa90   :  { %2850 = dma.vmem_to_hbm [thread:$0]  %s5825_s2, 1024, %s5863_s7, [#allocation6], %s3768_s17, %s3768_s17, %s3769_s18  }
 0xa91   :  { %3754 = dma.done.wait [#allocation6], 1024  }
 0xa92   :  { %3755 = vsyncadd [#allocation6], 4294966272 }
 0xa93   :  { %3756 = dma.done.wait [#allocation12], 256  }
 0xa94   :  { %3757 = vsyncadd [#allocation12], 4294967040 }
 0xa95   :  { %2869 = vsyncpa [#allocation5], 1 }
 0xa96   :  { %2870 = vsyncpa [#allocation8], 1 }
 0xa97   :  { %2871 = vsyncpa [#allocation6], 1 }
 0xa98   :  { %2872 = vsyncpa [#allocation12], 1 }

</bundles_post_ra>
